<compile_context>
chip_gen: v7x
topology: tpu7x:2x2x1
jax: 0.10.0
libtpu: 0.0.40
codegen_flags: <defaults>
</compile_context>

<pallas_src>
import jax
import jax.numpy as jnp
from jax.experimental import pallas as pl
from jax.experimental.pallas import tpu as pltpu

INPUT_DIM = 16                   # sequence length fed to Conv1d
NUM_CLASSES = 4
CONV_OUT = 32
HIDDEN = 64
T = (INPUT_DIM - 2) // 2         # length after conv(k=3) + maxpool(2)  -> 7
HP = 128                         # both LSTM layers packed into one 128-lane tile
G = 4 * HP                       # 512 gate-preactivation lanes per step
PW = 256                         # pooled width (T*32 = 224) padded to 2 lane tiles
NC_P = 128                       # classes padded to a full lane tile (lane-dense store)


def _sig(x):
    # sigmoid(x) == 0.5*(1 + tanh(0.5*x)): one EUP op instead of exp + reciprocal.
    return 0.5 * jnp.tanh(0.5 * x) + 0.5


# ---------------------------------------------------------------------------
# Pallas kernel: whole forward pass for one batch tile, fully VMEM-resident.
# ---------------------------------------------------------------------------
def convlstm_kernel(x_ref,
                    wcp_ref, wbig_ref, bbig_ref, wcomb_ref,
                    wfc1_ref, bfc1_ref, wfc2_ref, bfc2_ref,
                    out_ref,
                    gin_buf, h2_buf):
    cd = wcomb_ref.dtype                     # matmul-operand dtype (f32 or bf16)

    def gates(g):                            # 128-lane-aligned i, f, g, o blocks (both layers)
        i = _sig(g[:, 0 * HP:1 * HP])
        f = _sig(g[:, 1 * HP:2 * HP])
        gg = jnp.tanh(g[:, 2 * HP:3 * HP])
        o = _sig(g[:, 3 * HP:4 * HP])
        return i, f, gg, o

    # ---- Conv1d(k=3) + MaxPool1d(2): one matmul; conv bias folded into gate bias ------
    conv = jnp.dot(x_ref[...].astype(cd), wcp_ref[...],
                   preferred_element_type=jnp.float32)            # (tb, 2*PW) [even|odd]
    pooled = jnp.maximum(conv[:, :PW], conv[:, PW:])              # (tb, PW)

    # ---- LSTM1 input projection for every step + all gate biases, staged in VMEM ------
    gin_buf[...] = (jnp.dot(pooled.astype(cd), wbig_ref[...],
                            preferred_element_type=jnp.float32) + bbig_ref[...])

    wc = wcomb_ref[...]                                           # (128, 512) combined weight

    # ---- step 0 prologue: LSTM1 only.  Layer-2 preactivations are exactly 0, so its
    #      state stays exactly 0 (i=f=o=0.5, g=tanh(0)=0 -> c2=h2=0). ---------------------
    i, f, gg, o = gates(gin_buf[:, 0:G])
    c = i * gg
    h = o * jnp.tanh(c)

    # ---- steps 1..T: both layers, skewed by one step, in ONE (tb,128)@(128,512) matmul --
    #      lanes [0:64]  = layer-1 state at t = s
    #      lanes [64:128] = layer-2 state at t = s-1   (layer-2 input = previous h1)
    for s in range(1, T + 1):
        g = gin_buf[:, s * G:(s + 1) * G] + jnp.dot(
            h.astype(cd), wc, preferred_element_type=jnp.float32)
        i, f, gg, o = gates(g)
        c = f * c + i * gg
        h = o * jnp.tanh(c)
        # Dropout(p=0.3) is identity at inference time (eval semantics).
        # Stash the full packed h (128-aligned lane slab); fc1 rows for layer-1 lanes are 0.
        h2_buf[:, (s - 1) * HP:s * HP] = h.astype(h2_buf.dtype)

    # ---- fc1 (one K=896 matmul) -> ReLU -> fc2 -> softmax; lane-dense (tb,128) output ---
    x1 = jnp.maximum(
        jnp.dot(h2_buf[...], wfc1_ref[...], preferred_element_type=jnp.float32)
        + bfc1_ref[...], 0.0)                                     # (tb, 128)
    logits = jnp.dot(x1.astype(cd), wfc2_ref[...],
                     preferred_element_type=jnp.float32) + bfc2_ref[...]
    m = jnp.max(logits, axis=1, keepdims=True)
    e = jnp.exp(logits - m)        # padded class columns carry a -1e30 f32 bias -> exp == 0
    out_ref[...] = e / jnp.sum(e, axis=1, keepdims=True)


# ---------------------------------------------------------------------------
# Wrapper: minimal glue (drop channel dim, pad batch) + pallas_call.
# ---------------------------------------------------------------------------
def convlstm_forward(x, params, *, tile_b=None):
    bsz = x.shape[0]
    if tile_b is None:
        # Largest sublane-aligned tile that still yields >=2 grid tiles (both v7x TCs),
        # capped at 256 (good MXU fill on v6e; VMEM footprint stays a few MB everywhere).
        tile_b = min(256, max(8, 8 * pl.cdiv(pl.cdiv(bsz, 2), 8)))
    b_pad = pl.cdiv(bsz, tile_b) * tile_b
    n_tiles = b_pad // tile_b

    x1 = x[:, :, 0]                                   # (B, input_dim) -- only wrapper glue
    if b_pad != bsz:
        x1 = jnp.pad(x1, ((0, b_pad - bsz), (0, 0)))

    names = ("wcp", "wbig", "bbig", "wcomb", "wfc1", "bfc1", "wfc2", "bfc2")
    weights = [params[k] for k in names]
    weight_specs = [pl.BlockSpec(w.shape, lambda i: (0, 0)) for w in weights]
    cd = params["wcomb"].dtype

    out = pl.pallas_call(
        convlstm_kernel,
        out_shape=jax.ShapeDtypeStruct((b_pad, NC_P), jnp.float32),
        grid=(n_tiles,),
        in_specs=[pl.BlockSpec((tile_b, INPUT_DIM), lambda i: (i, 0))] + weight_specs,
        out_specs=pl.BlockSpec((tile_b, NC_P), lambda i: (i, 0)),
        scratch_shapes=[pltpu.VMEM((tile_b, (T + 1) * G), jnp.float32),   # staged gate preacts
                        pltpu.VMEM((tile_b, T * HP), cd)],                # packed h history
        compiler_params=pltpu.CompilerParams(
            dimension_semantics=("parallel",),
            vmem_limit_bytes=32 * 1024 * 1024),
    )(x1, *weights)
    return out[:bsz, :NUM_CLASSES]


# ---------------------------------------------------------------------------
# Parameter init (PyTorch shapes) + repacking into the lane-packed kernel layout.
# ---------------------------------------------------------------------------
def init_raw_params(key):
    ks = jax.random.split(key, 14)
    w = lambda k, s: 0.1 * jax.random.normal(k, s, jnp.float32)
    conv_w = w(ks[0], (CONV_OUT, 1, 3))
    conv_b = w(ks[1], (CONV_OUT,))
    wih1 = w(ks[2], (4 * HIDDEN, CONV_OUT))
    whh1 = w(ks[3], (4 * HIDDEN, HIDDEN))
    bih1 = w(ks[4], (4 * HIDDEN,))
    bhh1 = w(ks[5], (4 * HIDDEN,))
    wih2 = w(ks[6], (4 * HIDDEN, HIDDEN))
    whh2 = w(ks[7], (4 * HIDDEN, HIDDEN))
    bih2 = w(ks[8], (4 * HIDDEN,))
    bhh2 = w(ks[9], (4 * HIDDEN,))
    fc1_w = w(ks[10], (HIDDEN, HIDDEN * T))
    fc1_b = w(ks[11], (HIDDEN,))
    fc2_w = w(ks[12], (NUM_CLASSES, HIDDEN))
    fc2_b = w(ks[13], (NUM_CLASSES,))
    return (conv_w, conv_b, wih1, whh1, bih1, bhh1,
            wih2, whh2, bih2, bhh2, fc1_w, fc1_b, fc2_w, fc2_b)


def _gate_cols(w_rows, col_off):
    """(4*H, IN) gate-stacked PyTorch weight -> (IN, 512); gate g at cols
    [g*128 + col_off, g*128 + col_off + 64)."""
    in_dim = w_rows.shape[1]
    out = jnp.zeros((in_dim, G), jnp.float32)
    for gi in range(4):
        out = out.at[:, gi * HP + col_off: gi * HP + col_off + HIDDEN].set(
            w_rows[gi * HIDDEN:(gi + 1) * HIDDEN, :].T)
    return out


def _gate_bias(b, col_off):
    out = jnp.zeros((1, G), jnp.float32)
    for gi in range(4):
        out = out.at[0, gi * HP + col_off: gi * HP + col_off + HIDDEN].set(
            b[gi * HIDDEN:(gi + 1) * HIDDEN])
    return out


def pack_params(raw, use_bf16=True):
    (conv_w, conv_b, wih1, whh1, bih1, bhh1,
     wih2, whh2, bih2, bhh2, fc1_w, fc1_b, fc2_w, fc2_b) = raw
    cd = jnp.bfloat16 if use_bf16 else jnp.float32

    # Conv1d(k=3) weight unrolled for the fused conv+pool matmul; columns are
    # [parity | t | channel] (even block at lanes [0:PW), odd block at [PW:2*PW)).
    wcp = jnp.zeros((INPUT_DIM, 2 * PW), jnp.float32)
    for parity in range(2):
        for t in range(T):
            p = 2 * t + parity
            for k in range(3):
                wcp = wcp.at[p + k,
                             parity * PW + t * CONV_OUT:
                             parity * PW + (t + 1) * CONV_OUT].set(conv_w[:, 0, k])

    # Layer-packed gate columns: [g*128, g*128+64)=layer1, [g*128+64, (g+1)*128)=layer2.
    wih1_p = _gate_cols(wih1, 0)            # (32, 512)  seq -> layer-1 gates
    whh1_p = _gate_cols(whh1, 0)            # (64, 512)  h1  -> layer-1 gates
    wih2_p = _gate_cols(wih2, HIDDEN)       # (64, 512)  h1  -> layer-2 gates
    whh2_p = _gate_cols(whh2, HIDDEN)       # (64, 512)  h2  -> layer-2 gates

    # Combined recurrent weight for the skewed, lane-packed recurrence (no zero rows).
    wcomb = jnp.zeros((HP, G), jnp.float32)
    wcomb = wcomb.at[:HIDDEN, :].set(whh1_p + wih2_p)   # disjoint column halves
    wcomb = wcomb.at[HIDDEN:, :].set(whh2_p)

    # Block-diagonal batched LSTM1 input projection for all T steps
    # (plus an all-zero block so the epilogue step s=T reads a bias-only gin slice).
    wbig = jnp.zeros((PW, (T + 1) * G), jnp.float32)
    for t in range(T):
        wbig = wbig.at[t * CONV_OUT:(t + 1) * CONV_OUT, t * G:(t + 1) * G].set(wih1_p)

    # Per-step bias slab.  Conv bias is folded through the LSTM1 input projection
    # (max(a,b)+bias == max(a+bias,b+bias), and the pooled seq only feeds LSTM1).
    b1 = _gate_bias(bih1 + bhh1, 0) + conv_b[None, :] @ wih1_p    # layer-1 cols only
    b2 = _gate_bias(bih2 + bhh2, HIDDEN)                          # layer-2 cols only
    bbig = jnp.zeros((1, (T + 1) * G), jnp.float32)
    bbig = bbig.at[0, 0:G].set(b1[0])                             # step 0: layer 2 stays 0
    for s in range(1, T + 1):
        bbig = bbig.at[0, s * G:(s + 1) * G].set((b1 + b2)[0])

    # fc1 over the packed h history (lanes [64:128) of each step hold h2[t]); layer-1 rows 0.
    wfc1 = jnp.zeros((T * HP, HP), jnp.float32)
    for t in range(T):
        wfc1 = wfc1.at[t * HP + HIDDEN:(t + 1) * HP, :HIDDEN].set(
            fc1_w[:, t * HIDDEN:(t + 1) * HIDDEN].T)
    bfc1 = jnp.zeros((1, HP), jnp.float32).at[0, :HIDDEN].set(fc1_b)

    wfc2 = jnp.zeros((HP, NC_P), jnp.float32).at[:HIDDEN, :NUM_CLASSES].set(fc2_w.T)
    bfc2 = jnp.full((1, NC_P), -1e30, jnp.float32).at[0, :NUM_CLASSES].set(fc2_b)

    # Invariants the kernel relies on: layer-2 gate preactivations at step 0 must be
    # exactly zero (so h2/c2 start from 0), and the pooled seq never feeds layer-2 gates.
    for gi in range(4):
        lo, hi = gi * HP + HIDDEN, (gi + 1) * HP
        assert bool(jnp.all(bbig[0, lo:hi] == 0.0)), "step-0 layer-2 bias must be zero"
        for s in range(T + 1):
            assert bool(jnp.all(wbig[:, s * G + lo:s * G + hi] == 0.0)), \
                "seq must not feed layer-2 gates"

    return dict(
        wcp=wcp.astype(cd),       # (16, 512)
        wbig=wbig.astype(cd),     # (256, 4096)
        bbig=bbig,                # (1, 4096)  f32
        wcomb=wcomb.astype(cd),   # (128, 512)
        wfc1=wfc1.astype(cd),     # (896, 128)
        bfc1=bfc1,                # (1, 128)   f32
        wfc2=wfc2.astype(cd),     # (128, 128)
        bfc2=bfc2,                # (1, 128)   f32, pads -1e30 (must stay f32)
    )


# Pure-JAX reference mirroring PyTorch forward semantics (validation only).
def reference_forward(x, raw):
    (conv_w, conv_b, wih1, whh1, bih1, bhh1,
     wih2, whh2, bih2, bhh2, fc1_w, fc1_b, fc2_w, fc2_b) = raw
    bsz, L, _ = x.shape
    xc = jnp.transpose(x, (0, 2, 1))                                      # (B, 1, L)
    Lc = L - 2
    cols = jnp.stack([xc[:, 0, k:k + Lc] for k in range(3)], axis=-1)     # (B, Lc, 3)
    conv = jnp.einsum("blk,ok->bol", cols, conv_w[:, 0, :]) + conv_b[None, :, None]
    Tp = Lc // 2
    pooled = jnp.max(conv[:, :, :2 * Tp].reshape(bsz, CONV_OUT, Tp, 2), axis=-1)
    seq = jnp.transpose(pooled, (0, 2, 1))                                # (B, T, 32)

    def lstm(s, wih, whh, bih, bhh):
        H = whh.shape[1]
        h = jnp.zeros((bsz, H)); c = jnp.zeros((bsz, H)); outs = []
        for t in range(s.shape[1]):
            g = s[:, t] @ wih.T + h @ whh.T + bih + bhh
            i = jax.nn.sigmoid(g[:, :H]); f = jax.nn.sigmoid(g[:, H:2 * H])
            gg = jnp.tanh(g[:, 2 * H:3 * H]); o = jax.nn.sigmoid(g[:, 3 * H:])
            c = f * c + i * gg
            h = o * jnp.tanh(c)
            outs.append(h)
        return jnp.stack(outs, axis=1)

    s1 = lstm(seq, wih1, whh1, bih1, bhh1)
    s2 = lstm(s1, wih2, whh2, bih2, bhh2)
    flat = s2.reshape(bsz, -1)
    z = jnp.maximum(flat @ fc1_w.T + fc1_b, 0.0)
    logits = z @ fc2_w.T + fc2_b
    return jax.nn.softmax(logits, axis=1)


if __name__ == "__main__":
    key = jax.random.PRNGKey(0)
    kx, kp = jax.random.split(key)
    x = jax.random.normal(kx, (2, INPUT_DIM, 1), jnp.float32)   # (B, input_dim, 1)
    raw = init_raw_params(kp)
    ref = reference_forward(x, raw)

    # f32 matmul operands: strict check against the pure-JAX reference.
    out_f32 = jax.block_until_ready(convlstm_forward(x, pack_params(raw, use_bf16=False)))
    assert out_f32.shape == (2, NUM_CLASSES)
    assert bool(jnp.all(jnp.isfinite(out_f32)))
    assert bool(jnp.allclose(out_f32, ref, atol=1e-4, rtol=1e-4)), (out_f32, ref)

    # bf16 matmul operands (f32 accumulation): fast path, looser tolerance.
    out_bf16 = jax.block_until_ready(convlstm_forward(x, pack_params(raw, use_bf16=True)))
    assert bool(jnp.all(jnp.isfinite(out_bf16)))
    assert bool(jnp.allclose(out_bf16, ref, atol=3e-2, rtol=3e-2)), (out_bf16, ref)

    print("KERNEL_OK")
</pallas_src>

<mosaic_0001>
module attributes {stable_mosaic.version = 11 : i64} {
  func.func @convlstm_kernel(%arg0: i32, %arg1: memref<8x16xf32, #tpu.memory_space<vmem>>, %arg2: memref<16x512xf32, #tpu.memory_space<vmem>>, %arg3: memref<256x4096xf32, #tpu.memory_space<vmem>>, %arg4: memref<1x4096xf32, #tpu.memory_space<vmem>>, %arg5: memref<128x512xf32, #tpu.memory_space<vmem>>, %arg6: memref<896x128xf32, #tpu.memory_space<vmem>>, %arg7: memref<1x128xf32, #tpu.memory_space<vmem>>, %arg8: memref<128x128xf32, #tpu.memory_space<vmem>>, %arg9: memref<1x128xf32, #tpu.memory_space<vmem>>, %arg10: memref<8x128xf32, #tpu.memory_space<vmem>>, %arg11: memref<8x4096xf32, #tpu.memory_space<vmem>>, %arg12: memref<8x896xf32, #tpu.memory_space<vmem>>) attributes {dimension_semantics = [#tpu.dimension_semantics<parallel>], iteration_bounds = array<i64: 1>, scalar_prefetch = 0 : i64, scratch_operands = 2 : i64, tpu.core_type = #tpu.core_type<tc>, window_params = [{transform_indices = @transform_0, window_bounds = array<i64: 8, 16>}, {pipeline_mode = #tpu.pipeline_mode<synchronous>, transform_indices = @transform_1, window_bounds = array<i64: 16, 512>}, {pipeline_mode = #tpu.pipeline_mode<synchronous>, transform_indices = @transform_2, window_bounds = array<i64: 256, 4096>}, {pipeline_mode = #tpu.pipeline_mode<synchronous>, transform_indices = @transform_3, window_bounds = array<i64: 1, 4096>}, {pipeline_mode = #tpu.pipeline_mode<synchronous>, transform_indices = @transform_4, window_bounds = array<i64: 128, 512>}, {pipeline_mode = #tpu.pipeline_mode<synchronous>, transform_indices = @transform_5, window_bounds = array<i64: 896, 128>}, {pipeline_mode = #tpu.pipeline_mode<synchronous>, transform_indices = @transform_6, window_bounds = array<i64: 1, 128>}, {pipeline_mode = #tpu.pipeline_mode<synchronous>, transform_indices = @transform_7, window_bounds = array<i64: 128, 128>}, {pipeline_mode = #tpu.pipeline_mode<synchronous>, transform_indices = @transform_8, window_bounds = array<i64: 1, 128>}, {transform_indices = @transform_9, window_bounds = array<i64: 8, 128>}]} {
    %c0 = arith.constant 0 : index
    %c0_0 = arith.constant 0 : index
    %0 = vector.load %arg1[%c0, %c0_0] : memref<8x16xf32, #tpu.memory_space<vmem>>, vector<8x16xf32>
    %c0_1 = arith.constant 0 : index
    %c0_2 = arith.constant 0 : index
    %1 = vector.load %arg2[%c0_1, %c0_2] : memref<16x512xf32, #tpu.memory_space<vmem>>, vector<16x512xf32>
    %cst = arith.constant dense<0.000000e+00> : vector<8x512xf32>
    %2 = tpu.matmul %0, %1, %cst {dimension_numbers = #tpu.dot_dimension_numbers<[1], [0], [0], [1], [0, 0, 1, 1], [], []>} : vector<8x16xf32>, vector<16x512xf32>, vector<8x512xf32> -> vector<8x512xf32>
    %3 = vector.extract_strided_slice %2 {offsets = [0, 0], sizes = [8, 256], strides = [1, 1]} : vector<8x512xf32> to vector<8x256xf32>
    %4 = vector.extract_strided_slice %2 {offsets = [0, 256], sizes = [8, 256], strides = [1, 1]} : vector<8x512xf32> to vector<8x256xf32>
    %5 = arith.maximumf %3, %4 : vector<8x256xf32>
    %c0_3 = arith.constant 0 : index
    %c0_4 = arith.constant 0 : index
    %6 = vector.load %arg3[%c0_3, %c0_4] : memref<256x4096xf32, #tpu.memory_space<vmem>>, vector<256x4096xf32>
    %cst_5 = arith.constant dense<0.000000e+00> : vector<8x4096xf32>
    %7 = tpu.matmul %5, %6, %cst_5 {dimension_numbers = #tpu.dot_dimension_numbers<[1], [0], [0], [1], [0, 0, 1, 1], [], []>} : vector<8x256xf32>, vector<256x4096xf32>, vector<8x4096xf32> -> vector<8x4096xf32>
    %c0_6 = arith.constant 0 : index
    %c0_7 = arith.constant 0 : index
    %8 = vector.load %arg4[%c0_6, %c0_7] : memref<1x4096xf32, #tpu.memory_space<vmem>>, vector<1x4096xf32>
    %9 = vector.broadcast %8 : vector<1x4096xf32> to vector<8x4096xf32>
    %10 = arith.addf %7, %9 : vector<8x4096xf32>
    %c0_8 = arith.constant 0 : index
    %c0_9 = arith.constant 0 : index
    %11 = vector.load %arg11[%c0_8, %c0_9] : memref<8x4096xf32, #tpu.memory_space<vmem>>, vector<8x4096xf32>
    tpu.vector_store %arg11[%c0_8, %c0_9], %10 {strides = array<i32>} : memref<8x4096xf32, #tpu.memory_space<vmem>>, vector<8x4096xf32>,
    %c0_10 = arith.constant 0 : index
    %c0_11 = arith.constant 0 : index
    %12 = vector.load %arg5[%c0_10, %c0_11] : memref<128x512xf32, #tpu.memory_space<vmem>>, vector<128x512xf32>
    %c0_12 = arith.constant 0 : index
    %c0_13 = arith.constant 0 : index
    %13 = vector.load %arg11[%c0_12, %c0_13] : memref<8x4096xf32, #tpu.memory_space<vmem>>, vector<8x512xf32>
    %14 = vector.extract_strided_slice %13 {offsets = [0, 0], sizes = [8, 128], strides = [1, 1]} : vector<8x512xf32> to vector<8x128xf32>
    %cst_14 = arith.constant 5.000000e-01 : f32
    %15 = vector.broadcast %cst_14 : f32 to vector<8x128xf32>
    %16 = arith.mulf %15, %14 : vector<8x128xf32>
    %17 = math.tanh %16 : vector<8x128xf32>
    %cst_15 = arith.constant 5.000000e-01 : f32
    %18 = vector.broadcast %cst_15 : f32 to vector<8x128xf32>
    %19 = arith.mulf %18, %17 : vector<8x128xf32>
    %cst_16 = arith.constant 5.000000e-01 : f32
    %20 = vector.broadcast %cst_16 : f32 to vector<8x128xf32>
    %21 = arith.addf %19, %20 : vector<8x128xf32>
    %22 = vector.extract_strided_slice %13 {offsets = [0, 256], sizes = [8, 128], strides = [1, 1]} : vector<8x512xf32> to vector<8x128xf32>
    %23 = math.tanh %22 : vector<8x128xf32>
    %24 = vector.extract_strided_slice %13 {offsets = [0, 384], sizes = [8, 128], strides = [1, 1]} : vector<8x512xf32> to vector<8x128xf32>
    %cst_17 = arith.constant 5.000000e-01 : f32
    %25 = vector.broadcast %cst_17 : f32 to vector<8x128xf32>
    %26 = arith.mulf %25, %24 : vector<8x128xf32>
    %27 = math.tanh %26 : vector<8x128xf32>
    %cst_18 = arith.constant 5.000000e-01 : f32
    %28 = vector.broadcast %cst_18 : f32 to vector<8x128xf32>
    %29 = arith.mulf %28, %27 : vector<8x128xf32>
    %cst_19 = arith.constant 5.000000e-01 : f32
    %30 = vector.broadcast %cst_19 : f32 to vector<8x128xf32>
    %31 = arith.addf %29, %30 : vector<8x128xf32>
    %32 = arith.mulf %21, %23 : vector<8x128xf32>
    %33 = math.tanh %32 : vector<8x128xf32>
    %34 = arith.mulf %31, %33 : vector<8x128xf32>
    %c0_20 = arith.constant 0 : index
    %c512 = arith.constant 512 : index
    %35 = vector.load %arg11[%c0_20, %c512] : memref<8x4096xf32, #tpu.memory_space<vmem>>, vector<8x512xf32>
    %cst_21 = arith.constant dense<0.000000e+00> : vector<8x512xf32>
    %36 = tpu.matmul %34, %12, %cst_21 {dimension_numbers = #tpu.dot_dimension_numbers<[1], [0], [0], [1], [0, 0, 1, 1], [], []>} : vector<8x128xf32>, vector<128x512xf32>, vector<8x512xf32> -> vector<8x512xf32>
    %37 = arith.addf %35, %36 : vector<8x512xf32>
    %38 = vector.extract_strided_slice %37 {offsets = [0, 0], sizes = [8, 128], strides = [1, 1]} : vector<8x512xf32> to vector<8x128xf32>
    %cst_22 = arith.constant 5.000000e-01 : f32
    %39 = vector.broadcast %cst_22 : f32 to vector<8x128xf32>
    %40 = arith.mulf %39, %38 : vector<8x128xf32>
    %41 = math.tanh %40 : vector<8x128xf32>
    %cst_23 = arith.constant 5.000000e-01 : f32
    %42 = vector.broadcast %cst_23 : f32 to vector<8x128xf32>
    %43 = arith.mulf %42, %41 : vector<8x128xf32>
    %cst_24 = arith.constant 5.000000e-01 : f32
    %44 = vector.broadcast %cst_24 : f32 to vector<8x128xf32>
    %45 = arith.addf %43, %44 : vector<8x128xf32>
    %46 = vector.extract_strided_slice %37 {offsets = [0, 128], sizes = [8, 128], strides = [1, 1]} : vector<8x512xf32> to vector<8x128xf32>
    %cst_25 = arith.constant 5.000000e-01 : f32
    %47 = vector.broadcast %cst_25 : f32 to vector<8x128xf32>
    %48 = arith.mulf %47, %46 : vector<8x128xf32>
    %49 = math.tanh %48 : vector<8x128xf32>
    %cst_26 = arith.constant 5.000000e-01 : f32
    %50 = vector.broadcast %cst_26 : f32 to vector<8x128xf32>
    %51 = arith.mulf %50, %49 : vector<8x128xf32>
    %cst_27 = arith.constant 5.000000e-01 : f32
    %52 = vector.broadcast %cst_27 : f32 to vector<8x128xf32>
    %53 = arith.addf %51, %52 : vector<8x128xf32>
    %54 = vector.extract_strided_slice %37 {offsets = [0, 256], sizes = [8, 128], strides = [1, 1]} : vector<8x512xf32> to vector<8x128xf32>
    %55 = math.tanh %54 : vector<8x128xf32>
    %56 = vector.extract_strided_slice %37 {offsets = [0, 384], sizes = [8, 128], strides = [1, 1]} : vector<8x512xf32> to vector<8x128xf32>
    %cst_28 = arith.constant 5.000000e-01 : f32
    %57 = vector.broadcast %cst_28 : f32 to vector<8x128xf32>
    %58 = arith.mulf %57, %56 : vector<8x128xf32>
    %59 = math.tanh %58 : vector<8x128xf32>
    %cst_29 = arith.constant 5.000000e-01 : f32
    %60 = vector.broadcast %cst_29 : f32 to vector<8x128xf32>
    %61 = arith.mulf %60, %59 : vector<8x128xf32>
    %cst_30 = arith.constant 5.000000e-01 : f32
    %62 = vector.broadcast %cst_30 : f32 to vector<8x128xf32>
    %63 = arith.addf %61, %62 : vector<8x128xf32>
    %64 = arith.mulf %53, %32 : vector<8x128xf32>
    %65 = arith.mulf %45, %55 : vector<8x128xf32>
    %66 = arith.addf %64, %65 : vector<8x128xf32>
    %67 = math.tanh %66 : vector<8x128xf32>
    %68 = arith.mulf %63, %67 : vector<8x128xf32>
    %c0_31 = arith.constant 0 : index
    %c0_32 = arith.constant 0 : index
    %69 = vector.load %arg12[%c0_31, %c0_32] : memref<8x896xf32, #tpu.memory_space<vmem>>, vector<8x128xf32>
    tpu.vector_store %arg12[%c0_31, %c0_32], %68 {strides = array<i32>} : memref<8x896xf32, #tpu.memory_space<vmem>>, vector<8x128xf32>,
    %c0_33 = arith.constant 0 : index
    %c1024 = arith.constant 1024 : index
    %70 = vector.load %arg11[%c0_33, %c1024] : memref<8x4096xf32, #tpu.memory_space<vmem>>, vector<8x512xf32>
    %cst_34 = arith.constant dense<0.000000e+00> : vector<8x512xf32>
    %71 = tpu.matmul %68, %12, %cst_34 {dimension_numbers = #tpu.dot_dimension_numbers<[1], [0], [0], [1], [0, 0, 1, 1], [], []>} : vector<8x128xf32>, vector<128x512xf32>, vector<8x512xf32> -> vector<8x512xf32>
    %72 = arith.addf %70, %71 : vector<8x512xf32>
    %73 = vector.extract_strided_slice %72 {offsets = [0, 0], sizes = [8, 128], strides = [1, 1]} : vector<8x512xf32> to vector<8x128xf32>
    %cst_35 = arith.constant 5.000000e-01 : f32
    %74 = vector.broadcast %cst_35 : f32 to vector<8x128xf32>
    %75 = arith.mulf %74, %73 : vector<8x128xf32>
    %76 = math.tanh %75 : vector<8x128xf32>
    %cst_36 = arith.constant 5.000000e-01 : f32
    %77 = vector.broadcast %cst_36 : f32 to vector<8x128xf32>
    %78 = arith.mulf %77, %76 : vector<8x128xf32>
    %cst_37 = arith.constant 5.000000e-01 : f32
    %79 = vector.broadcast %cst_37 : f32 to vector<8x128xf32>
    %80 = arith.addf %78, %79 : vector<8x128xf32>
    %81 = vector.extract_strided_slice %72 {offsets = [0, 128], sizes = [8, 128], strides = [1, 1]} : vector<8x512xf32> to vector<8x128xf32>
    %cst_38 = arith.constant 5.000000e-01 : f32
    %82 = vector.broadcast %cst_38 : f32 to vector<8x128xf32>
    %83 = arith.mulf %82, %81 : vector<8x128xf32>
    %84 = math.tanh %83 : vector<8x128xf32>
    %cst_39 = arith.constant 5.000000e-01 : f32
    %85 = vector.broadcast %cst_39 : f32 to vector<8x128xf32>
    %86 = arith.mulf %85, %84 : vector<8x128xf32>
    %cst_40 = arith.constant 5.000000e-01 : f32
    %87 = vector.broadcast %cst_40 : f32 to vector<8x128xf32>
    %88 = arith.addf %86, %87 : vector<8x128xf32>
    %89 = vector.extract_strided_slice %72 {offsets = [0, 256], sizes = [8, 128], strides = [1, 1]} : vector<8x512xf32> to vector<8x128xf32>
    %90 = math.tanh %89 : vector<8x128xf32>
    %91 = vector.extract_strided_slice %72 {offsets = [0, 384], sizes = [8, 128], strides = [1, 1]} : vector<8x512xf32> to vector<8x128xf32>
    %cst_41 = arith.constant 5.000000e-01 : f32
    %92 = vector.broadcast %cst_41 : f32 to vector<8x128xf32>
    %93 = arith.mulf %92, %91 : vector<8x128xf32>
    %94 = math.tanh %93 : vector<8x128xf32>
    %cst_42 = arith.constant 5.000000e-01 : f32
    %95 = vector.broadcast %cst_42 : f32 to vector<8x128xf32>
    %96 = arith.mulf %95, %94 : vector<8x128xf32>
    %cst_43 = arith.constant 5.000000e-01 : f32
    %97 = vector.broadcast %cst_43 : f32 to vector<8x128xf32>
    %98 = arith.addf %96, %97 : vector<8x128xf32>
    %99 = arith.mulf %88, %66 : vector<8x128xf32>
    %100 = arith.mulf %80, %90 : vector<8x128xf32>
    %101 = arith.addf %99, %100 : vector<8x128xf32>
    %102 = math.tanh %101 : vector<8x128xf32>
    %103 = arith.mulf %98, %102 : vector<8x128xf32>
    %c0_44 = arith.constant 0 : index
    %c128 = arith.constant 128 : index
    %104 = vector.load %arg12[%c0_44, %c128] : memref<8x896xf32, #tpu.memory_space<vmem>>, vector<8x128xf32>
    tpu.vector_store %arg12[%c0_44, %c128], %103 {strides = array<i32>} : memref<8x896xf32, #tpu.memory_space<vmem>>, vector<8x128xf32>,
    %c0_45 = arith.constant 0 : index
    %c1536 = arith.constant 1536 : index
    %105 = vector.load %arg11[%c0_45, %c1536] : memref<8x4096xf32, #tpu.memory_space<vmem>>, vector<8x512xf32>
    %cst_46 = arith.constant dense<0.000000e+00> : vector<8x512xf32>
    %106 = tpu.matmul %103, %12, %cst_46 {dimension_numbers = #tpu.dot_dimension_numbers<[1], [0], [0], [1], [0, 0, 1, 1], [], []>} : vector<8x128xf32>, vector<128x512xf32>, vector<8x512xf32> -> vector<8x512xf32>
    %107 = arith.addf %105, %106 : vector<8x512xf32>
    %108 = vector.extract_strided_slice %107 {offsets = [0, 0], sizes = [8, 128], strides = [1, 1]} : vector<8x512xf32> to vector<8x128xf32>
    %cst_47 = arith.constant 5.000000e-01 : f32
    %109 = vector.broadcast %cst_47 : f32 to vector<8x128xf32>
    %110 = arith.mulf %109, %108 : vector<8x128xf32>
    %111 = math.tanh %110 : vector<8x128xf32>
    %cst_48 = arith.constant 5.000000e-01 : f32
    %112 = vector.broadcast %cst_48 : f32 to vector<8x128xf32>
    %113 = arith.mulf %112, %111 : vector<8x128xf32>
    %cst_49 = arith.constant 5.000000e-01 : f32
    %114 = vector.broadcast %cst_49 : f32 to vector<8x128xf32>
    %115 = arith.addf %113, %114 : vector<8x128xf32>
    %116 = vector.extract_strided_slice %107 {offsets = [0, 128], sizes = [8, 128], strides = [1, 1]} : vector<8x512xf32> to vector<8x128xf32>
    %cst_50 = arith.constant 5.000000e-01 : f32
    %117 = vector.broadcast %cst_50 : f32 to vector<8x128xf32>
    %118 = arith.mulf %117, %116 : vector<8x128xf32>
    %119 = math.tanh %118 : vector<8x128xf32>
    %cst_51 = arith.constant 5.000000e-01 : f32
    %120 = vector.broadcast %cst_51 : f32 to vector<8x128xf32>
    %121 = arith.mulf %120, %119 : vector<8x128xf32>
    %cst_52 = arith.constant 5.000000e-01 : f32
    %122 = vector.broadcast %cst_52 : f32 to vector<8x128xf32>
    %123 = arith.addf %121, %122 : vector<8x128xf32>
    %124 = vector.extract_strided_slice %107 {offsets = [0, 256], sizes = [8, 128], strides = [1, 1]} : vector<8x512xf32> to vector<8x128xf32>
    %125 = math.tanh %124 : vector<8x128xf32>
    %126 = vector.extract_strided_slice %107 {offsets = [0, 384], sizes = [8, 128], strides = [1, 1]} : vector<8x512xf32> to vector<8x128xf32>
    %cst_53 = arith.constant 5.000000e-01 : f32
    %127 = vector.broadcast %cst_53 : f32 to vector<8x128xf32>
    %128 = arith.mulf %127, %126 : vector<8x128xf32>
    %129 = math.tanh %128 : vector<8x128xf32>
    %cst_54 = arith.constant 5.000000e-01 : f32
    %130 = vector.broadcast %cst_54 : f32 to vector<8x128xf32>
    %131 = arith.mulf %130, %129 : vector<8x128xf32>
    %cst_55 = arith.constant 5.000000e-01 : f32
    %132 = vector.broadcast %cst_55 : f32 to vector<8x128xf32>
    %133 = arith.addf %131, %132 : vector<8x128xf32>
    %134 = arith.mulf %123, %101 : vector<8x128xf32>
    %135 = arith.mulf %115, %125 : vector<8x128xf32>
    %136 = arith.addf %134, %135 : vector<8x128xf32>
    %137 = math.tanh %136 : vector<8x128xf32>
    %138 = arith.mulf %133, %137 : vector<8x128xf32>
    %c0_56 = arith.constant 0 : index
    %c256 = arith.constant 256 : index
    %139 = vector.load %arg12[%c0_56, %c256] : memref<8x896xf32, #tpu.memory_space<vmem>>, vector<8x128xf32>
    tpu.vector_store %arg12[%c0_56, %c256], %138 {strides = array<i32>} : memref<8x896xf32, #tpu.memory_space<vmem>>, vector<8x128xf32>,
    %c0_57 = arith.constant 0 : index
    %c2048 = arith.constant 2048 : index
    %140 = vector.load %arg11[%c0_57, %c2048] : memref<8x4096xf32, #tpu.memory_space<vmem>>, vector<8x512xf32>
    %cst_58 = arith.constant dense<0.000000e+00> : vector<8x512xf32>
    %141 = tpu.matmul %138, %12, %cst_58 {dimension_numbers = #tpu.dot_dimension_numbers<[1], [0], [0], [1], [0, 0, 1, 1], [], []>} : vector<8x128xf32>, vector<128x512xf32>, vector<8x512xf32> -> vector<8x512xf32>
    %142 = arith.addf %140, %141 : vector<8x512xf32>
    %143 = vector.extract_strided_slice %142 {offsets = [0, 0], sizes = [8, 128], strides = [1, 1]} : vector<8x512xf32> to vector<8x128xf32>
    %cst_59 = arith.constant 5.000000e-01 : f32
    %144 = vector.broadcast %cst_59 : f32 to vector<8x128xf32>
    %145 = arith.mulf %144, %143 : vector<8x128xf32>
    %146 = math.tanh %145 : vector<8x128xf32>
    %cst_60 = arith.constant 5.000000e-01 : f32
    %147 = vector.broadcast %cst_60 : f32 to vector<8x128xf32>
    %148 = arith.mulf %147, %146 : vector<8x128xf32>
    %cst_61 = arith.constant 5.000000e-01 : f32
    %149 = vector.broadcast %cst_61 : f32 to vector<8x128xf32>
    %150 = arith.addf %148, %149 : vector<8x128xf32>
    %151 = vector.extract_strided_slice %142 {offsets = [0, 128], sizes = [8, 128], strides = [1, 1]} : vector<8x512xf32> to vector<8x128xf32>
    %cst_62 = arith.constant 5.000000e-01 : f32
    %152 = vector.broadcast %cst_62 : f32 to vector<8x128xf32>
    %153 = arith.mulf %152, %151 : vector<8x128xf32>
    %154 = math.tanh %153 : vector<8x128xf32>
    %cst_63 = arith.constant 5.000000e-01 : f32
    %155 = vector.broadcast %cst_63 : f32 to vector<8x128xf32>
    %156 = arith.mulf %155, %154 : vector<8x128xf32>
    %cst_64 = arith.constant 5.000000e-01 : f32
    %157 = vector.broadcast %cst_64 : f32 to vector<8x128xf32>
    %158 = arith.addf %156, %157 : vector<8x128xf32>
    %159 = vector.extract_strided_slice %142 {offsets = [0, 256], sizes = [8, 128], strides = [1, 1]} : vector<8x512xf32> to vector<8x128xf32>
    %160 = math.tanh %159 : vector<8x128xf32>
    %161 = vector.extract_strided_slice %142 {offsets = [0, 384], sizes = [8, 128], strides = [1, 1]} : vector<8x512xf32> to vector<8x128xf32>
    %cst_65 = arith.constant 5.000000e-01 : f32
    %162 = vector.broadcast %cst_65 : f32 to vector<8x128xf32>
    %163 = arith.mulf %162, %161 : vector<8x128xf32>
    %164 = math.tanh %163 : vector<8x128xf32>
    %cst_66 = arith.constant 5.000000e-01 : f32
    %165 = vector.broadcast %cst_66 : f32 to vector<8x128xf32>
    %166 = arith.mulf %165, %164 : vector<8x128xf32>
    %cst_67 = arith.constant 5.000000e-01 : f32
    %167 = vector.broadcast %cst_67 : f32 to vector<8x128xf32>
    %168 = arith.addf %166, %167 : vector<8x128xf32>
    %169 = arith.mulf %158, %136 : vector<8x128xf32>
    %170 = arith.mulf %150, %160 : vector<8x128xf32>
    %171 = arith.addf %169, %170 : vector<8x128xf32>
    %172 = math.tanh %171 : vector<8x128xf32>
    %173 = arith.mulf %168, %172 : vector<8x128xf32>
    %c0_68 = arith.constant 0 : index
    %c384 = arith.constant 384 : index
    %174 = vector.load %arg12[%c0_68, %c384] : memref<8x896xf32, #tpu.memory_space<vmem>>, vector<8x128xf32>
    tpu.vector_store %arg12[%c0_68, %c384], %173 {strides = array<i32>} : memref<8x896xf32, #tpu.memory_space<vmem>>, vector<8x128xf32>,
    %c0_69 = arith.constant 0 : index
    %c2560 = arith.constant 2560 : index
    %175 = vector.load %arg11[%c0_69, %c2560] : memref<8x4096xf32, #tpu.memory_space<vmem>>, vector<8x512xf32>
    %cst_70 = arith.constant dense<0.000000e+00> : vector<8x512xf32>
    %176 = tpu.matmul %173, %12, %cst_70 {dimension_numbers = #tpu.dot_dimension_numbers<[1], [0], [0], [1], [0, 0, 1, 1], [], []>} : vector<8x128xf32>, vector<128x512xf32>, vector<8x512xf32> -> vector<8x512xf32>
    %177 = arith.addf %175, %176 : vector<8x512xf32>
    %178 = vector.extract_strided_slice %177 {offsets = [0, 0], sizes = [8, 128], strides = [1, 1]} : vector<8x512xf32> to vector<8x128xf32>
    %cst_71 = arith.constant 5.000000e-01 : f32
    %179 = vector.broadcast %cst_71 : f32 to vector<8x128xf32>
    %180 = arith.mulf %179, %178 : vector<8x128xf32>
    %181 = math.tanh %180 : vector<8x128xf32>
    %cst_72 = arith.constant 5.000000e-01 : f32
    %182 = vector.broadcast %cst_72 : f32 to vector<8x128xf32>
    %183 = arith.mulf %182, %181 : vector<8x128xf32>
    %cst_73 = arith.constant 5.000000e-01 : f32
    %184 = vector.broadcast %cst_73 : f32 to vector<8x128xf32>
    %185 = arith.addf %183, %184 : vector<8x128xf32>
    %186 = vector.extract_strided_slice %177 {offsets = [0, 128], sizes = [8, 128], strides = [1, 1]} : vector<8x512xf32> to vector<8x128xf32>
    %cst_74 = arith.constant 5.000000e-01 : f32
    %187 = vector.broadcast %cst_74 : f32 to vector<8x128xf32>
    %188 = arith.mulf %187, %186 : vector<8x128xf32>
    %189 = math.tanh %188 : vector<8x128xf32>
    %cst_75 = arith.constant 5.000000e-01 : f32
    %190 = vector.broadcast %cst_75 : f32 to vector<8x128xf32>
    %191 = arith.mulf %190, %189 : vector<8x128xf32>
    %cst_76 = arith.constant 5.000000e-01 : f32
    %192 = vector.broadcast %cst_76 : f32 to vector<8x128xf32>
    %193 = arith.addf %191, %192 : vector<8x128xf32>
    %194 = vector.extract_strided_slice %177 {offsets = [0, 256], sizes = [8, 128], strides = [1, 1]} : vector<8x512xf32> to vector<8x128xf32>
    %195 = math.tanh %194 : vector<8x128xf32>
    %196 = vector.extract_strided_slice %177 {offsets = [0, 384], sizes = [8, 128], strides = [1, 1]} : vector<8x512xf32> to vector<8x128xf32>
    %cst_77 = arith.constant 5.000000e-01 : f32
    %197 = vector.broadcast %cst_77 : f32 to vector<8x128xf32>
    %198 = arith.mulf %197, %196 : vector<8x128xf32>
    %199 = math.tanh %198 : vector<8x128xf32>
    %cst_78 = arith.constant 5.000000e-01 : f32
    %200 = vector.broadcast %cst_78 : f32 to vector<8x128xf32>
    %201 = arith.mulf %200, %199 : vector<8x128xf32>
    %cst_79 = arith.constant 5.000000e-01 : f32
    %202 = vector.broadcast %cst_79 : f32 to vector<8x128xf32>
    %203 = arith.addf %201, %202 : vector<8x128xf32>
    %204 = arith.mulf %193, %171 : vector<8x128xf32>
    %205 = arith.mulf %185, %195 : vector<8x128xf32>
    %206 = arith.addf %204, %205 : vector<8x128xf32>
    %207 = math.tanh %206 : vector<8x128xf32>
    %208 = arith.mulf %203, %207 : vector<8x128xf32>
    %c0_80 = arith.constant 0 : index
    %c512_81 = arith.constant 512 : index
    %209 = vector.load %arg12[%c0_80, %c512_81] : memref<8x896xf32, #tpu.memory_space<vmem>>, vector<8x128xf32>
    tpu.vector_store %arg12[%c0_80, %c512_81], %208 {strides = array<i32>} : memref<8x896xf32, #tpu.memory_space<vmem>>, vector<8x128xf32>,
    %c0_82 = arith.constant 0 : index
    %c3072 = arith.constant 3072 : index
    %210 = vector.load %arg11[%c0_82, %c3072] : memref<8x4096xf32, #tpu.memory_space<vmem>>, vector<8x512xf32>
    %cst_83 = arith.constant dense<0.000000e+00> : vector<8x512xf32>
    %211 = tpu.matmul %208, %12, %cst_83 {dimension_numbers = #tpu.dot_dimension_numbers<[1], [0], [0], [1], [0, 0, 1, 1], [], []>} : vector<8x128xf32>, vector<128x512xf32>, vector<8x512xf32> -> vector<8x512xf32>
    %212 = arith.addf %210, %211 : vector<8x512xf32>
    %213 = vector.extract_strided_slice %212 {offsets = [0, 0], sizes = [8, 128], strides = [1, 1]} : vector<8x512xf32> to vector<8x128xf32>
    %cst_84 = arith.constant 5.000000e-01 : f32
    %214 = vector.broadcast %cst_84 : f32 to vector<8x128xf32>
    %215 = arith.mulf %214, %213 : vector<8x128xf32>
    %216 = math.tanh %215 : vector<8x128xf32>
    %cst_85 = arith.constant 5.000000e-01 : f32
    %217 = vector.broadcast %cst_85 : f32 to vector<8x128xf32>
    %218 = arith.mulf %217, %216 : vector<8x128xf32>
    %cst_86 = arith.constant 5.000000e-01 : f32
    %219 = vector.broadcast %cst_86 : f32 to vector<8x128xf32>
    %220 = arith.addf %218, %219 : vector<8x128xf32>
    %221 = vector.extract_strided_slice %212 {offsets = [0, 128], sizes = [8, 128], strides = [1, 1]} : vector<8x512xf32> to vector<8x128xf32>
    %cst_87 = arith.constant 5.000000e-01 : f32
    %222 = vector.broadcast %cst_87 : f32 to vector<8x128xf32>
    %223 = arith.mulf %222, %221 : vector<8x128xf32>
    %224 = math.tanh %223 : vector<8x128xf32>
    %cst_88 = arith.constant 5.000000e-01 : f32
    %225 = vector.broadcast %cst_88 : f32 to vector<8x128xf32>
    %226 = arith.mulf %225, %224 : vector<8x128xf32>
    %cst_89 = arith.constant 5.000000e-01 : f32
    %227 = vector.broadcast %cst_89 : f32 to vector<8x128xf32>
    %228 = arith.addf %226, %227 : vector<8x128xf32>
    %229 = vector.extract_strided_slice %212 {offsets = [0, 256], sizes = [8, 128], strides = [1, 1]} : vector<8x512xf32> to vector<8x128xf32>
    %230 = math.tanh %229 : vector<8x128xf32>
    %231 = vector.extract_strided_slice %212 {offsets = [0, 384], sizes = [8, 128], strides = [1, 1]} : vector<8x512xf32> to vector<8x128xf32>
    %cst_90 = arith.constant 5.000000e-01 : f32
    %232 = vector.broadcast %cst_90 : f32 to vector<8x128xf32>
    %233 = arith.mulf %232, %231 : vector<8x128xf32>
    %234 = math.tanh %233 : vector<8x128xf32>
    %cst_91 = arith.constant 5.000000e-01 : f32
    %235 = vector.broadcast %cst_91 : f32 to vector<8x128xf32>
    %236 = arith.mulf %235, %234 : vector<8x128xf32>
    %cst_92 = arith.constant 5.000000e-01 : f32
    %237 = vector.broadcast %cst_92 : f32 to vector<8x128xf32>
    %238 = arith.addf %236, %237 : vector<8x128xf32>
    %239 = arith.mulf %228, %206 : vector<8x128xf32>
    %240 = arith.mulf %220, %230 : vector<8x128xf32>
    %241 = arith.addf %239, %240 : vector<8x128xf32>
    %242 = math.tanh %241 : vector<8x128xf32>
    %243 = arith.mulf %238, %242 : vector<8x128xf32>
    %c0_93 = arith.constant 0 : index
    %c640 = arith.constant 640 : index
    %244 = vector.load %arg12[%c0_93, %c640] : memref<8x896xf32, #tpu.memory_space<vmem>>, vector<8x128xf32>
    tpu.vector_store %arg12[%c0_93, %c640], %243 {strides = array<i32>} : memref<8x896xf32, #tpu.memory_space<vmem>>, vector<8x128xf32>,
    %c0_94 = arith.constant 0 : index
    %c3584 = arith.constant 3584 : index
    %245 = vector.load %arg11[%c0_94, %c3584] : memref<8x4096xf32, #tpu.memory_space<vmem>>, vector<8x512xf32>
    %cst_95 = arith.constant dense<0.000000e+00> : vector<8x512xf32>
    %246 = tpu.matmul %243, %12, %cst_95 {dimension_numbers = #tpu.dot_dimension_numbers<[1], [0], [0], [1], [0, 0, 1, 1], [], []>} : vector<8x128xf32>, vector<128x512xf32>, vector<8x512xf32> -> vector<8x512xf32>
    %247 = arith.addf %245, %246 : vector<8x512xf32>
    %248 = vector.extract_strided_slice %247 {offsets = [0, 0], sizes = [8, 128], strides = [1, 1]} : vector<8x512xf32> to vector<8x128xf32>
    %cst_96 = arith.constant 5.000000e-01 : f32
    %249 = vector.broadcast %cst_96 : f32 to vector<8x128xf32>
    %250 = arith.mulf %249, %248 : vector<8x128xf32>
    %251 = math.tanh %250 : vector<8x128xf32>
    %cst_97 = arith.constant 5.000000e-01 : f32
    %252 = vector.broadcast %cst_97 : f32 to vector<8x128xf32>
    %253 = arith.mulf %252, %251 : vector<8x128xf32>
    %cst_98 = arith.constant 5.000000e-01 : f32
    %254 = vector.broadcast %cst_98 : f32 to vector<8x128xf32>
    %255 = arith.addf %253, %254 : vector<8x128xf32>
    %256 = vector.extract_strided_slice %247 {offsets = [0, 128], sizes = [8, 128], strides = [1, 1]} : vector<8x512xf32> to vector<8x128xf32>
    %cst_99 = arith.constant 5.000000e-01 : f32
    %257 = vector.broadcast %cst_99 : f32 to vector<8x128xf32>
    %258 = arith.mulf %257, %256 : vector<8x128xf32>
    %259 = math.tanh %258 : vector<8x128xf32>
    %cst_100 = arith.constant 5.000000e-01 : f32
    %260 = vector.broadcast %cst_100 : f32 to vector<8x128xf32>
    %261 = arith.mulf %260, %259 : vector<8x128xf32>
    %cst_101 = arith.constant 5.000000e-01 : f32
    %262 = vector.broadcast %cst_101 : f32 to vector<8x128xf32>
    %263 = arith.addf %261, %262 : vector<8x128xf32>
    %264 = vector.extract_strided_slice %247 {offsets = [0, 256], sizes = [8, 128], strides = [1, 1]} : vector<8x512xf32> to vector<8x128xf32>
    %265 = math.tanh %264 : vector<8x128xf32>
    %266 = vector.extract_strided_slice %247 {offsets = [0, 384], sizes = [8, 128], strides = [1, 1]} : vector<8x512xf32> to vector<8x128xf32>
    %cst_102 = arith.constant 5.000000e-01 : f32
    %267 = vector.broadcast %cst_102 : f32 to vector<8x128xf32>
    %268 = arith.mulf %267, %266 : vector<8x128xf32>
    %269 = math.tanh %268 : vector<8x128xf32>
    %cst_103 = arith.constant 5.000000e-01 : f32
    %270 = vector.broadcast %cst_103 : f32 to vector<8x128xf32>
    %271 = arith.mulf %270, %269 : vector<8x128xf32>
    %cst_104 = arith.constant 5.000000e-01 : f32
    %272 = vector.broadcast %cst_104 : f32 to vector<8x128xf32>
    %273 = arith.addf %271, %272 : vector<8x128xf32>
    %274 = arith.mulf %263, %241 : vector<8x128xf32>
    %275 = arith.mulf %255, %265 : vector<8x128xf32>
    %276 = arith.addf %274, %275 : vector<8x128xf32>
    %277 = math.tanh %276 : vector<8x128xf32>
    %278 = arith.mulf %273, %277 : vector<8x128xf32>
    %c0_105 = arith.constant 0 : index
    %c768 = arith.constant 768 : index
    %279 = vector.load %arg12[%c0_105, %c768] : memref<8x896xf32, #tpu.memory_space<vmem>>, vector<8x128xf32>
    tpu.vector_store %arg12[%c0_105, %c768], %278 {strides = array<i32>} : memref<8x896xf32, #tpu.memory_space<vmem>>, vector<8x128xf32>,
    %c0_106 = arith.constant 0 : index
    %c0_107 = arith.constant 0 : index
    %280 = vector.load %arg12[%c0_106, %c0_107] : memref<8x896xf32, #tpu.memory_space<vmem>>, vector<8x896xf32>
    %c0_108 = arith.constant 0 : index
    %c0_109 = arith.constant 0 : index
    %281 = vector.load %arg6[%c0_108, %c0_109] : memref<896x128xf32, #tpu.memory_space<vmem>>, vector<896x128xf32>
    %cst_110 = arith.constant dense<0.000000e+00> : vector<8x128xf32>
    %282 = tpu.matmul %280, %281, %cst_110 {dimension_numbers = #tpu.dot_dimension_numbers<[1], [0], [0], [1], [0, 0, 1, 1], [], []>} : vector<8x896xf32>, vector<896x128xf32>, vector<8x128xf32> -> vector<8x128xf32>
    %c0_111 = arith.constant 0 : index
    %c0_112 = arith.constant 0 : index
    %283 = vector.load %arg7[%c0_111, %c0_112] : memref<1x128xf32, #tpu.memory_space<vmem>>, vector<1x128xf32>
    %284 = vector.broadcast %283 : vector<1x128xf32> to vector<8x128xf32>
    %285 = arith.addf %282, %284 : vector<8x128xf32>
    %cst_113 = arith.constant 0.000000e+00 : f32
    %286 = vector.broadcast %cst_113 : f32 to vector<8x128xf32>
    %287 = arith.maximumf %285, %286 : vector<8x128xf32>
    %c0_114 = arith.constant 0 : index
    %c0_115 = arith.constant 0 : index
    %288 = vector.load %arg8[%c0_114, %c0_115] : memref<128x128xf32, #tpu.memory_space<vmem>>, vector<128x128xf32>
    %cst_116 = arith.constant dense<0.000000e+00> : vector<8x128xf32>
    %289 = tpu.matmul %287, %288, %cst_116 {dimension_numbers = #tpu.dot_dimension_numbers<[1], [0], [0], [1], [0, 0, 1, 1], [], []>} : vector<8x128xf32>, vector<128x128xf32>, vector<8x128xf32> -> vector<8x128xf32>
    %c0_117 = arith.constant 0 : index
    %c0_118 = arith.constant 0 : index
    %290 = vector.load %arg9[%c0_117, %c0_118] : memref<1x128xf32, #tpu.memory_space<vmem>>, vector<1x128xf32>
    %291 = vector.broadcast %290 : vector<1x128xf32> to vector<8x128xf32>
    %292 = arith.addf %289, %291 : vector<8x128xf32>
    %cst_119 = arith.constant dense<0xFF800000> : vector<8xf32>
    %293 = vector.multi_reduction <maximumf>, %292, %cst_119 [1] : vector<8x128xf32> to vector<8xf32>
    %294 = vector.shape_cast %293 : vector<8xf32> to vector<8x1xf32>
    %295 = vector.broadcast %294 : vector<8x1xf32> to vector<8x128xf32>
    %296 = arith.subf %292, %295 : vector<8x128xf32>
    %297 = math.exp %296 : vector<8x128xf32>
    %cst_120 = arith.constant dense<0.000000e+00> : vector<8xf32>
    %298 = vector.multi_reduction <add>, %297, %cst_120 [1] : vector<8x128xf32> to vector<8xf32>
    %299 = vector.shape_cast %298 : vector<8xf32> to vector<8x1xf32>
    %300 = vector.broadcast %299 : vector<8x1xf32> to vector<8x128xf32>
    %301 = arith.divf %297, %300 : vector<8x128xf32>
    %c0_121 = arith.constant 0 : index
    %c0_122 = arith.constant 0 : index
    %302 = vector.load %arg10[%c0_121, %c0_122] : memref<8x128xf32, #tpu.memory_space<vmem>>, vector<8x128xf32>
    tpu.vector_store %arg10[%c0_121, %c0_122], %301 {strides = array<i32>} : memref<8x128xf32, #tpu.memory_space<vmem>>, vector<8x128xf32>,
    return
  }
  func.func @transform_0(%arg0: i32) -> (i32, i32) {
    %c0_i32 = arith.constant 0 : i32
    %c0_i32_0 = arith.constant 0 : i32
    return %arg0, %c0_i32 : i32, i32
  }
  func.func @transform_1(%arg0: i32) -> (i32, i32) {
    %c0_i32 = arith.constant 0 : i32
    %c0_i32_0 = arith.constant 0 : i32
    %c0_i32_1 = arith.constant 0 : i32
    return %c0_i32, %c0_i32_0 : i32, i32
  }
  func.func @transform_2(%arg0: i32) -> (i32, i32) {
    %c0_i32 = arith.constant 0 : i32
    %c0_i32_0 = arith.constant 0 : i32
    %c0_i32_1 = arith.constant 0 : i32
    return %c0_i32, %c0_i32_0 : i32, i32
  }
  func.func @transform_3(%arg0: i32) -> (i32, i32) {
    %c0_i32 = arith.constant 0 : i32
    %c0_i32_0 = arith.constant 0 : i32
    %c0_i32_1 = arith.constant 0 : i32
    return %c0_i32, %c0_i32_0 : i32, i32
  }
  func.func @transform_4(%arg0: i32) -> (i32, i32) {
    %c0_i32 = arith.constant 0 : i32
    %c0_i32_0 = arith.constant 0 : i32
    %c0_i32_1 = arith.constant 0 : i32
    return %c0_i32, %c0_i32_0 : i32, i32
  }
  func.func @transform_5(%arg0: i32) -> (i32, i32) {
    %c0_i32 = arith.constant 0 : i32
    %c0_i32_0 = arith.constant 0 : i32
    %c0_i32_1 = arith.constant 0 : i32
    return %c0_i32, %c0_i32_0 : i32, i32
  }
  func.func @transform_6(%arg0: i32) -> (i32, i32) {
    %c0_i32 = arith.constant 0 : i32
    %c0_i32_0 = arith.constant 0 : i32
    %c0_i32_1 = arith.constant 0 : i32
    return %c0_i32, %c0_i32_0 : i32, i32
  }
  func.func @transform_7(%arg0: i32) -> (i32, i32) {
    %c0_i32 = arith.constant 0 : i32
    %c0_i32_0 = arith.constant 0 : i32
    %c0_i32_1 = arith.constant 0 : i32
    return %c0_i32, %c0_i32_0 : i32, i32
  }
  func.func @transform_8(%arg0: i32) -> (i32, i32) {
    %c0_i32 = arith.constant 0 : i32
    %c0_i32_0 = arith.constant 0 : i32
    %c0_i32_1 = arith.constant 0 : i32
    return %c0_i32, %c0_i32_0 : i32, i32
  }
  func.func @transform_9(%arg0: i32) -> (i32, i32) {
    %c0_i32 = arith.constant 0 : i32
    %c0_i32_0 = arith.constant 0 : i32
    return %arg0, %c0_i32 : i32, i32
  }
}

</mosaic_0001>

<bundles_post_ra>
// kernel: tpu_custom_call.1
= control target key start
LH: loop header
LB: loop body
LE: loop exit
PB: predicated region body
PF: predicated region fallthrough
CT: control target
= control target key end

     0   :  { %14 = vsyncpa [#allocation5], 0  ;;  %s7392_s0 = inlined_call_operand.hbm [shape: f32[8,16], index: 0, kind: input, shape index: {}]   ;;  %s7393_s1 = inlined_call_operand.hbm [shape: f32[16,512], index: 1, kind: input, shape index: {}]   ;;  %s7394_s2 = inlined_call_operand.hbm [shape: f32[256,4096], index: 2, kind: input, shape index: {}]   ;;  %s7395_s3 = inlined_call_operand.hbm [shape: f32[1,4096], index: 3, kind: input, shape index: {}]   ;;  %s7396_s4 = inlined_call_operand.hbm [shape: f32[128,512], index: 4, kind: input, shape index: {}]   ;;  %s7397_s5 = inlined_call_operand.hbm [shape: f32[896,128], index: 5, kind: input, shape index: {}]   ;;  %s7398_s6 = inlined_call_operand.hbm [shape: f32[1,128], index: 6, kind: input, shape index: {}]   ;;  %s7399_s7 = inlined_call_operand.hbm [shape: f32[128,128], index: 7, kind: input, shape index: {}]   ;;  %s7400_s8 = inlined_call_operand.hbm [shape: f32[1,128], index: 8, kind: input, shape index: {}]   ;;  %s7401_s9 = inlined_call_operand.hbm [shape: f32[8,128], index: 9, kind: output, shape index: {}]  }
   0x1   :  { %15 = vsyncpa [#allocation8], 0 }
   0x2   :  { %16 = vsyncpa [#allocation11], 0 }
   0x3   :  { %17 = vsyncpa [#allocation14], 0 }
   0x4   :  { %18 = vsyncpa [#allocation17], 0 }
   0x5   :  { %19 = vsyncpa [#allocation6], 0  ;;  %s6682_s30 = smov [#allocation7]   ;;  %s6450_s13 = scalar_lea.hbm %s7393_s1, 1024 }
   0x6   :  { %s35_s10 = sshll.u32 %s6682_s30, 4  ;;  %p6451_p0 = scmp.ne.s32.totalorder %s7393_s1, %s6450_s13  ;;  %s36_s10 = int_to_ptr.vmem [resolvable:$true] %s35_s10 }
   0x7   :  { %p6454_p1 = scmp.lt.u32.totalorder %s6450_s13, %s7393_s1 }
   0x9   :  { %p6456_p2 = pnand %p6454_p1, %p6451_p0 }
   0xb   :  { %6459 = shalt.err (!%p6456_p2)
}
   0xc   :  { %s6460_s18 = scalar_lea.vmem %s36_s10, 1024  ;;  %p6465_p4 = scmp.lt.s32.totalorder %s36_s10, %s36_s10 }
   0xd   :  { %p6461_p3 = scmp.ne.s32.totalorder %s36_s10, %s6460_s18  ;;  %p6466_p5 = scmp.lt.s32.totalorder %s6460_s18, %s6460_s18 }
   0xf   :  { %p6467_p6 = por %p6466_p5, %p6465_p4 }
  0x11   :  { %p6468_p7 = pnand %p6467_p6, %p6461_p3 }
  0x13   :  { %6471 = shalt.err (!%p6468_p7)
}
  0x14   :  { %s6683_s19 = smov 512   ;;  %s6684_s20 = smov 32  }
  0x15   :  { %41 = dma.hbm_to_vmem [thread:$0]  %s7393_s1, 1024, %s36_s10, [#allocation8], %s6683_s19, %s6683_s19, %s6684_s20  }
  0x16   :  { %s6685_s23 = smov [#allocation10]   ;;  %s6686_s25 = smov [#allocation13]  }
  0x17   :  { %s60_s24 = sshll.u32 %s6685_s23, 4  ;;  %s81_s26 = sshll.u32 %s6686_s25, 4  ;;  %s61_s24 = int_to_ptr.vmem [resolvable:$true] %s60_s24  ;;  %s82_s26 = int_to_ptr.vmem [resolvable:$true] %s81_s26 }
  0x18   :  { %s6472_s29 = scalar_lea.hbm %s7395_s3, 512 }
  0x19   :  { %p6473_p8 = scmp.ne.s32.totalorder %s7395_s3, %s6472_s29  ;;  %p6476_p9 = scmp.lt.u32.totalorder %s6472_s29, %s7395_s3 }
  0x1b   :  { %p6478_p10 = pnand %p6476_p9, %p6473_p8 }
  0x1d   :  { %6481 = shalt.err (!%p6478_p10)
}
  0x1e   :  { %s6482_s1 = scalar_lea.vmem %s61_s24, 512  ;;  %p6487_p12 = scmp.lt.s32.totalorder %s61_s24, %s61_s24 }
  0x1f   :  { %p6483_p11 = scmp.ne.s32.totalorder %s61_s24, %s6482_s1  ;;  %p6488_p13 = scmp.lt.s32.totalorder %s6482_s1, %s6482_s1 }
  0x21   :  { %p6489_p0 = por %p6488_p13, %p6487_p12 }
  0x23   :  { %p6490_p1 = pnand %p6489_p0, %p6483_p11 }
  0x25   :  { %6493 = shalt.err (!%p6490_p1)
}
  0x26   :  { %63 = dma.hbm_to_vmem [thread:$0]  %s7395_s3, 512, %s61_s24, [#allocation11]  }
  0x27   :  { %s6494_s17 = scalar_lea.hbm %s7397_s5, 14336 }
  0x28   :  { %p6495_p2 = scmp.ne.s32.totalorder %s7397_s5, %s6494_s17  ;;  %p6498_p3 = scmp.lt.u32.totalorder %s6494_s17, %s7397_s5 }
  0x2a   :  { %p6500_p4 = pnand %p6498_p3, %p6495_p2 }
  0x2c   :  { %6503 = shalt.err (!%p6500_p4)
}
  0x2d   :  { %s6504_s25 = scalar_lea.vmem %s82_s26, 14336  ;;  %p6509_p6 = scmp.lt.s32.totalorder %s82_s26, %s82_s26 }
  0x2e   :  { %p6505_p5 = scmp.ne.s32.totalorder %s82_s26, %s6504_s25  ;;  %p6510_p7 = scmp.lt.s32.totalorder %s6504_s25, %s6504_s25 }
  0x30   :  { %p6511_p8 = por %p6510_p7, %p6509_p6 }
  0x32   :  { %p6512_p9 = pnand %p6511_p8, %p6505_p5 }
  0x34   :  { %6515 = shalt.err (!%p6512_p9)
}
  0x35   :  { %s6687_s3 = smov 128   ;;  %s6688_s24 = smov 8  }
  0x36   :  { %87 = dma.hbm_to_vmem [thread:$0]  %s7397_s5, 14336, %s82_s26, [#allocation14], %s6687_s3, %s6687_s3, %s6688_s24  }
  0x37   :  { %s6689_s29 = smov [#allocation16]   ;;  %s6690_s11 = smov [#allocation4]  }
  0x38   :  { %s103_s30 = sshll.u32 %s6689_s29, 4  ;;  %s26_s12 = sshll.u32 %s6690_s11, 4  ;;  %s104_s30 = int_to_ptr.vmem [resolvable:$true] %s103_s30  ;;  %s27_s12 = int_to_ptr.vmem [resolvable:$true] %s26_s12 }
  0x39   :  { %s6516_s10 = scalar_lea.hbm %s7399_s7, 2048 }
  0x3a   :  { %p6517_p10 = scmp.ne.s32.totalorder %s7399_s7, %s6516_s10  ;;  %p6520_p11 = scmp.lt.u32.totalorder %s6516_s10, %s7399_s7 }
  0x3c   :  { %p6522_p12 = pnand %p6520_p11, %p6517_p10 }
  0x3e   :  { %6525 = shalt.err (!%p6522_p12)
}
  0x3f   :  { %s6526_s5 = scalar_lea.vmem %s104_s30, 2048  ;;  %p6531_p0 = scmp.lt.s32.totalorder %s104_s30, %s104_s30 }
  0x40   :  { %p6527_p13 = scmp.ne.s32.totalorder %s104_s30, %s6526_s5  ;;  %p6532_p1 = scmp.lt.s32.totalorder %s6526_s5, %s6526_s5 }
  0x42   :  { %p6533_p2 = por %p6532_p1, %p6531_p0 }
  0x44   :  { %p6534_p3 = pnand %p6533_p2, %p6527_p13 }
  0x46   :  { %6537 = shalt.err (!%p6534_p3)
}
  0x47   :  { %109 = dma.hbm_to_vmem [thread:$0]  %s7399_s7, 2048, %s104_s30, [#allocation17], %s6687_s3, %s6687_s3, %s6688_s24  }
  0x48   :  { %s6538_s23 = scalar_lea.hbm %s7392_s0, 128 }
  0x49   :  { %p6539_p4 = scmp.ne.s32.totalorder %s7392_s0, %s6538_s23  ;;  %p6542_p5 = scmp.lt.u32.totalorder %s6538_s23, %s7392_s0 }
  0x4b   :  { %p6544_p6 = pnand %p6542_p5, %p6539_p4 }
  0x4d   :  { %6547 = shalt.err (!%p6544_p6)
}
  0x4e   :  { %s6548_s11 = scalar_lea.vmem %s27_s12, 128  ;;  %p6553_p8 = scmp.lt.s32.totalorder %s27_s12, %s27_s12 }
  0x4f   :  { %p6549_p7 = scmp.ne.s32.totalorder %s27_s12, %s6548_s11  ;;  %p6554_p9 = scmp.lt.s32.totalorder %s6548_s11, %s6548_s11 }
  0x51   :  { %p6555_p10 = por %p6554_p9, %p6553_p8 }
  0x53   :  { %p6556_p11 = pnand %p6555_p10, %p6549_p7 }
  0x55   :  { %6559 = shalt.err (!%p6556_p11)
}
  0x56   :  { %29 = dma.hbm_to_vmem [thread:$0]  %s7392_s0, 128, %s27_s12, [#allocation5]  }
  0x57   :  { %s6691_s24 = smov [#allocation9]   ;;  %s6560_s10 = scalar_lea.hbm %s7394_s2, 131072 }
  0x58   :  { %s47_s30 = sshll.u32 %s6691_s24, 4  ;;  %p6561_p12 = scmp.ne.s32.totalorder %s7394_s2, %s6560_s10  ;;  %s48_s30 = int_to_ptr.vmem [resolvable:$true] %s47_s30 }
  0x59   :  { %p6564_p13 = scmp.lt.u32.totalorder %s6560_s10, %s7394_s2 }
  0x5b   :  { %p6566_p0 = pnand %p6564_p13, %p6561_p12 }
  0x5d   :  { %6569 = shalt.err (!%p6566_p0)
}
  0x5e   :  { %s6570_s5 = scalar_lea.vmem %s48_s30, 131072  ;;  %p6575_p2 = scmp.lt.s32.totalorder %s48_s30, %s48_s30 }
  0x5f   :  { %p6571_p1 = scmp.ne.s32.totalorder %s48_s30, %s6570_s5  ;;  %p6576_p3 = scmp.lt.s32.totalorder %s6570_s5, %s6570_s5 }
  0x61   :  { %p6577_p4 = por %p6576_p3, %p6575_p2 }
  0x63   :  { %p6578_p5 = pnand %p6577_p4, %p6571_p1 }
  0x65   :  { %6581 = shalt.err (!%p6578_p5)
}
  0x66   :  { %s6692_s0 = smov 4096   ;;  %s6693_s12 = smov 256  }
  0x67   :  { %53 = dma.hbm_to_vmem [thread:$0]  %s7394_s2, 131072, %s48_s30, [#allocation8], %s6692_s0, %s6692_s0, %s6693_s12  }
  0x68   :  { %s6694_s21 = smov [#allocation12]   ;;  %s6695_s23 = smov [#allocation15]  }
  0x69   :  { %s69_s22 = sshll.u32 %s6694_s21, 4  ;;  %s94_s25 = sshll.u32 %s6695_s23, 4  ;;  %s70_s22 = int_to_ptr.vmem [resolvable:$true] %s69_s22  ;;  %s95_s25 = int_to_ptr.vmem [resolvable:$true] %s94_s25 }
  0x6a   :  { %s6582_s29 = scalar_lea.hbm %s7396_s4, 8192 }
  0x6b   :  { %p6583_p6 = scmp.ne.s32.totalorder %s7396_s4, %s6582_s29  ;;  %p6586_p7 = scmp.lt.u32.totalorder %s6582_s29, %s7396_s4 }
  0x6d   :  { %p6588_p8 = pnand %p6586_p7, %p6583_p6 }
  0x6f   :  { %6591 = shalt.err (!%p6588_p8)
}
  0x70   :  { %s6592_s2 = scalar_lea.vmem %s70_s22, 8192  ;;  %p6597_p10 = scmp.lt.s32.totalorder %s70_s22, %s70_s22 }
  0x71   :  { %p6593_p9 = scmp.ne.s32.totalorder %s70_s22, %s6592_s2  ;;  %p6598_p11 = scmp.lt.s32.totalorder %s6592_s2, %s6592_s2 }
  0x73   :  { %p6599_p12 = por %p6598_p11, %p6597_p10 }
  0x75   :  { %p6600_p13 = pnand %p6599_p12, %p6593_p9 }
  0x77   :  { %6603 = shalt.err (!%p6600_p13)
}
  0x78   :  { %75 = dma.hbm_to_vmem [thread:$0]  %s7396_s4, 8192, %s70_s22, [#allocation11], %s6683_s19, %s6683_s19, %s6684_s20  }
  0x79   :  { %s6604_s14 = scalar_lea.hbm %s7398_s6, 16 }
  0x7a   :  { %p6605_p0 = scmp.ne.s32.totalorder %s7398_s6, %s6604_s14  ;;  %p6608_p1 = scmp.lt.u32.totalorder %s6604_s14, %s7398_s6 }
  0x7c   :  { %p6610_p2 = pnand %p6608_p1, %p6605_p0 }
  0x7e   :  { %6613 = shalt.err (!%p6610_p2)
}
  0x7f   :  { %s6614_s0 = scalar_lea.vmem %s95_s25, 16  ;;  %s6618_s12 = scalar_lea.vmem %s95_s25, 32 }
  0x80   :  { %p6615_p3 = scmp.ne.s32.totalorder %s95_s25, %s6614_s0  ;;  %p6619_p4 = scmp.lt.s32.totalorder %s95_s25, %s95_s25 }
  0x81   :  { %p6620_p5 = scmp.lt.s32.totalorder %s6618_s12, %s6614_s0 }
  0x83   :  { %p6621_p6 = por %p6620_p5, %p6619_p4 }
  0x85   :  { %p6622_p7 = pnand %p6621_p6, %p6615_p3 }
  0x87   :  { %6625 = shalt.err (!%p6622_p7)
}
  0x88   :  { %97 = dma.hbm_to_vmem [thread:$0]  %s7398_s6, 16, %s95_s25, [#allocation14]  }
  0x89   :  { %s6696_s20 = smov [#allocation18]   ;;  %s6626_s22 = scalar_lea.hbm %s7400_s8, 16 }
  0x8a   :  { %s116_s26 = sshll.u32 %s6696_s20, 4  ;;  %p6627_p8 = scmp.ne.s32.totalorder %s7400_s8, %s6626_s22  ;;  %s117_s26 = int_to_ptr.vmem [resolvable:$true] %s116_s26 }
  0x8b   :  { %p6630_p9 = scmp.lt.u32.totalorder %s6626_s22, %s7400_s8 }
  0x8d   :  { %p6632_p10 = pnand %p6630_p9, %p6627_p8 }
  0x8f   :  { %6635 = shalt.err (!%p6632_p10)
}
  0x90   :  { %s6636_s11 = scalar_lea.vmem %s117_s26, 16  ;;  %s6640_s6 = scalar_lea.vmem %s117_s26, 32 }
  0x91   :  { %p6637_p11 = scmp.ne.s32.totalorder %s117_s26, %s6636_s11  ;;  %p6641_p12 = scmp.lt.s32.totalorder %s117_s26, %s117_s26 }
  0x92   :  { %p6642_p13 = scmp.lt.s32.totalorder %s6640_s6, %s6636_s11 }
  0x94   :  { %p6643_p0 = por %p6642_p13, %p6641_p12 }
  0x96   :  { %p6644_p1 = pnand %p6643_p0, %p6637_p11 }
  0x98   :  { %6647 = shalt.err (!%p6644_p1)
}
  0x99   :  { %119 = dma.hbm_to_vmem [thread:$0]  %s7400_s8, 16, %s117_s26, [#allocation17]  }
  0x9a   :  { %6670 = dma.done.wait [#allocation5], 128  }
  0x9b   :  { %6671 = vsyncadd [#allocation5], 4294967168 }
  0x9c   :  { %6672 = dma.done.wait [#allocation8], 132096  }
  0x9d   :  { %6673 = vsyncadd [#allocation8], 4294835200 }
  0x9e   :  { %6674 = dma.done.wait [#allocation11], 8704  }
  0x9f   :  { %6675 = vsyncadd [#allocation11], 4294958592 }
  0xa0   :  { %6676 = dma.done.wait [#allocation14], 14352  }
  0xa1   :  { %6677 = vsyncadd [#allocation14], 4294952944 }
  0xa2   :  { %6678 = dma.done.wait [#allocation17], 2064  }
  0xa3   :  { %6679 = vsyncadd [#allocation17], 4294965232  ;;  %v7402_v0 = vmov 0.0   ;;  %v149_v1 = vld [vmem:[#allocation7 + $0x8] sm:$0xff]  ;;  %v148_v3 = vld [vmem:[#allocation7] sm:$0xff]  ;;  %vm156_vm0 = vcmask 130048  }
  0xa4   :  { %224 = vmatprep.mubr.f32.mxu1 %v7402_v0  ;;  %v153_v2 = vld [vmem:[#allocation7 + $0x28] sm:$0xff]  ;;  %v152_v5 = vld [vmem:[#allocation7 + $0x20] sm:$0xff]  ;;  %v151_v6 = vld [vmem:[#allocation7 + $0x18] sm:$0xff]  ;;  %vm6699_vm1 = vmmov 0   ;;  %s6700_s8 = smov [#allocation19]  }
  0xa5   :  { %v4668_v4 = vpack.c.bf16 %v153_v2, %v149_v1  ;;  %v4670_v7 = vpack.c.bf16 %v152_v5, %v148_v3  ;;  %v147_v8 = vld [vmem:[#allocation4] sm:$0xff]  ;;  %v150_v10 = vld [vmem:[#allocation7 + $0x10] sm:$0xff]  ;;  %v305_v13 = vld [vmem:[#allocation9 + $0x8] sm:$0xff]  ;;  %s4442_s3 = sshll.u32 %s6700_s8, 4  ;;  %s4443_s3 = int_to_ptr.vmem [resolvable:$true] %s4442_s3 }
  0xa6   :  { %v155_v9 = vld [vmem:[#allocation7 + $0x38] sm:$0xff]  ;;  %v154_v11 = vld [vmem:[#allocation7 + $0x30] sm:$0xff]  ;;  %v337_v14 = vld [vmem:[#allocation9 + $0x108] sm:$0xff]  ;;  %s6648_s24 = scalar_lea.vmem %s4443_s3, 128  ;;  %p6653_p3 = scmp.lt.s32.totalorder %s4443_s3, %s4443_s3 }
  0xa7   :  { %4669 = vmatprep.subr.bf16.mxu1 %v4668_v4  ;;  %v4672_v12 = vpack.c.bf16 %v155_v9, %v151_v6  ;;  %v307_v15 = vld [vmem:[#allocation9 + $0x18] sm:$0xff]  ;;  %v4674_v16 = vpack.c.bf16 %v154_v11, %v150_v10  ;;  %v4676_v17 = vpack.c.bf16 %v337_v14, %v305_v13  ;;  %v304_v19 = vld [vmem:[#allocation9] sm:$0xff]  ;;  %v306_v23 = vld [vmem:[#allocation9 + $0x10] sm:$0xff]  ;;  %p6649_p2 = scmp.ne.s32.totalorder %s4443_s3, %s6648_s24  ;;  %p6654_p4 = scmp.lt.s32.totalorder %s6648_s24, %s6648_s24 }
  0xa8   :  { %4671 = vmatpush1.bf16.msra.mxu1 %v4670_v7  ;;  %v339_v18 = vld [vmem:[#allocation9 + $0x118] sm:$0xff]  ;;  %v336_v20 = vld [vmem:[#allocation9 + $0x100] sm:$0xff]  ;;  %v338_v24 = vld [vmem:[#allocation9 + $0x110] sm:$0xff] }
  0xa9   :  { %4673 = vmatprep.subr.bf16.mxu1 %v4672_v12  ;;  %v4740_v21 = vpack.c.bf16 %v339_v18, %v307_v15  ;;  %v4678_v22 = vpack.c.bf16 %v336_v20, %v304_v19  ;;  %v369_v25 = vld [vmem:[#allocation9 + $0x208] sm:$0xff]  ;;  %4677 = vmatprep.subr.bf16.mxu0 %v4676_v17  ;;  %v371_v27 = vld [vmem:[#allocation9 + $0x218] sm:$0xff]  ;;  %v368_v30 = vld [vmem:[#allocation9 + $0x200] sm:$0xff]  ;;  %v4742_v32 = vpack.c.bf16 %v338_v24, %v306_v23  ;;  %p6655_p5 = por %p6654_p4, %p6653_p3 }
  0xaa   :  { %v401_v26 = vld [vmem:[#allocation9 + $0x308] sm:$0xff]  ;;  %v403_v28 = vld [vmem:[#allocation9 + $0x318] sm:$0xff]  ;;  %v400_v31 = vld [vmem:[#allocation9 + $0x300] sm:$0xff] }
  0xab   :  { %4455 = vmatmul.mubr.msk.f32.vlgmr.msra.gmra.mrb[0].mxu1 %vm156_vm0, %v147_v8  ;;  %4679 = vmatpush1.bf16.msra.mxu0 %v4678_v22  ;;  %v4680_v29 = vpack.c.bf16 %v401_v26, %v369_v25  ;;  %v4682_v33 = vpack.c.bf16 %v400_v31, %v368_v30  ;;  %v433_v34 = vld [vmem:[#allocation9 + $0x408] sm:$0xff]  ;;  %v4744_v36 = vpack.c.bf16 %v403_v28, %v371_v27  ;;  %v370_v37 = vld [vmem:[#allocation9 + $0x210] sm:$0xff]  ;;  %v432_v40 = vld [vmem:[#allocation9 + $0x400] sm:$0xff]  ;;  %p6656_p6 = pnand %p6655_p5, %p6649_p2 }
  0xac   :  { %4675 = vmatpush1.bf16.msra.mxu1 %v4674_v16  ;;  %295 = vmatprep.mubr.f32.mxu1 %v7402_v0  ;;  %v465_v35 = vld [vmem:[#allocation9 + $0x508] sm:$0xff]  ;;  %v402_v38 = vld [vmem:[#allocation9 + $0x310] sm:$0xff]  ;;  %v435_v41 = vld [vmem:[#allocation9 + $0x418] sm:$0xff] }
  0xad   :  { %4741 = vmatprep.subr.bf16.mxu1 %v4740_v21  ;;  %4681 = vmatprep.subr.bf16.mxu0 %v4680_v29  ;;  %v4684_v39 = vpack.c.bf16 %v465_v35, %v433_v34  ;;  %v467_v42 = vld [vmem:[#allocation9 + $0x518] sm:$0xff]  ;;  %v464_v43 = vld [vmem:[#allocation9 + $0x500] sm:$0xff]  ;;  %v497_v45 = vld [vmem:[#allocation9 + $0x608] sm:$0xff]  ;;  %v4746_v47 = vpack.c.bf16 %v402_v38, %v370_v37 }
  0xae   :  { %v4686_v44 = vpack.c.bf16 %v464_v43, %v432_v40  ;;  %v529_v46 = vld [vmem:[#allocation9 + $0x708] sm:$0xff]  ;;  %v496_v49 = vld [vmem:[#allocation9 + $0x600] sm:$0xff]  ;;  %v4748_v51 = vpack.c.bf16 %v467_v42, %v435_v41  ;;  %v434_v52 = vld [vmem:[#allocation9 + $0x410] sm:$0xff] }
  0xaf   :  { %4456 = vmatmul.mubr.msk.f32.vlgmr.msra.gmra.mrb[2].mxu1 %vm156_vm0, %v147_v8  ;;  %4683 = vmatpush1.bf16.msra.mxu0 %v4682_v33  ;;  %v4688_v48 = vpack.c.bf16 %v529_v46, %v497_v45  ;;  %v528_v50 = vld [vmem:[#allocation9 + $0x700] sm:$0xff]  ;;  %v466_v53 = vld [vmem:[#allocation9 + $0x510] sm:$0xff]  ;;  %v561_v54 = vld [vmem:[#allocation9 + $0x808] sm:$0xff] }
  0xb0   :  { %4743 = vmatpush1.bf16.msra.mxu1 %v4742_v32  ;;  %4685 = vmatprep.subr.bf16.mxu0 %v4684_v39  ;;  %v499_v55 = vld [vmem:[#allocation9 + $0x618] sm:$0xff]  ;;  %v593_v57 = vld [vmem:[#allocation9 + $0x908] sm:$0xff]  ;;  %v4690_v58 = vpack.c.bf16 %v528_v50, %v496_v49  ;;  %v4750_v59 = vpack.c.bf16 %v466_v53, %v434_v52  ;;  %v498_v60 = vld [vmem:[#allocation9 + $0x610] sm:$0xff] }
  0xb1   :  { %4745 = vmatprep.subr.bf16.mxu1 %v4744_v36  ;;  %v531_v56 = vld [vmem:[#allocation9 + $0x718] sm:$0xff]  ;;  %v4692_v61 = vpack.c.bf16 %v593_v57, %v561_v54  ;;  %v560_v62 = vld [vmem:[#allocation9 + $0x800] sm:$0xff]  ;;  %v530_v2 = vld [vmem:[#allocation9 + $0x710] sm:$0xff] }
  0xb2   :  { %v592_v63 = vld [vmem:[#allocation9 + $0x900] sm:$0xff]  ;;  %v4752_v1 = vpack.c.bf16 %v531_v56, %v499_v55  ;;  %v625_v3 = vld [vmem:[#allocation9 + $0xa08] sm:$0xff]  ;;  %v563_v5 = vld [vmem:[#allocation9 + $0x818] sm:$0xff]  ;;  %v4754_v8 = vpack.c.bf16 %v530_v2, %v498_v60 }
  0xb3   :  { %4687 = vmatpush1.bf16.msra.mxu0 %v4686_v44  ;;  %v657_v4 = vld [vmem:[#allocation9 + $0xb08] sm:$0xff]  ;;  %v595_v6 = vld [vmem:[#allocation9 + $0x918] sm:$0xff]  ;;  %v4694_v7 = vpack.c.bf16 %v592_v63, %v560_v62  ;;  %v562_v9 = vld [vmem:[#allocation9 + $0x810] sm:$0xff] }
  0xb4   :  { %4747 = vmatpush1.bf16.msra.mxu1 %v4746_v47  ;;  %4689 = vmatprep.subr.bf16.mxu0 %v4688_v48  ;;  %v4696_v10 = vpack.c.bf16 %v657_v4, %v625_v3  ;;  %v624_v11 = vld [vmem:[#allocation9 + $0xa00] sm:$0xff]  ;;  %v4756_v13 = vpack.c.bf16 %v595_v6, %v563_v5  ;;  %v594_v14 = vld [vmem:[#allocation9 + $0x910] sm:$0xff]  ;;  %v689_v15 = vld [vmem:[#allocation9 + $0xc08] sm:$0xff] }
  0xb5   :  { %4749 = vmatprep.subr.bf16.mxu1 %v4748_v51  ;;  %v656_v12 = vld [vmem:[#allocation9 + $0xb00] sm:$0xff]  ;;  %v721_v16 = vld [vmem:[#allocation9 + $0xd08] sm:$0xff]  ;;  %v627_v17 = vld [vmem:[#allocation9 + $0xa18] sm:$0xff]  ;;  %v4758_v20 = vpack.c.bf16 %v594_v14, %v562_v9 }
  0xb6   :  { %v659_v18 = vld [vmem:[#allocation9 + $0xb18] sm:$0xff]  ;;  %v4698_v19 = vpack.c.bf16 %v656_v12, %v624_v11  ;;  %v626_v21 = vld [vmem:[#allocation9 + $0xa10] sm:$0xff]  ;;  %v4700_v22 = vpack.c.bf16 %v721_v16, %v689_v15  ;;  %v688_v23 = vld [vmem:[#allocation9 + $0xc00] sm:$0xff] }
  0xb7   :  { %4691 = vmatpush1.bf16.msra.mxu0 %v4690_v58  ;;  %v720_v24 = vld [vmem:[#allocation9 + $0xd00] sm:$0xff]  ;;  %v4760_v25 = vpack.c.bf16 %v659_v18, %v627_v17  ;;  %v658_v26 = vld [vmem:[#allocation9 + $0xb10] sm:$0xff]  ;;  %v753_v27 = vld [vmem:[#allocation9 + $0xe08] sm:$0xff] }
  0xb8   :  { %4751 = vmatpush1.bf16.msra.mxu1 %v4750_v59  ;;  %4693 = vmatprep.subr.bf16.mxu0 %v4692_v61  ;;  %v785_v28 = vld [vmem:[#allocation9 + $0xf08] sm:$0xff]  ;;  %v691_v29 = vld [vmem:[#allocation9 + $0xc18] sm:$0xff]  ;;  %v4702_v31 = vpack.c.bf16 %v720_v24, %v688_v23  ;;  %v4762_v32 = vpack.c.bf16 %v658_v26, %v626_v21  ;;  %v690_v33 = vld [vmem:[#allocation9 + $0xc10] sm:$0xff] }
  0xb9   :  { %4753 = vmatprep.subr.bf16.mxu1 %v4752_v1  ;;  %v723_v30 = vld [vmem:[#allocation9 + $0xd18] sm:$0xff]  ;;  %v4704_v34 = vpack.c.bf16 %v785_v28, %v753_v27  ;;  %v752_v35 = vld [vmem:[#allocation9 + $0xe00] sm:$0xff]  ;;  %v722_v38 = vld [vmem:[#allocation9 + $0xd10] sm:$0xff] }
  0xba   :  { %v784_v36 = vld [vmem:[#allocation9 + $0xf00] sm:$0xff]  ;;  %v4764_v37 = vpack.c.bf16 %v723_v30, %v691_v29  ;;  %v817_v39 = vld [vmem:[#allocation9 + $0x1008] sm:$0xff]  ;;  %v755_v41 = vld [vmem:[#allocation9 + $0xe18] sm:$0xff]  ;;  %v4766_v44 = vpack.c.bf16 %v722_v38, %v690_v33 }
  0xbb   :  { %4695 = vmatpush1.bf16.msra.mxu0 %v4694_v7  ;;  %v849_v40 = vld [vmem:[#allocation9 + $0x1108] sm:$0xff]  ;;  %v787_v42 = vld [vmem:[#allocation9 + $0xf18] sm:$0xff]  ;;  %v4706_v43 = vpack.c.bf16 %v784_v36, %v752_v35  ;;  %v754_v45 = vld [vmem:[#allocation9 + $0xe10] sm:$0xff] }
  0xbc   :  { %4755 = vmatpush1.bf16.msra.mxu1 %v4754_v8  ;;  %4697 = vmatprep.subr.bf16.mxu0 %v4696_v10  ;;  %v4708_v46 = vpack.c.bf16 %v849_v40, %v817_v39  ;;  %v816_v47 = vld [vmem:[#allocation9 + $0x1000] sm:$0xff]  ;;  %v4768_v49 = vpack.c.bf16 %v787_v42, %v755_v41  ;;  %v786_v50 = vld [vmem:[#allocation9 + $0xf10] sm:$0xff]  ;;  %v881_v51 = vld [vmem:[#allocation9 + $0x1208] sm:$0xff] }
  0xbd   :  { %4757 = vmatprep.subr.bf16.mxu1 %v4756_v13  ;;  %v848_v48 = vld [vmem:[#allocation9 + $0x1100] sm:$0xff]  ;;  %v913_v52 = vld [vmem:[#allocation9 + $0x1308] sm:$0xff]  ;;  %v819_v53 = vld [vmem:[#allocation9 + $0x1018] sm:$0xff]  ;;  %v4770_v56 = vpack.c.bf16 %v786_v50, %v754_v45 }
  0xbe   :  { %v851_v54 = vld [vmem:[#allocation9 + $0x1118] sm:$0xff]  ;;  %v4710_v55 = vpack.c.bf16 %v848_v48, %v816_v47  ;;  %v818_v57 = vld [vmem:[#allocation9 + $0x1010] sm:$0xff]  ;;  %v4712_v58 = vpack.c.bf16 %v913_v52, %v881_v51  ;;  %v880_v59 = vld [vmem:[#allocation9 + $0x1200] sm:$0xff] }
  0xbf   :  { %4699 = vmatpush1.bf16.msra.mxu0 %v4698_v19  ;;  %v912_v60 = vld [vmem:[#allocation9 + $0x1300] sm:$0xff]  ;;  %v4772_v61 = vpack.c.bf16 %v851_v54, %v819_v53  ;;  %v850_v62 = vld [vmem:[#allocation9 + $0x1110] sm:$0xff]  ;;  %v945_v63 = vld [vmem:[#allocation9 + $0x1408] sm:$0xff] }
  0xc0   :  { %4759 = vmatpush1.bf16.msra.mxu1 %v4758_v20  ;;  %4701 = vmatprep.subr.bf16.mxu0 %v4700_v22  ;;  %v977_v1 = vld [vmem:[#allocation9 + $0x1508] sm:$0xff]  ;;  %v883_v2 = vld [vmem:[#allocation9 + $0x1218] sm:$0xff]  ;;  %v4714_v4 = vpack.c.bf16 %v912_v60, %v880_v59  ;;  %v4774_v5 = vpack.c.bf16 %v850_v62, %v818_v57  ;;  %v882_v6 = vld [vmem:[#allocation9 + $0x1210] sm:$0xff] }
  0xc1   :  { %4761 = vmatprep.subr.bf16.mxu1 %v4760_v25  ;;  %v915_v3 = vld [vmem:[#allocation9 + $0x1318] sm:$0xff]  ;;  %v4716_v7 = vpack.c.bf16 %v977_v1, %v945_v63  ;;  %v944_v8 = vld [vmem:[#allocation9 + $0x1400] sm:$0xff]  ;;  %v914_v11 = vld [vmem:[#allocation9 + $0x1310] sm:$0xff] }
  0xc2   :  { %v976_v9 = vld [vmem:[#allocation9 + $0x1500] sm:$0xff]  ;;  %v4776_v10 = vpack.c.bf16 %v915_v3, %v883_v2  ;;  %v1009_v12 = vld [vmem:[#allocation9 + $0x1608] sm:$0xff]  ;;  %v947_v14 = vld [vmem:[#allocation9 + $0x1418] sm:$0xff]  ;;  %v4778_v17 = vpack.c.bf16 %v914_v11, %v882_v6 }
  0xc3   :  { %4703 = vmatpush1.bf16.msra.mxu0 %v4702_v31  ;;  %v1041_v13 = vld [vmem:[#allocation9 + $0x1708] sm:$0xff]  ;;  %v979_v15 = vld [vmem:[#allocation9 + $0x1518] sm:$0xff]  ;;  %v4718_v16 = vpack.c.bf16 %v976_v9, %v944_v8  ;;  %v946_v18 = vld [vmem:[#allocation9 + $0x1410] sm:$0xff] }
  0xc4   :  { %4763 = vmatpush1.bf16.msra.mxu1 %v4762_v32  ;;  %4705 = vmatprep.subr.bf16.mxu0 %v4704_v34  ;;  %v4720_v19 = vpack.c.bf16 %v1041_v13, %v1009_v12  ;;  %v1008_v20 = vld [vmem:[#allocation9 + $0x1600] sm:$0xff]  ;;  %v4780_v22 = vpack.c.bf16 %v979_v15, %v947_v14  ;;  %v978_v23 = vld [vmem:[#allocation9 + $0x1510] sm:$0xff]  ;;  %v1073_v24 = vld [vmem:[#allocation9 + $0x1808] sm:$0xff] }
  0xc5   :  { %4765 = vmatprep.subr.bf16.mxu1 %v4764_v37  ;;  %v1040_v21 = vld [vmem:[#allocation9 + $0x1700] sm:$0xff]  ;;  %v1105_v25 = vld [vmem:[#allocation9 + $0x1908] sm:$0xff]  ;;  %v1011_v26 = vld [vmem:[#allocation9 + $0x1618] sm:$0xff]  ;;  %v4782_v29 = vpack.c.bf16 %v978_v23, %v946_v18 }
  0xc6   :  { %v1043_v27 = vld [vmem:[#allocation9 + $0x1718] sm:$0xff]  ;;  %v4722_v28 = vpack.c.bf16 %v1040_v21, %v1008_v20  ;;  %v1010_v30 = vld [vmem:[#allocation9 + $0x1610] sm:$0xff]  ;;  %v4724_v31 = vpack.c.bf16 %v1105_v25, %v1073_v24  ;;  %v1072_v32 = vld [vmem:[#allocation9 + $0x1800] sm:$0xff] }
  0xc7   :  { %4707 = vmatpush1.bf16.msra.mxu0 %v4706_v43  ;;  %v1104_v33 = vld [vmem:[#allocation9 + $0x1900] sm:$0xff]  ;;  %v4784_v34 = vpack.c.bf16 %v1043_v27, %v1011_v26  ;;  %v1042_v35 = vld [vmem:[#allocation9 + $0x1710] sm:$0xff]  ;;  %v1137_v36 = vld [vmem:[#allocation9 + $0x1a08] sm:$0xff] }
  0xc8   :  { %4767 = vmatpush1.bf16.msra.mxu1 %v4766_v44  ;;  %4709 = vmatprep.subr.bf16.mxu0 %v4708_v46  ;;  %v1169_v37 = vld [vmem:[#allocation9 + $0x1b08] sm:$0xff]  ;;  %v1075_v38 = vld [vmem:[#allocation9 + $0x1818] sm:$0xff]  ;;  %v4726_v40 = vpack.c.bf16 %v1104_v33, %v1072_v32  ;;  %v4786_v41 = vpack.c.bf16 %v1042_v35, %v1010_v30  ;;  %v1136_v43 = vld [vmem:[#allocation9 + $0x1a00] sm:$0xff] }
  0xc9   :  { %4769 = vmatprep.subr.bf16.mxu1 %v4768_v49  ;;  %v1107_v39 = vld [vmem:[#allocation9 + $0x1918] sm:$0xff]  ;;  %v4728_v42 = vpack.c.bf16 %v1169_v37, %v1137_v36  ;;  %v1168_v44 = vld [vmem:[#allocation9 + $0x1b00] sm:$0xff]  ;;  %v1074_v46 = vld [vmem:[#allocation9 + $0x1810] sm:$0xff] }
  0xca   :  { %v4788_v45 = vpack.c.bf16 %v1107_v39, %v1075_v38  ;;  %v1106_v47 = vld [vmem:[#allocation9 + $0x1910] sm:$0xff]  ;;  %v1139_v48 = vld [vmem:[#allocation9 + $0x1a18] sm:$0xff]  ;;  %v4730_v50 = vpack.c.bf16 %v1168_v44, %v1136_v43  ;;  %v1233_v57 = vld [vmem:[#allocation9 + $0x1d08] sm:$0xff] }
  0xcb   :  { %4711 = vmatpush1.bf16.msra.mxu0 %v4710_v55  ;;  %v1171_v49 = vld [vmem:[#allocation9 + $0x1b18] sm:$0xff]  ;;  %v4790_v51 = vpack.c.bf16 %v1106_v47, %v1074_v46  ;;  %v1138_v53 = vld [vmem:[#allocation9 + $0x1a10] sm:$0xff]  ;;  %v1232_v62 = vld [vmem:[#allocation9 + $0x1d00] sm:$0xff] }
  0xcc   :  { %4771 = vmatpush1.bf16.msra.mxu1 %v4770_v56  ;;  %4713 = vmatprep.subr.bf16.mxu0 %v4712_v58  ;;  %v4792_v52 = vpack.c.bf16 %v1171_v49, %v1139_v48  ;;  %v1170_v54 = vld [vmem:[#allocation9 + $0x1b10] sm:$0xff]  ;;  %v1201_v56 = vld [vmem:[#allocation9 + $0x1c08] sm:$0xff]  ;;  %v1203_v58 = vld [vmem:[#allocation9 + $0x1c18] sm:$0xff] }
  0xcd   :  { %4773 = vmatprep.subr.bf16.mxu1 %v4772_v61  ;;  %v4794_v55 = vpack.c.bf16 %v1170_v54, %v1138_v53  ;;  %v4732_v59 = vpack.c.bf16 %v1233_v57, %v1201_v56  ;;  %v1235_v60 = vld [vmem:[#allocation9 + $0x1d18] sm:$0xff]  ;;  %v1200_v61 = vld [vmem:[#allocation9 + $0x1c00] sm:$0xff]  ;;  %v1202_v2 = vld [vmem:[#allocation9 + $0x1c10] sm:$0xff] }
  0xce   :  { %v4796_v63 = vpack.c.bf16 %v1235_v60, %v1203_v58  ;;  %v4734_v1 = vpack.c.bf16 %v1232_v62, %v1200_v61  ;;  %v1234_v3 = vld [vmem:[#allocation9 + $0x1d10] sm:$0xff]  ;;  %v1297_v6 = vld [vmem:[#allocation9 + $0x1f08] sm:$0xff]  ;;  %v1299_v9 = vld [vmem:[#allocation9 + $0x1f18] sm:$0xff] }
  0xcf   :  { %4715 = vmatpush1.bf16.msra.mxu0 %v4714_v4  ;;  %v4798_v4 = vpack.c.bf16 %v1234_v3, %v1202_v2  ;;  %v1296_v11 = vld [vmem:[#allocation9 + $0x1f00] sm:$0xff]  ;;  %v1266_v14 = vld [vmem:[#allocation9 + $0x1e10] sm:$0xff]  ;;  %v341_v18 = vld [vmem:[#allocation9 + $0x128] sm:$0xff] }
  0xd0   :  { %4775 = vmatpush1.bf16.msra.mxu1 %v4774_v5  ;;  %4717 = vmatprep.subr.bf16.mxu0 %v4716_v7  ;;  %v1265_v5 = vld [vmem:[#allocation9 + $0x1e08] sm:$0xff]  ;;  %v1267_v7 = vld [vmem:[#allocation9 + $0x1e18] sm:$0xff]  ;;  %v1298_v15 = vld [vmem:[#allocation9 + $0x1f10] sm:$0xff] }
  0xd1   :  { %4777 = vmatprep.subr.bf16.mxu1 %v4776_v10  ;;  %v4736_v8 = vpack.c.bf16 %v1297_v6, %v1265_v5  ;;  %v1264_v10 = vld [vmem:[#allocation9 + $0x1e00] sm:$0xff]  ;;  %v4800_v12 = vpack.c.bf16 %v1299_v9, %v1267_v7  ;;  %v343_v21 = vld [vmem:[#allocation9 + $0x138] sm:$0xff]  ;;  %v310_v27 = vld [vmem:[#allocation9 + $0x30] sm:$0xff] }
  0xd2   :  { %v4738_v13 = vpack.c.bf16 %v1296_v11, %v1264_v10  ;;  %v308_v25 = vld [vmem:[#allocation9 + $0x20] sm:$0xff]  ;;  %v373_v30 = vld [vmem:[#allocation9 + $0x228] sm:$0xff]  ;;  %v407_v35 = vld [vmem:[#allocation9 + $0x338] sm:$0xff] }
  0xd3   :  { %4719 = vmatpush1.bf16.msra.mxu0 %v4718_v16  ;;  %v4802_v16 = vpack.c.bf16 %v1298_v15, %v1266_v14  ;;  %v340_v26 = vld [vmem:[#allocation9 + $0x120] sm:$0xff]  ;;  %v405_v33 = vld [vmem:[#allocation9 + $0x328] sm:$0xff]  ;;  %v439_v47 = vld [vmem:[#allocation9 + $0x438] sm:$0xff] }
  0xd4   :  { %4779 = vmatpush1.bf16.msra.mxu1 %v4778_v17  ;;  %4721 = vmatprep.subr.bf16.mxu0 %v4720_v19  ;;  %v309_v17 = vld [vmem:[#allocation9 + $0x28] sm:$0xff]  ;;  %v311_v19 = vld [vmem:[#allocation9 + $0x38] sm:$0xff]  ;;  %v4806_v37 = vpack.c.bf16 %v340_v26, %v308_v25  ;;  %v372_v39 = vld [vmem:[#allocation9 + $0x220] sm:$0xff]  ;;  %v4808_v44 = vpack.c.bf16 %v405_v33, %v373_v30 }
  0xd5   :  { %4781 = vmatprep.subr.bf16.mxu1 %v4780_v22  ;;  %v4804_v20 = vpack.c.bf16 %v341_v18, %v309_v17  ;;  %v4868_v22 = vpack.c.bf16 %v343_v21, %v311_v19  ;;  %v437_v43 = vld [vmem:[#allocation9 + $0x428] sm:$0xff]  ;;  %v471_v48 = vld [vmem:[#allocation9 + $0x538] sm:$0xff]  ;;  %v470_v56 = vld [vmem:[#allocation9 + $0x530] sm:$0xff] }
  0xd6   :  { %v469_v46 = vld [vmem:[#allocation9 + $0x528] sm:$0xff]  ;;  %v4876_v54 = vpack.c.bf16 %v471_v48, %v439_v47  ;;  %v535_v60 = vld [vmem:[#allocation9 + $0x738] sm:$0xff]  ;;  %v534_v5 = vld [vmem:[#allocation9 + $0x730] sm:$0xff] }
  0xd7   :  { %4723 = vmatpush1.bf16.msra.mxu0 %v4722_v28  ;;  %v342_v28 = vld [vmem:[#allocation9 + $0x130] sm:$0xff]  ;;  %v4812_v53 = vpack.c.bf16 %v469_v46, %v437_v43  ;;  %v501_v57 = vld [vmem:[#allocation9 + $0x628] sm:$0xff]  ;;  %v599_v9 = vld [vmem:[#allocation9 + $0x938] sm:$0xff] }
  0xd8   :  { %4783 = vmatpush1.bf16.msra.mxu1 %v4782_v29  ;;  %4725 = vmatprep.subr.bf16.mxu0 %v4724_v31  ;;  %v4870_v38 = vpack.c.bf16 %v342_v28, %v310_v27  ;;  %v533_v58 = vld [vmem:[#allocation9 + $0x728] sm:$0xff]  ;;  %v598_v17 = vld [vmem:[#allocation9 + $0x930] sm:$0xff]  ;;  %v663_v21 = vld [vmem:[#allocation9 + $0xb38] sm:$0xff] }
  0xd9   :  { %4785 = vmatprep.subr.bf16.mxu1 %v4784_v34  ;;  %v375_v34 = vld [vmem:[#allocation9 + $0x238] sm:$0xff]  ;;  %v4816_v2 = vpack.c.bf16 %v533_v58, %v501_v57  ;;  %v565_v6 = vld [vmem:[#allocation9 + $0x828] sm:$0xff]  ;;  %v660_v25 = vld [vmem:[#allocation9 + $0xb20] sm:$0xff] }
  0xda   :  { %v597_v7 = vld [vmem:[#allocation9 + $0x928] sm:$0xff]  ;;  %v630_v28 = vld [vmem:[#allocation9 + $0xa30] sm:$0xff]  ;;  %v695_v33 = vld [vmem:[#allocation9 + $0xc38] sm:$0xff] }
  0xdb   :  { %4727 = vmatpush1.bf16.msra.mxu0 %v4726_v40  ;;  %v404_v40 = vld [vmem:[#allocation9 + $0x320] sm:$0xff]  ;;  %v4820_v14 = vpack.c.bf16 %v597_v7, %v565_v6  ;;  %v629_v18 = vld [vmem:[#allocation9 + $0xa28] sm:$0xff]  ;;  %v726_v43 = vld [vmem:[#allocation9 + $0xd30] sm:$0xff] }
  0xdc   :  { %4787 = vmatpush1.bf16.msra.mxu1 %v4786_v41  ;;  %4729 = vmatprep.subr.bf16.mxu0 %v4728_v42  ;;  %v374_v41 = vld [vmem:[#allocation9 + $0x230] sm:$0xff]  ;;  %v4810_v49 = vpack.c.bf16 %v404_v40, %v372_v39  ;;  %v661_v19 = vld [vmem:[#allocation9 + $0xb28] sm:$0xff]  ;;  %v724_v39 = vld [vmem:[#allocation9 + $0xd20] sm:$0xff] }
  0xdd   :  { %4789 = vmatprep.subr.bf16.mxu1 %v4788_v45  ;;  %v406_v42 = vld [vmem:[#allocation9 + $0x330] sm:$0xff]  ;;  %v4872_v45 = vpack.c.bf16 %v407_v35, %v375_v34  ;;  %v4824_v26 = vpack.c.bf16 %v661_v19, %v629_v18  ;;  %v693_v30 = vld [vmem:[#allocation9 + $0xc28] sm:$0xff]  ;;  %v727_v34 = vld [vmem:[#allocation9 + $0xd38] sm:$0xff] }
  0xde   :  { %v759_v46 = vld [vmem:[#allocation9 + $0xe38] sm:$0xff]  ;;  %v853_v57 = vld [vmem:[#allocation9 + $0x1128] sm:$0xff] }
  0xdf   :  { %4731 = vmatpush1.bf16.msra.mxu0 %v4730_v50  ;;  %v4874_v50 = vpack.c.bf16 %v406_v42, %v374_v41  ;;  %v4892_v41 = vpack.c.bf16 %v727_v34, %v695_v33  ;;  %v694_v42 = vld [vmem:[#allocation9 + $0xc30] sm:$0xff]  ;;  %v791_v47 = vld [vmem:[#allocation9 + $0xf38] sm:$0xff]  ;;  %v917_v6 = vld [vmem:[#allocation9 + $0x1328] sm:$0xff] }
  0xe0   :  { %4791 = vmatpush1.bf16.msra.mxu1 %v4790_v51  ;;  %4733 = vmatprep.subr.bf16.mxu0 %v4732_v59  ;;  %v436_v51 = vld [vmem:[#allocation9 + $0x420] sm:$0xff]  ;;  %v503_v59 = vld [vmem:[#allocation9 + $0x638] sm:$0xff]  ;;  %v981_v18 = vld [vmem:[#allocation9 + $0x1528] sm:$0xff] }
  0xe1   :  { %4793 = vmatprep.subr.bf16.mxu1 %v4792_v52  ;;  %v468_v52 = vld [vmem:[#allocation9 + $0x520] sm:$0xff]  ;;  %v4880_v3 = vpack.c.bf16 %v535_v60, %v503_v59  ;;  %v823_v58 = vld [vmem:[#allocation9 + $0x1038] sm:$0xff] }
  0xe2   :  { %v4814_v61 = vpack.c.bf16 %v468_v52, %v436_v51  ;;  %v788_v51 = vld [vmem:[#allocation9 + $0xf20] sm:$0xff]  ;;  %v855_v59 = vld [vmem:[#allocation9 + $0x1138] sm:$0xff] }
  0xe3   :  { %4735 = vmatpush1.bf16.msra.mxu0 %v4734_v1  ;;  %v532_v1 = vld [vmem:[#allocation9 + $0x720] sm:$0xff]  ;;  %v887_v7 = vld [vmem:[#allocation9 + $0x1238] sm:$0xff] }
  0xe4   :  { %4795 = vmatpush1.bf16.msra.mxu1 %v4794_v55  ;;  %4737 = vmatprep.subr.bf16.mxu0 %v4736_v8  ;;  %v438_v55 = vld [vmem:[#allocation9 + $0x430] sm:$0xff]  ;;  %v567_v8 = vld [vmem:[#allocation9 + $0x838] sm:$0xff] }
  0xe5   :  { %4797 = vmatprep.subr.bf16.mxu1 %v4796_v63  ;;  %v4878_v62 = vpack.c.bf16 %v470_v56, %v438_v55  ;;  %v500_v63 = vld [vmem:[#allocation9 + $0x620] sm:$0xff]  ;;  %v4884_v15 = vpack.c.bf16 %v599_v9, %v567_v8  ;;  %v790_v55 = vld [vmem:[#allocation9 + $0xf30] sm:$0xff]  ;;  %v821_v56 = vld [vmem:[#allocation9 + $0x1028] sm:$0xff] }
  0xe6   :  { %v4818_v10 = vpack.c.bf16 %v532_v1, %v500_v63  ;;  %v852_v63 = vld [vmem:[#allocation9 + $0x1120] sm:$0xff]  ;;  %v4836_v1 = vpack.c.bf16 %v853_v57, %v821_v56  ;;  %v919_v8 = vld [vmem:[#allocation9 + $0x1338] sm:$0xff]  ;;  %v1173_v56 = vld [vmem:[#allocation9 + $0x1b28] sm:$0xff] }
  0xe7   :  { %4739 = vmatpush1.bf16.msra.mxu0 %v4738_v13  ;;  %v596_v13 = vld [vmem:[#allocation9 + $0x920] sm:$0xff]  ;;  %v951_v19 = vld [vmem:[#allocation9 + $0x1438] sm:$0xff] }
  0xe8   :  { %4799 = vmatpush1.bf16.msra.mxu1 %v4798_v4  ;;  %4805 = vmatprep.subr.bf16.mxu0 %v4804_v20  ;;  %v502_v4 = vld [vmem:[#allocation9 + $0x630] sm:$0xff]  ;;  %v631_v20 = vld [vmem:[#allocation9 + $0xa38] sm:$0xff] }
  0xe9   :  { %4801 = vmatprep.subr.bf16.mxu1 %v4800_v12  ;;  %v4882_v11 = vpack.c.bf16 %v534_v5, %v502_v4  ;;  %v564_v12 = vld [vmem:[#allocation9 + $0x820] sm:$0xff]  ;;  %v4888_v27 = vpack.c.bf16 %v663_v21, %v631_v20  ;;  %v854_v4 = vld [vmem:[#allocation9 + $0x1130] sm:$0xff]  ;;  %v885_v5 = vld [vmem:[#allocation9 + $0x1228] sm:$0xff] }
  0xea   :  { %v983_v20 = vld [vmem:[#allocation9 + $0x1538] sm:$0xff] }
  0xeb   :  { %v1047_v33 = vld [vmem:[#allocation9 + $0x1738] sm:$0xff] }
  0xec   :  { %4803 = vmatpush1.bf16.msra.mxu1 %v4802_v16  ;;  %v566_v16 = vld [vmem:[#allocation9 + $0x830] sm:$0xff]  ;;  %v1143_v57 = vld [vmem:[#allocation9 + $0x1a38] sm:$0xff] }
  0xed   :  { %4869 = vmatprep.subr.bf16.mxu1 %v4868_v22  ;;  %v4822_v22 = vpack.c.bf16 %v596_v13, %v564_v12  ;;  %v916_v12 = vld [vmem:[#allocation9 + $0x1320] sm:$0xff]  ;;  %v4840_v13 = vpack.c.bf16 %v917_v6, %v885_v5  ;;  %v1237_v5 = vld [vmem:[#allocation9 + $0x1d28] sm:$0xff]  ;;  %v1207_v6 = vld [vmem:[#allocation9 + $0x1c38] sm:$0xff] }
 0x17e   :  { %v226_v23 = vpop.f32.mrb[0].mxu1 }
 0x17f   :  { %v228_v24 = vpop.f32.mrb[1].mxu1 }
 0x182   :  { %v297_v29 = vpop.f32.mrb[2].mxu1 }
 0x183   :  { %v6869_v31 = vmax.f32 %v226_v23, %v297_v29  ;;  %v299_v32 = vpop.f32.mrb[3].mxu1  ;;  %v4886_v23 = vpack.c.bf16 %v598_v17, %v566_v16  ;;  %v662_v29 = vld [vmem:[#allocation9 + $0xb30] sm:$0xff]  ;;  %v949_v17 = vld [vmem:[#allocation9 + $0x1428] sm:$0xff] }
 0x184   :  { %v6871_v36 = vmax.f32 %v228_v24, %v299_v32  ;;  %v628_v24 = vld [vmem:[#allocation9 + $0xa20] sm:$0xff]  ;;  %v725_v32 = vld [vmem:[#allocation9 + $0xd28] sm:$0xff]  ;;  %v918_v16 = vld [vmem:[#allocation9 + $0x1330] sm:$0xff] }
 0x185   :  { %v4826_v35 = vpack.c.bf16 %v660_v25, %v628_v24  ;;  %v4828_v40 = vpack.c.bf16 %v725_v32, %v693_v30  ;;  %v980_v24 = vld [vmem:[#allocation9 + $0x1520] sm:$0xff]  ;;  %v4844_v25 = vpack.c.bf16 %v981_v18, %v949_v17  ;;  %v1045_v30 = vld [vmem:[#allocation9 + $0x1728] sm:$0xff]  ;;  %v1015_v32 = vld [vmem:[#allocation9 + $0x1638] sm:$0xff] }
 0x186   :  { %1560 = vmatprep.mubr.f32.mxu0 %v6871_v36  ;;  %1631 = vmatprep.mubr.f32.mxu1 %v6871_v36  ;;  %v1301_v17 = vld [vmem:[#allocation9 + $0x1f28] sm:$0xff]  ;;  %v1271_v18 = vld [vmem:[#allocation9 + $0x1e38] sm:$0xff] }
 0x187   :  { %1561 = vmatmul.mubr.f32.vlgmr.msra.gmra.mrb[0].mxu0 %v6869_v31  ;;  %1632 = vmatmul.mubr.f32.vlgmr.msra.gmra.mrb[4].mxu1 %v6869_v31 }
 0x188   :  { %4807 = vmatpush1.bf16.msra.mxu0 %v4806_v37  ;;  %4871 = vmatpush1.bf16.msra.mxu1 %v4870_v38  ;;  %v4890_v37 = vpack.c.bf16 %v662_v29, %v630_v28  ;;  %v692_v38 = vld [vmem:[#allocation9 + $0xc20] sm:$0xff]  ;;  %v982_v28 = vld [vmem:[#allocation9 + $0x1530] sm:$0xff]  ;;  %v1013_v29 = vld [vmem:[#allocation9 + $0x1628] sm:$0xff] }
 0x189   :  { %1702 = vmatprep.mubr.f32.mxu0 %v6871_v36  ;;  %1773 = vmatprep.mubr.f32.mxu1 %v6871_v36  ;;  %v4830_v48 = vpack.c.bf16 %v724_v39, %v692_v38  ;;  %v1044_v38 = vld [vmem:[#allocation9 + $0x1720] sm:$0xff]  ;;  %v4848_v39 = vpack.c.bf16 %v1045_v30, %v1013_v29  ;;  %v345_v29 = vld [vmem:[#allocation9 + $0x148] sm:$0xff]  ;;  %v315_v30 = vld [vmem:[#allocation9 + $0x58] sm:$0xff] }
 0x18a   :  { %4809 = vmatprep.subr.bf16.mxu0 %v4808_v44  ;;  %4873 = vmatprep.subr.bf16.mxu1 %v4872_v45  ;;  %v757_v44 = vld [vmem:[#allocation9 + $0xe28] sm:$0xff] }
 0x18b   :  { %v789_v45 = vld [vmem:[#allocation9 + $0xf28] sm:$0xff] }
 0x18c   :  { %4811 = vmatpush1.bf16.msra.mxu0 %v4810_v49  ;;  %4875 = vmatpush1.bf16.msra.mxu1 %v4874_v50  ;;  %v4894_v49 = vpack.c.bf16 %v726_v43, %v694_v42  ;;  %v756_v50 = vld [vmem:[#allocation9 + $0xe20] sm:$0xff]  ;;  %v4832_v52 = vpack.c.bf16 %v789_v45, %v757_v44  ;;  %v1046_v42 = vld [vmem:[#allocation9 + $0x1730] sm:$0xff]  ;;  %v1077_v43 = vld [vmem:[#allocation9 + $0x1828] sm:$0xff] }
 0x18d   :  { %4813 = vmatprep.subr.bf16.mxu0 %v4812_v53  ;;  %4877 = vmatprep.subr.bf16.mxu1 %v4876_v54  ;;  %v4896_v53 = vpack.c.bf16 %v791_v47, %v759_v46  ;;  %v758_v54 = vld [vmem:[#allocation9 + $0xe30] sm:$0xff]  ;;  %v4834_v60 = vpack.c.bf16 %v788_v51, %v756_v50  ;;  %v1109_v44 = vld [vmem:[#allocation9 + $0x1928] sm:$0xff]  ;;  %v1079_v45 = vld [vmem:[#allocation9 + $0x1838] sm:$0xff] }
 0x18e   :  { %v1111_v46 = vld [vmem:[#allocation9 + $0x1938] sm:$0xff]  ;;  %v1108_v50 = vld [vmem:[#allocation9 + $0x1920] sm:$0xff]  ;;  %v4852_v51 = vpack.c.bf16 %v1109_v44, %v1077_v43  ;;  %v409_v43 = vld [vmem:[#allocation9 + $0x348] sm:$0xff] }
 0x18f   :  { %v379_v44 = vld [vmem:[#allocation9 + $0x258] sm:$0xff] }
 0x190   :  { %4815 = vmatpush1.bf16.msra.mxu0 %v4814_v61  ;;  %4879 = vmatpush1.bf16.msra.mxu1 %v4878_v62  ;;  %v4898_v61 = vpack.c.bf16 %v790_v55, %v758_v54  ;;  %v820_v62 = vld [vmem:[#allocation9 + $0x1020] sm:$0xff]  ;;  %v1110_v54 = vld [vmem:[#allocation9 + $0x1930] sm:$0xff]  ;;  %v1141_v55 = vld [vmem:[#allocation9 + $0x1a28] sm:$0xff] }
 0x191   :  { %4817 = vmatprep.subr.bf16.mxu0 %v4816_v2  ;;  %4881 = vmatprep.subr.bf16.mxu1 %v4880_v3  ;;  %v4900_v2 = vpack.c.bf16 %v855_v59, %v823_v58  ;;  %v822_v3 = vld [vmem:[#allocation9 + $0x1030] sm:$0xff]  ;;  %v4838_v9 = vpack.c.bf16 %v852_v63, %v820_v62  ;;  %v1175_v58 = vld [vmem:[#allocation9 + $0x1b38] sm:$0xff]  ;;  %v1172_v62 = vld [vmem:[#allocation9 + $0x1b20] sm:$0xff]  ;;  %v4856_v63 = vpack.c.bf16 %v1173_v56, %v1141_v55 }
 0x192   :  { %v473_v55 = vld [vmem:[#allocation9 + $0x548] sm:$0xff]  ;;  %v443_v56 = vld [vmem:[#allocation9 + $0x458] sm:$0xff] }
 0x194   :  { %4819 = vmatpush1.bf16.msra.mxu0 %v4818_v10  ;;  %4883 = vmatpush1.bf16.msra.mxu1 %v4882_v11  ;;  %v4902_v10 = vpack.c.bf16 %v854_v4, %v822_v3  ;;  %v884_v11 = vld [vmem:[#allocation9 + $0x1220] sm:$0xff]  ;;  %v1174_v3 = vld [vmem:[#allocation9 + $0x1b30] sm:$0xff]  ;;  %v1205_v4 = vld [vmem:[#allocation9 + $0x1c28] sm:$0xff] }
 0x195   :  { %4821 = vmatprep.subr.bf16.mxu0 %v4820_v14  ;;  %4885 = vmatprep.subr.bf16.mxu1 %v4884_v15  ;;  %v4904_v14 = vpack.c.bf16 %v919_v8, %v887_v7  ;;  %v886_v15 = vld [vmem:[#allocation9 + $0x1230] sm:$0xff]  ;;  %v4842_v21 = vpack.c.bf16 %v916_v12, %v884_v11  ;;  %v1239_v7 = vld [vmem:[#allocation9 + $0x1d38] sm:$0xff]  ;;  %v1236_v11 = vld [vmem:[#allocation9 + $0x1d20] sm:$0xff]  ;;  %v4860_v12 = vpack.c.bf16 %v1237_v5, %v1205_v4 }
 0x196   :  { %v537_v4 = vld [vmem:[#allocation9 + $0x748] sm:$0xff]  ;;  %v507_v5 = vld [vmem:[#allocation9 + $0x658] sm:$0xff] }
 0x198   :  { %4823 = vmatpush1.bf16.msra.mxu0 %v4822_v22  ;;  %4887 = vmatpush1.bf16.msra.mxu1 %v4886_v23  ;;  %v4906_v22 = vpack.c.bf16 %v918_v16, %v886_v15  ;;  %v948_v23 = vld [vmem:[#allocation9 + $0x1420] sm:$0xff]  ;;  %v1238_v15 = vld [vmem:[#allocation9 + $0x1d30] sm:$0xff]  ;;  %v1269_v16 = vld [vmem:[#allocation9 + $0x1e28] sm:$0xff] }
 0x199   :  { %4825 = vmatprep.subr.bf16.mxu0 %v4824_v26  ;;  %4889 = vmatprep.subr.bf16.mxu1 %v4888_v27  ;;  %v4908_v26 = vpack.c.bf16 %v983_v20, %v951_v19  ;;  %v950_v27 = vld [vmem:[#allocation9 + $0x1430] sm:$0xff]  ;;  %v4846_v34 = vpack.c.bf16 %v980_v24, %v948_v23  ;;  %v1303_v19 = vld [vmem:[#allocation9 + $0x1f38] sm:$0xff]  ;;  %v1300_v23 = vld [vmem:[#allocation9 + $0x1f20] sm:$0xff]  ;;  %v4864_v24 = vpack.c.bf16 %v1301_v17, %v1269_v16 }
 0x19a   :  { %v601_v16 = vld [vmem:[#allocation9 + $0x948] sm:$0xff]  ;;  %v571_v17 = vld [vmem:[#allocation9 + $0x858] sm:$0xff] }
 0x19c   :  { %4827 = vmatpush1.bf16.msra.mxu0 %v4826_v35  ;;  %4891 = vmatpush1.bf16.msra.mxu1 %v4890_v37  ;;  %v4910_v35 = vpack.c.bf16 %v982_v28, %v950_v27  ;;  %v1012_v37 = vld [vmem:[#allocation9 + $0x1620] sm:$0xff]  ;;  %v1302_v27 = vld [vmem:[#allocation9 + $0x1f30] sm:$0xff]  ;;  %v313_v28 = vld [vmem:[#allocation9 + $0x48] sm:$0xff] }
 0x19d   :  { %4829 = vmatprep.subr.bf16.mxu0 %v4828_v40  ;;  %4893 = vmatprep.subr.bf16.mxu1 %v4892_v41  ;;  %v4912_v40 = vpack.c.bf16 %v1047_v33, %v1015_v32  ;;  %v1014_v41 = vld [vmem:[#allocation9 + $0x1630] sm:$0xff]  ;;  %v4850_v47 = vpack.c.bf16 %v1044_v38, %v1012_v37  ;;  %v347_v32 = vld [vmem:[#allocation9 + $0x158] sm:$0xff]  ;;  %v312_v38 = vld [vmem:[#allocation9 + $0x40] sm:$0xff] }
 0x19e   :  { %v4996_v37 = vpack.c.bf16 %v347_v32, %v315_v30  ;;  %v667_v30 = vld [vmem:[#allocation9 + $0xb58] sm:$0xff] }
 0x1a0   :  { %4831 = vmatpush1.bf16.msra.mxu0 %v4830_v48  ;;  %4895 = vmatpush1.bf16.msra.mxu1 %v4894_v49  ;;  %v4914_v48 = vpack.c.bf16 %v1046_v42, %v1014_v41  ;;  %v1076_v49 = vld [vmem:[#allocation9 + $0x1820] sm:$0xff]  ;;  %v346_v41 = vld [vmem:[#allocation9 + $0x150] sm:$0xff]  ;;  %v377_v42 = vld [vmem:[#allocation9 + $0x248] sm:$0xff] }
 0x1a1   :  { %4833 = vmatprep.subr.bf16.mxu0 %v4832_v52  ;;  %4897 = vmatprep.subr.bf16.mxu1 %v4896_v53  ;;  %v4916_v52 = vpack.c.bf16 %v1111_v46, %v1079_v45  ;;  %v1078_v53 = vld [vmem:[#allocation9 + $0x1830] sm:$0xff]  ;;  %v4854_v59 = vpack.c.bf16 %v1108_v50, %v1076_v49  ;;  %v411_v45 = vld [vmem:[#allocation9 + $0x358] sm:$0xff]  ;;  %v408_v49 = vld [vmem:[#allocation9 + $0x340] sm:$0xff] }
 0x1a2   :  { %v378_v50 = vld [vmem:[#allocation9 + $0x250] sm:$0xff] }
 0x1a4   :  { %4835 = vmatpush1.bf16.msra.mxu0 %v4834_v60  ;;  %4899 = vmatpush1.bf16.msra.mxu1 %v4898_v61  ;;  %v4918_v60 = vpack.c.bf16 %v1110_v54, %v1078_v53  ;;  %v1140_v61 = vld [vmem:[#allocation9 + $0x1a20] sm:$0xff]  ;;  %v410_v53 = vld [vmem:[#allocation9 + $0x350] sm:$0xff]  ;;  %v441_v54 = vld [vmem:[#allocation9 + $0x448] sm:$0xff] }
 0x1a5   :  { %4837 = vmatprep.subr.bf16.mxu0 %v4836_v1  ;;  %4901 = vmatprep.subr.bf16.mxu1 %v4900_v2  ;;  %v4920_v1 = vpack.c.bf16 %v1175_v58, %v1143_v57  ;;  %v1142_v2 = vld [vmem:[#allocation9 + $0x1a30] sm:$0xff]  ;;  %v4858_v8 = vpack.c.bf16 %v1172_v62, %v1140_v61  ;;  %v475_v57 = vld [vmem:[#allocation9 + $0x558] sm:$0xff]  ;;  %v440_v61 = vld [vmem:[#allocation9 + $0x440] sm:$0xff] }
 0x1a6   :  { %v472_v62 = vld [vmem:[#allocation9 + $0x540] sm:$0xff] }
 0x1a8   :  { %4839 = vmatpush1.bf16.msra.mxu0 %v4838_v9  ;;  %4903 = vmatpush1.bf16.msra.mxu1 %v4902_v10  ;;  %v4922_v9 = vpack.c.bf16 %v1174_v3, %v1142_v2  ;;  %v1204_v10 = vld [vmem:[#allocation9 + $0x1c20] sm:$0xff]  ;;  %v474_v2 = vld [vmem:[#allocation9 + $0x550] sm:$0xff]  ;;  %v505_v3 = vld [vmem:[#allocation9 + $0x648] sm:$0xff] }
 0x1a9   :  { %4841 = vmatprep.subr.bf16.mxu0 %v4840_v13  ;;  %4905 = vmatprep.subr.bf16.mxu1 %v4904_v14  ;;  %v4924_v13 = vpack.c.bf16 %v1239_v7, %v1207_v6  ;;  %v1206_v14 = vld [vmem:[#allocation9 + $0x1c30] sm:$0xff]  ;;  %v4862_v20 = vpack.c.bf16 %v1236_v11, %v1204_v10  ;;  %v539_v6 = vld [vmem:[#allocation9 + $0x758] sm:$0xff]  ;;  %v4942_v7 = vpack.c.bf16 %v472_v62, %v440_v61  ;;  %v504_v10 = vld [vmem:[#allocation9 + $0x640] sm:$0xff] }
 0x1aa   :  { %v536_v11 = vld [vmem:[#allocation9 + $0x740] sm:$0xff]  ;;  %v762_v62 = vld [vmem:[#allocation9 + $0xe50] sm:$0xff] }
 0x1ab   :  { %v792_v61 = vld [vmem:[#allocation9 + $0xf40] sm:$0xff] }
 0x1ac   :  { %4843 = vmatpush1.bf16.msra.mxu0 %v4842_v21  ;;  %4907 = vmatpush1.bf16.msra.mxu1 %v4906_v22  ;;  %v4926_v21 = vpack.c.bf16 %v1238_v15, %v1206_v14  ;;  %v1268_v22 = vld [vmem:[#allocation9 + $0x1e20] sm:$0xff]  ;;  %v538_v14 = vld [vmem:[#allocation9 + $0x750] sm:$0xff]  ;;  %v569_v15 = vld [vmem:[#allocation9 + $0x848] sm:$0xff] }
 0x1ad   :  { %4845 = vmatprep.subr.bf16.mxu0 %v4844_v25  ;;  %4909 = vmatprep.subr.bf16.mxu1 %v4908_v26  ;;  %v4928_v25 = vpack.c.bf16 %v1303_v19, %v1271_v18  ;;  %v1270_v26 = vld [vmem:[#allocation9 + $0x1e30] sm:$0xff]  ;;  %v4866_v33 = vpack.c.bf16 %v1300_v23, %v1268_v22  ;;  %v603_v18 = vld [vmem:[#allocation9 + $0x958] sm:$0xff]  ;;  %v4946_v19 = vpack.c.bf16 %v536_v11, %v504_v10  ;;  %v568_v22 = vld [vmem:[#allocation9 + $0x840] sm:$0xff] }
 0x1ae   :  { %v600_v23 = vld [vmem:[#allocation9 + $0x940] sm:$0xff]  ;;  %v826_v11 = vld [vmem:[#allocation9 + $0x1050] sm:$0xff] }
 0x1af   :  { %v4950_v32 = vpack.c.bf16 %v600_v23, %v568_v22  ;;  %v856_v10 = vld [vmem:[#allocation9 + $0x1140] sm:$0xff]  ;;  %v890_v23 = vld [vmem:[#allocation9 + $0x1250] sm:$0xff] }
 0x1b0   :  { %4847 = vmatpush1.bf16.msra.mxu0 %v4846_v34  ;;  %4911 = vmatpush1.bf16.msra.mxu1 %v4910_v35  ;;  %v4930_v34 = vpack.c.bf16 %v1302_v27, %v1270_v26  ;;  %v4932_v35 = vpack.c.bf16 %v345_v29, %v313_v28  ;;  %v602_v26 = vld [vmem:[#allocation9 + $0x950] sm:$0xff]  ;;  %v633_v27 = vld [vmem:[#allocation9 + $0xa48] sm:$0xff]  ;;  %v635_v29 = vld [vmem:[#allocation9 + $0xa58] sm:$0xff] }
 0x1b1   :  { %4849 = vmatprep.subr.bf16.mxu0 %v4848_v39  ;;  %4913 = vmatprep.subr.bf16.mxu1 %v4912_v40  ;;  %v344_v39 = vld [vmem:[#allocation9 + $0x140] sm:$0xff]  ;;  %v314_v40 = vld [vmem:[#allocation9 + $0x50] sm:$0xff]  ;;  %v665_v28 = vld [vmem:[#allocation9 + $0xb48] sm:$0xff] }
 0x1b2   :  { %v4934_v46 = vpack.c.bf16 %v344_v39, %v312_v38  ;;  %v634_v38 = vld [vmem:[#allocation9 + $0xa50] sm:$0xff]  ;;  %v5016_v39 = vpack.c.bf16 %v667_v30, %v635_v29  ;;  %v920_v22 = vld [vmem:[#allocation9 + $0x1340] sm:$0xff]  ;;  %v987_v29 = vld [vmem:[#allocation9 + $0x1558] sm:$0xff] }
 0x1b4   :  { %4851 = vmatpush1.bf16.msra.mxu0 %v4850_v47  ;;  %4915 = vmatpush1.bf16.msra.mxu1 %v4914_v48  ;;  %v4998_v47 = vpack.c.bf16 %v346_v41, %v314_v40  ;;  %v376_v48 = vld [vmem:[#allocation9 + $0x240] sm:$0xff]  ;;  %v666_v40 = vld [vmem:[#allocation9 + $0xb50] sm:$0xff]  ;;  %v697_v41 = vld [vmem:[#allocation9 + $0xc48] sm:$0xff] }
 0x1b5   :  { %4853 = vmatprep.subr.bf16.mxu0 %v4852_v51  ;;  %4917 = vmatprep.subr.bf16.mxu1 %v4916_v52  ;;  %v4936_v51 = vpack.c.bf16 %v409_v43, %v377_v42  ;;  %v5000_v52 = vpack.c.bf16 %v411_v45, %v379_v44  ;;  %v4938_v58 = vpack.c.bf16 %v408_v49, %v376_v48  ;;  %v729_v42 = vld [vmem:[#allocation9 + $0xd48] sm:$0xff]  ;;  %v699_v43 = vld [vmem:[#allocation9 + $0xc58] sm:$0xff]  ;;  %v696_v48 = vld [vmem:[#allocation9 + $0xc40] sm:$0xff] }
 0x1b6   :  { %v731_v44 = vld [vmem:[#allocation9 + $0xd58] sm:$0xff]  ;;  %v728_v49 = vld [vmem:[#allocation9 + $0xd40] sm:$0xff] }
 0x1b8   :  { %4855 = vmatpush1.bf16.msra.mxu0 %v4854_v59  ;;  %4919 = vmatpush1.bf16.msra.mxu1 %v4918_v60  ;;  %v5002_v59 = vpack.c.bf16 %v410_v53, %v378_v50  ;;  %v4940_v60 = vpack.c.bf16 %v473_v55, %v441_v54  ;;  %v698_v50 = vld [vmem:[#allocation9 + $0xc50] sm:$0xff]  ;;  %v761_v53 = vld [vmem:[#allocation9 + $0xe48] sm:$0xff]  ;;  %v763_v55 = vld [vmem:[#allocation9 + $0xe58] sm:$0xff] }
 0x1b9   :  { %4857 = vmatprep.subr.bf16.mxu0 %v4856_v63  ;;  %4921 = vmatprep.subr.bf16.mxu1 %v4920_v1  ;;  %v442_v63 = vld [vmem:[#allocation9 + $0x450] sm:$0xff]  ;;  %v5004_v1 = vpack.c.bf16 %v475_v57, %v443_v56  ;;  %v793_v54 = vld [vmem:[#allocation9 + $0xf48] sm:$0xff]  ;;  %v795_v56 = vld [vmem:[#allocation9 + $0xf58] sm:$0xff]  ;;  %v4958_v57 = vpack.c.bf16 %v728_v49, %v696_v48 }
 0x1ba   :  { %v1048_v48 = vld [vmem:[#allocation9 + $0x1740] sm:$0xff]  ;;  %v1018_v49 = vld [vmem:[#allocation9 + $0x1650] sm:$0xff] }
 0x1bc   :  { %4859 = vmatpush1.bf16.msra.mxu0 %v4858_v8  ;;  %4923 = vmatpush1.bf16.msra.mxu1 %v4922_v9  ;;  %v5006_v8 = vpack.c.bf16 %v474_v2, %v442_v63  ;;  %v4944_v9 = vpack.c.bf16 %v537_v4, %v505_v3  ;;  %v5024_v63 = vpack.c.bf16 %v795_v56, %v763_v55  ;;  %v825_v2 = vld [vmem:[#allocation9 + $0x1048] sm:$0xff]  ;;  %v827_v4 = vld [vmem:[#allocation9 + $0x1058] sm:$0xff] }
 0x1bd   :  { %4861 = vmatprep.subr.bf16.mxu0 %v4860_v12  ;;  %4925 = vmatprep.subr.bf16.mxu1 %v4924_v13  ;;  %v506_v12 = vld [vmem:[#allocation9 + $0x650] sm:$0xff]  ;;  %v5008_v13 = vpack.c.bf16 %v539_v6, %v507_v5  ;;  %v857_v3 = vld [vmem:[#allocation9 + $0x1148] sm:$0xff]  ;;  %v859_v5 = vld [vmem:[#allocation9 + $0x1158] sm:$0xff] }
 0x1be   :  { %v1115_v55 = vld [vmem:[#allocation9 + $0x1958] sm:$0xff] }
 0x1c0   :  { %4863 = vmatpush1.bf16.msra.mxu0 %v4862_v20  ;;  %4927 = vmatpush1.bf16.msra.mxu1 %v4926_v21  ;;  %v5010_v20 = vpack.c.bf16 %v538_v14, %v506_v12  ;;  %v4948_v21 = vpack.c.bf16 %v601_v16, %v569_v15  ;;  %v5028_v12 = vpack.c.bf16 %v859_v5, %v827_v4  ;;  %v889_v14 = vld [vmem:[#allocation9 + $0x1248] sm:$0xff]  ;;  %v891_v16 = vld [vmem:[#allocation9 + $0x1258] sm:$0xff] }
 0x1c1   :  { %4865 = vmatprep.subr.bf16.mxu0 %v4864_v24  ;;  %4929 = vmatprep.subr.bf16.mxu1 %v4928_v25  ;;  %v570_v24 = vld [vmem:[#allocation9 + $0x850] sm:$0xff]  ;;  %v5012_v25 = vpack.c.bf16 %v603_v18, %v571_v17  ;;  %v921_v15 = vld [vmem:[#allocation9 + $0x1348] sm:$0xff]  ;;  %v923_v17 = vld [vmem:[#allocation9 + $0x1358] sm:$0xff] }
 0x1c2   :  { %v1179_v4 = vld [vmem:[#allocation9 + $0x1b58] sm:$0xff] }
 0x1c4   :  { %4867 = vmatpush1.bf16.msra.mxu0 %v4866_v33  ;;  %4931 = vmatpush1.bf16.msra.mxu1 %v4930_v34  ;;  %v5014_v33 = vpack.c.bf16 %v602_v26, %v570_v24  ;;  %v4952_v34 = vpack.c.bf16 %v665_v28, %v633_v27  ;;  %v5032_v24 = vpack.c.bf16 %v923_v17, %v891_v16  ;;  %v953_v26 = vld [vmem:[#allocation9 + $0x1448] sm:$0xff]  ;;  %v955_v28 = vld [vmem:[#allocation9 + $0x1458] sm:$0xff] }
 0x1c5   :  { %4933 = vmatprep.subr.bf16.mxu0 %v4932_v35  ;;  %4997 = vmatprep.subr.bf16.mxu1 %v4996_v37  ;;  %v632_v35 = vld [vmem:[#allocation9 + $0xa40] sm:$0xff]  ;;  %v985_v27 = vld [vmem:[#allocation9 + $0x1548] sm:$0xff]  ;;  %v1243_v16 = vld [vmem:[#allocation9 + $0x1d58] sm:$0xff] }
 0x1c6   :  { %v664_v37 = vld [vmem:[#allocation9 + $0xb40] sm:$0xff] }
 0x1c7   :  { %1703 = vmatmul.mubr.f32.vlgmr.msra.gmra.mrb[2].mxu0 %v6869_v31  ;;  %1774 = vmatmul.mubr.f32.vlgmr.msra.gmra.mrb[6].mxu1 %v6869_v31  ;;  %v4954_v45 = vpack.c.bf16 %v664_v37, %v632_v35  ;;  %v984_v35 = vld [vmem:[#allocation9 + $0x1540] sm:$0xff]  ;;  %v954_v37 = vld [vmem:[#allocation9 + $0x1450] sm:$0xff] }
 0x1c8   :  { %4935 = vmatpush1.bf16.msra.mxu0 %v4934_v46  ;;  %1844 = vmatprep.mubr.f32.mxu0 %v6871_v36  ;;  %v5018_v46 = vpack.c.bf16 %v666_v40, %v634_v38  ;;  %v5036_v38 = vpack.c.bf16 %v987_v29, %v955_v28  ;;  %v1017_v40 = vld [vmem:[#allocation9 + $0x1648] sm:$0xff]  ;;  %v1307_v28 = vld [vmem:[#allocation9 + $0x1f58] sm:$0xff] }
 0x1c9   :  { %4999 = vmatpush1.bf16.msra.mxu1 %v4998_v47  ;;  %1915 = vmatprep.mubr.f32.mxu1 %v6871_v36  ;;  %v4956_v47 = vpack.c.bf16 %v729_v42, %v697_v41  ;;  %v1049_v41 = vld [vmem:[#allocation9 + $0x1748] sm:$0xff]  ;;  %v1019_v42 = vld [vmem:[#allocation9 + $0x1658] sm:$0xff] }
 0x1ca   :  { %4937 = vmatprep.subr.bf16.mxu0 %v4936_v51  ;;  %5001 = vmatprep.subr.bf16.mxu1 %v5000_v52  ;;  %v5020_v51 = vpack.c.bf16 %v731_v44, %v699_v43  ;;  %v730_v52 = vld [vmem:[#allocation9 + $0xd50] sm:$0xff]  ;;  %v1051_v43 = vld [vmem:[#allocation9 + $0x1758] sm:$0xff] }
 0x1cc   :  { %4939 = vmatpush1.bf16.msra.mxu0 %v4938_v58  ;;  %v5022_v58 = vpack.c.bf16 %v730_v52, %v698_v50  ;;  %v5040_v50 = vpack.c.bf16 %v1051_v43, %v1019_v42  ;;  %v1081_v52 = vld [vmem:[#allocation9 + $0x1848] sm:$0xff]  ;;  %v351_v42 = vld [vmem:[#allocation9 + $0x178] sm:$0xff] }
 0x1cd   :  { %5003 = vmatpush1.bf16.msra.mxu1 %v5002_v59  ;;  %4941 = vmatprep.subr.bf16.mxu0 %v4940_v60  ;;  %v4960_v59 = vpack.c.bf16 %v793_v54, %v761_v53  ;;  %v760_v60 = vld [vmem:[#allocation9 + $0xe40] sm:$0xff]  ;;  %v1113_v53 = vld [vmem:[#allocation9 + $0x1948] sm:$0xff]  ;;  %v1083_v54 = vld [vmem:[#allocation9 + $0x1858] sm:$0xff] }
 0x1ce   :  { %5005 = vmatprep.subr.bf16.mxu1 %v5004_v1  ;;  %v794_v1 = vld [vmem:[#allocation9 + $0xf50] sm:$0xff]  ;;  %v4962_v6 = vpack.c.bf16 %v792_v61, %v760_v60  ;;  %v1112_v60 = vld [vmem:[#allocation9 + $0x1940] sm:$0xff] }
 0x1cf   :  { %v1082_v61 = vld [vmem:[#allocation9 + $0x1850] sm:$0xff] }
 0x1d0   :  { %4943 = vmatpush1.bf16.msra.mxu0 %v4942_v7  ;;  %v5026_v7 = vpack.c.bf16 %v794_v1, %v762_v62  ;;  %v5044_v62 = vpack.c.bf16 %v1115_v55, %v1083_v54  ;;  %v1145_v1 = vld [vmem:[#allocation9 + $0x1a48] sm:$0xff]  ;;  %v383_v54 = vld [vmem:[#allocation9 + $0x278] sm:$0xff] }
 0x1d1   :  { %5007 = vmatpush1.bf16.msra.mxu1 %v5006_v8  ;;  %4945 = vmatprep.subr.bf16.mxu0 %v4944_v9  ;;  %v4964_v8 = vpack.c.bf16 %v857_v3, %v825_v2  ;;  %v824_v9 = vld [vmem:[#allocation9 + $0x1040] sm:$0xff]  ;;  %v1177_v2 = vld [vmem:[#allocation9 + $0x1b48] sm:$0xff]  ;;  %v1147_v3 = vld [vmem:[#allocation9 + $0x1a58] sm:$0xff] }
 0x1d2   :  { %5009 = vmatprep.subr.bf16.mxu1 %v5008_v13  ;;  %v858_v13 = vld [vmem:[#allocation9 + $0x1150] sm:$0xff]  ;;  %v4966_v18 = vpack.c.bf16 %v856_v10, %v824_v9  ;;  %v1176_v9 = vld [vmem:[#allocation9 + $0x1b40] sm:$0xff]  ;;  %v415_v55 = vld [vmem:[#allocation9 + $0x378] sm:$0xff] }
 0x1d3   :  { %v1146_v10 = vld [vmem:[#allocation9 + $0x1a50] sm:$0xff] }
 0x1d4   :  { %4947 = vmatpush1.bf16.msra.mxu0 %v4946_v19  ;;  %v5030_v19 = vpack.c.bf16 %v858_v13, %v826_v11  ;;  %v5048_v11 = vpack.c.bf16 %v1179_v4, %v1147_v3  ;;  %v1209_v13 = vld [vmem:[#allocation9 + $0x1c48] sm:$0xff]  ;;  %v479_v3 = vld [vmem:[#allocation9 + $0x578] sm:$0xff] }
 0x1d5   :  { %5011 = vmatpush1.bf16.msra.mxu1 %v5010_v20  ;;  %4949 = vmatprep.subr.bf16.mxu0 %v4948_v21  ;;  %v4968_v20 = vpack.c.bf16 %v921_v15, %v889_v14  ;;  %v888_v21 = vld [vmem:[#allocation9 + $0x1240] sm:$0xff]  ;;  %v1241_v14 = vld [vmem:[#allocation9 + $0x1d48] sm:$0xff]  ;;  %v1211_v15 = vld [vmem:[#allocation9 + $0x1c58] sm:$0xff] }
 0x1d6   :  { %5013 = vmatprep.subr.bf16.mxu1 %v5012_v25  ;;  %v922_v25 = vld [vmem:[#allocation9 + $0x1350] sm:$0xff]  ;;  %v4970_v30 = vpack.c.bf16 %v920_v22, %v888_v21  ;;  %v1240_v21 = vld [vmem:[#allocation9 + $0x1d40] sm:$0xff] }
 0x1d7   :  { %v1210_v22 = vld [vmem:[#allocation9 + $0x1c50] sm:$0xff] }
 0x1d8   :  { %4951 = vmatpush1.bf16.msra.mxu0 %v4950_v32  ;;  %v5034_v32 = vpack.c.bf16 %v922_v25, %v890_v23  ;;  %v5052_v23 = vpack.c.bf16 %v1243_v16, %v1211_v15  ;;  %v1273_v25 = vld [vmem:[#allocation9 + $0x1e48] sm:$0xff]  ;;  %v543_v15 = vld [vmem:[#allocation9 + $0x778] sm:$0xff] }
 0x1d9   :  { %5015 = vmatpush1.bf16.msra.mxu1 %v5014_v33  ;;  %4953 = vmatprep.subr.bf16.mxu0 %v4952_v34  ;;  %v4972_v33 = vpack.c.bf16 %v985_v27, %v953_v26  ;;  %v952_v34 = vld [vmem:[#allocation9 + $0x1440] sm:$0xff]  ;;  %v1305_v26 = vld [vmem:[#allocation9 + $0x1f48] sm:$0xff]  ;;  %v1275_v27 = vld [vmem:[#allocation9 + $0x1e58] sm:$0xff] }
 0x1da   :  { %5017 = vmatprep.subr.bf16.mxu1 %v5016_v39  ;;  %v986_v39 = vld [vmem:[#allocation9 + $0x1550] sm:$0xff]  ;;  %v4974_v44 = vpack.c.bf16 %v984_v35, %v952_v34  ;;  %v1304_v34 = vld [vmem:[#allocation9 + $0x1f40] sm:$0xff] }
 0x1db   :  { %v1274_v35 = vld [vmem:[#allocation9 + $0x1e50] sm:$0xff] }
 0x1dc   :  { %4955 = vmatpush1.bf16.msra.mxu0 %v4954_v45  ;;  %v5038_v45 = vpack.c.bf16 %v986_v39, %v954_v37  ;;  %v5056_v37 = vpack.c.bf16 %v1307_v28, %v1275_v27  ;;  %v317_v39 = vld [vmem:[#allocation9 + $0x68] sm:$0xff]  ;;  %v607_v27 = vld [vmem:[#allocation9 + $0x978] sm:$0xff] }
 0x1dd   :  { %5019 = vmatpush1.bf16.msra.mxu1 %v5018_v46  ;;  %4957 = vmatprep.subr.bf16.mxu0 %v4956_v47  ;;  %v4976_v46 = vpack.c.bf16 %v1049_v41, %v1017_v40  ;;  %v1016_v47 = vld [vmem:[#allocation9 + $0x1640] sm:$0xff]  ;;  %v349_v40 = vld [vmem:[#allocation9 + $0x168] sm:$0xff]  ;;  %v319_v41 = vld [vmem:[#allocation9 + $0x78] sm:$0xff] }
 0x1de   :  { %5021 = vmatprep.subr.bf16.mxu1 %v5020_v51  ;;  %v1050_v51 = vld [vmem:[#allocation9 + $0x1750] sm:$0xff]  ;;  %v4978_v56 = vpack.c.bf16 %v1048_v48, %v1016_v47  ;;  %v348_v47 = vld [vmem:[#allocation9 + $0x160] sm:$0xff]  ;;  %v5124_v48 = vpack.c.bf16 %v351_v42, %v319_v41  ;;  %v671_v41 = vld [vmem:[#allocation9 + $0xb78] sm:$0xff] }
 0x1e0   :  { %4959 = vmatpush1.bf16.msra.mxu0 %v4958_v57  ;;  %v5042_v57 = vpack.c.bf16 %v1050_v51, %v1018_v49  ;;  %v318_v49 = vld [vmem:[#allocation9 + $0x70] sm:$0xff]  ;;  %v381_v51 = vld [vmem:[#allocation9 + $0x268] sm:$0xff] }
 0x1e1   :  { %5023 = vmatpush1.bf16.msra.mxu1 %v5022_v58  ;;  %4961 = vmatprep.subr.bf16.mxu0 %v4960_v59  ;;  %v4980_v58 = vpack.c.bf16 %v1113_v53, %v1081_v52  ;;  %v1080_v59 = vld [vmem:[#allocation9 + $0x1840] sm:$0xff]  ;;  %v413_v52 = vld [vmem:[#allocation9 + $0x368] sm:$0xff] }
 0x1e2   :  { %5025 = vmatprep.subr.bf16.mxu1 %v5024_v63  ;;  %v1114_v63 = vld [vmem:[#allocation9 + $0x1950] sm:$0xff]  ;;  %v4982_v5 = vpack.c.bf16 %v1112_v60, %v1080_v59  ;;  %v5064_v60 = vpack.c.bf16 %v413_v52, %v381_v51  ;;  %v733_v51 = vld [vmem:[#allocation9 + $0xd68] sm:$0xff]  ;;  %v703_v52 = vld [vmem:[#allocation9 + $0xc78] sm:$0xff] }
 0x1e3   :  { %v382_v59 = vld [vmem:[#allocation9 + $0x270] sm:$0xff] }
 0x1e4   :  { %4963 = vmatpush1.bf16.msra.mxu0 %v4962_v6  ;;  %v5046_v6 = vpack.c.bf16 %v1114_v63, %v1082_v61  ;;  %v414_v61 = vld [vmem:[#allocation9 + $0x370] sm:$0xff]  ;;  %v477_v63 = vld [vmem:[#allocation9 + $0x568] sm:$0xff] }
 0x1e5   :  { %5027 = vmatpush1.bf16.msra.mxu1 %v5026_v7  ;;  %4965 = vmatprep.subr.bf16.mxu0 %v4964_v8  ;;  %v4984_v7 = vpack.c.bf16 %v1177_v2, %v1145_v1  ;;  %v1144_v8 = vld [vmem:[#allocation9 + $0x1a40] sm:$0xff]  ;;  %v5128_v1 = vpack.c.bf16 %v415_v55, %v383_v54  ;;  %v447_v2 = vld [vmem:[#allocation9 + $0x478] sm:$0xff] }
 0x1e6   :  { %5029 = vmatprep.subr.bf16.mxu1 %v5028_v12  ;;  %v1178_v12 = vld [vmem:[#allocation9 + $0x1b50] sm:$0xff]  ;;  %v4986_v17 = vpack.c.bf16 %v1176_v9, %v1144_v8  ;;  %v476_v8 = vld [vmem:[#allocation9 + $0x560] sm:$0xff] }
 0x1e7   :  { %v446_v9 = vld [vmem:[#allocation9 + $0x470] sm:$0xff] }
 0x1e8   :  { %4967 = vmatpush1.bf16.msra.mxu0 %v4966_v18  ;;  %v5050_v18 = vpack.c.bf16 %v1178_v12, %v1146_v10  ;;  %v5132_v10 = vpack.c.bf16 %v479_v3, %v447_v2  ;;  %v509_v12 = vld [vmem:[#allocation9 + $0x668] sm:$0xff]  ;;  %v799_v2 = vld [vmem:[#allocation9 + $0xf78] sm:$0xff] }
 0x1e9   :  { %5031 = vmatpush1.bf16.msra.mxu1 %v5030_v19  ;;  %4969 = vmatprep.subr.bf16.mxu0 %v4968_v20  ;;  %v4988_v19 = vpack.c.bf16 %v1241_v14, %v1209_v13  ;;  %v1208_v20 = vld [vmem:[#allocation9 + $0x1c40] sm:$0xff]  ;;  %v541_v13 = vld [vmem:[#allocation9 + $0x768] sm:$0xff]  ;;  %v511_v14 = vld [vmem:[#allocation9 + $0x678] sm:$0xff] }
 0x1ea   :  { %5033 = vmatprep.subr.bf16.mxu1 %v5032_v24  ;;  %v1242_v24 = vld [vmem:[#allocation9 + $0x1d50] sm:$0xff]  ;;  %v4990_v29 = vpack.c.bf16 %v1240_v21, %v1208_v20  ;;  %v540_v20 = vld [vmem:[#allocation9 + $0x760] sm:$0xff] }
 0x1eb   :  { %v510_v21 = vld [vmem:[#allocation9 + $0x670] sm:$0xff] }
 0x1ec   :  { %4971 = vmatpush1.bf16.msra.mxu0 %v4970_v30  ;;  %v5054_v30 = vpack.c.bf16 %v1242_v24, %v1210_v22  ;;  %v5136_v22 = vpack.c.bf16 %v543_v15, %v511_v14  ;;  %v573_v24 = vld [vmem:[#allocation9 + $0x868] sm:$0xff]  ;;  %v863_v14 = vld [vmem:[#allocation9 + $0x1178] sm:$0xff] }
 0x1ed   :  { %5035 = vmatpush1.bf16.msra.mxu1 %v5034_v32  ;;  %4973 = vmatprep.subr.bf16.mxu0 %v4972_v33  ;;  %v4992_v32 = vpack.c.bf16 %v1305_v26, %v1273_v25  ;;  %v1272_v33 = vld [vmem:[#allocation9 + $0x1e40] sm:$0xff]  ;;  %v605_v25 = vld [vmem:[#allocation9 + $0x968] sm:$0xff]  ;;  %v575_v26 = vld [vmem:[#allocation9 + $0x878] sm:$0xff] }
 0x1ee   :  { %5037 = vmatprep.subr.bf16.mxu1 %v5036_v38  ;;  %v1306_v38 = vld [vmem:[#allocation9 + $0x1f50] sm:$0xff]  ;;  %v4994_v43 = vpack.c.bf16 %v1304_v34, %v1272_v33  ;;  %v604_v33 = vld [vmem:[#allocation9 + $0x960] sm:$0xff] }
 0x1ef   :  { %v574_v34 = vld [vmem:[#allocation9 + $0x870] sm:$0xff] }
 0x1f0   :  { %4975 = vmatpush1.bf16.msra.mxu0 %v4974_v44  ;;  %v5058_v44 = vpack.c.bf16 %v1306_v38, %v1274_v35  ;;  %v5140_v35 = vpack.c.bf16 %v607_v27, %v575_v26  ;;  %v637_v38 = vld [vmem:[#allocation9 + $0xa68] sm:$0xff]  ;;  %v927_v26 = vld [vmem:[#allocation9 + $0x1378] sm:$0xff] }
 0x1f1   :  { %5039 = vmatpush1.bf16.msra.mxu1 %v5038_v45  ;;  %4977 = vmatprep.subr.bf16.mxu0 %v4976_v46  ;;  %v5060_v45 = vpack.c.bf16 %v349_v40, %v317_v39  ;;  %v316_v46 = vld [vmem:[#allocation9 + $0x60] sm:$0xff]  ;;  %v669_v39 = vld [vmem:[#allocation9 + $0xb68] sm:$0xff]  ;;  %v639_v40 = vld [vmem:[#allocation9 + $0xa78] sm:$0xff] }
 0x1f2   :  { %5041 = vmatprep.subr.bf16.mxu1 %v5040_v50  ;;  %v350_v50 = vld [vmem:[#allocation9 + $0x170] sm:$0xff]  ;;  %v5062_v53 = vpack.c.bf16 %v348_v47, %v316_v46  ;;  %v668_v46 = vld [vmem:[#allocation9 + $0xb60] sm:$0xff] }
 0x1f3   :  { %v638_v47 = vld [vmem:[#allocation9 + $0xa70] sm:$0xff] }
 0x1f4   :  { %4979 = vmatpush1.bf16.msra.mxu0 %v4978_v56  ;;  %v5126_v56 = vpack.c.bf16 %v350_v50, %v318_v49  ;;  %v670_v49 = vld [vmem:[#allocation9 + $0xb70] sm:$0xff]  ;;  %v701_v50 = vld [vmem:[#allocation9 + $0xc68] sm:$0xff] }
 0x1f5   :  { %5043 = vmatpush1.bf16.msra.mxu1 %v5042_v57  ;;  %4981 = vmatprep.subr.bf16.mxu0 %v4980_v58  ;;  %v380_v57 = vld [vmem:[#allocation9 + $0x260] sm:$0xff]  ;;  %v5146_v55 = vpack.c.bf16 %v670_v49, %v638_v47  ;;  %v1021_v49 = vld [vmem:[#allocation9 + $0x1668] sm:$0xff] }
 0x1f6   :  { %5045 = vmatprep.subr.bf16.mxu1 %v5044_v62  ;;  %v412_v58 = vld [vmem:[#allocation9 + $0x360] sm:$0xff]  ;;  %v445_v62 = vld [vmem:[#allocation9 + $0x468] sm:$0xff] }
 0x1f7   :  { %v5066_v4 = vpack.c.bf16 %v412_v58, %v380_v57  ;;  %v700_v57 = vld [vmem:[#allocation9 + $0xc60] sm:$0xff] }
 0x1f8   :  { %4983 = vmatpush1.bf16.msra.mxu0 %v4982_v5  ;;  %v5130_v5 = vpack.c.bf16 %v414_v61, %v382_v59  ;;  %v732_v58 = vld [vmem:[#allocation9 + $0xd60] sm:$0xff]  ;;  %v702_v59 = vld [vmem:[#allocation9 + $0xc70] sm:$0xff] }
 0x1f9   :  { %5047 = vmatpush1.bf16.msra.mxu1 %v5046_v6  ;;  %4985 = vmatprep.subr.bf16.mxu0 %v4984_v7  ;;  %v5068_v6 = vpack.c.bf16 %v477_v63, %v445_v62  ;;  %v444_v7 = vld [vmem:[#allocation9 + $0x460] sm:$0xff]  ;;  %v734_v61 = vld [vmem:[#allocation9 + $0xd70] sm:$0xff]  ;;  %v765_v62 = vld [vmem:[#allocation9 + $0xe68] sm:$0xff]  ;;  %v5086_v3 = vpack.c.bf16 %v732_v58, %v700_v57 }
 0x1fa   :  { %5049 = vmatprep.subr.bf16.mxu1 %v5048_v11  ;;  %v478_v11 = vld [vmem:[#allocation9 + $0x570] sm:$0xff]  ;;  %v5070_v16 = vpack.c.bf16 %v476_v8, %v444_v7  ;;  %v797_v63 = vld [vmem:[#allocation9 + $0xf68] sm:$0xff]  ;;  %v796_v7 = vld [vmem:[#allocation9 + $0xf60] sm:$0xff] }
 0x1fb   :  { %v766_v8 = vld [vmem:[#allocation9 + $0xe70] sm:$0xff]  ;;  %v1052_v57 = vld [vmem:[#allocation9 + $0x1760] sm:$0xff] }
 0x1fc   :  { %4987 = vmatpush1.bf16.msra.mxu0 %v4986_v17  ;;  %v5134_v17 = vpack.c.bf16 %v478_v11, %v446_v9  ;;  %v829_v11 = vld [vmem:[#allocation9 + $0x1068] sm:$0xff]  ;;  %v1022_v58 = vld [vmem:[#allocation9 + $0x1670] sm:$0xff] }
 0x1fd   :  { %5051 = vmatpush1.bf16.msra.mxu1 %v5050_v18  ;;  %4989 = vmatprep.subr.bf16.mxu0 %v4988_v19  ;;  %v5072_v18 = vpack.c.bf16 %v541_v13, %v509_v12  ;;  %v508_v19 = vld [vmem:[#allocation9 + $0x660] sm:$0xff]  ;;  %v861_v12 = vld [vmem:[#allocation9 + $0x1168] sm:$0xff]  ;;  %v831_v13 = vld [vmem:[#allocation9 + $0x1078] sm:$0xff] }
 0x1fe   :  { %5053 = vmatprep.subr.bf16.mxu1 %v5052_v23  ;;  %v542_v23 = vld [vmem:[#allocation9 + $0x770] sm:$0xff]  ;;  %v5074_v28 = vpack.c.bf16 %v540_v20, %v508_v19  ;;  %v860_v19 = vld [vmem:[#allocation9 + $0x1160] sm:$0xff] }
 0x1ff   :  { %v830_v20 = vld [vmem:[#allocation9 + $0x1070] sm:$0xff] }
 0x200   :  { %4991 = vmatpush1.bf16.msra.mxu0 %v4990_v29  ;;  %v5138_v29 = vpack.c.bf16 %v542_v23, %v510_v21  ;;  %v5156_v21 = vpack.c.bf16 %v863_v14, %v831_v13  ;;  %v893_v23 = vld [vmem:[#allocation9 + $0x1268] sm:$0xff]  ;;  %v1183_v13 = vld [vmem:[#allocation9 + $0x1b78] sm:$0xff] }
 0x201   :  { %5055 = vmatpush1.bf16.msra.mxu1 %v5054_v30  ;;  %4993 = vmatprep.subr.bf16.mxu0 %v4992_v32  ;;  %v5076_v30 = vpack.c.bf16 %v605_v25, %v573_v24  ;;  %v572_v32 = vld [vmem:[#allocation9 + $0x860] sm:$0xff]  ;;  %v925_v24 = vld [vmem:[#allocation9 + $0x1368] sm:$0xff]  ;;  %v895_v25 = vld [vmem:[#allocation9 + $0x1278] sm:$0xff] }
 0x202   :  { %5057 = vmatprep.subr.bf16.mxu1 %v5056_v37  ;;  %v606_v37 = vld [vmem:[#allocation9 + $0x970] sm:$0xff]  ;;  %v5078_v42 = vpack.c.bf16 %v604_v33, %v572_v32  ;;  %v924_v32 = vld [vmem:[#allocation9 + $0x1360] sm:$0xff] }
 0x203   :  { %v894_v33 = vld [vmem:[#allocation9 + $0x1270] sm:$0xff] }
 0x204   :  { %4995 = vmatpush1.bf16.msra.mxu0 %v4994_v43  ;;  %v5142_v43 = vpack.c.bf16 %v606_v37, %v574_v34  ;;  %v5160_v34 = vpack.c.bf16 %v927_v26, %v895_v25  ;;  %v957_v37 = vld [vmem:[#allocation9 + $0x1468] sm:$0xff]  ;;  %v1247_v25 = vld [vmem:[#allocation9 + $0x1d78] sm:$0xff] }
 0x205   :  { %5059 = vmatpush1.bf16.msra.mxu1 %v5058_v44  ;;  %5061 = vmatprep.subr.bf16.mxu0 %v5060_v45  ;;  %v5080_v44 = vpack.c.bf16 %v669_v39, %v637_v38  ;;  %v636_v45 = vld [vmem:[#allocation9 + $0xa60] sm:$0xff]  ;;  %v989_v38 = vld [vmem:[#allocation9 + $0x1568] sm:$0xff]  ;;  %v959_v39 = vld [vmem:[#allocation9 + $0x1478] sm:$0xff] }
 0x206   :  { %5125 = vmatprep.subr.bf16.mxu1 %v5124_v48  ;;  %v5144_v48 = vpack.c.bf16 %v671_v41, %v639_v40  ;;  %v5082_v54 = vpack.c.bf16 %v668_v46, %v636_v45  ;;  %v991_v40 = vld [vmem:[#allocation9 + $0x1578] sm:$0xff]  ;;  %v988_v45 = vld [vmem:[#allocation9 + $0x1560] sm:$0xff]  ;;  %v958_v46 = vld [vmem:[#allocation9 + $0x1470] sm:$0xff] }
 0x207   :  { %1845 = vmatmul.mubr.f32.vlgmr.msra.gmra.mrb[4].mxu0 %v6869_v31  ;;  %v5164_v47 = vpack.c.bf16 %v991_v40, %v959_v39  ;;  %v1311_v39 = vld [vmem:[#allocation9 + $0x1f78] sm:$0xff] }
 0x208   :  { %1916 = vmatmul.mubr.f32.vlgmr.msra.gmra.mrb[8].mxu1 %v6869_v31  ;;  %5063 = vmatpush1.bf16.msra.mxu0 %v5062_v53  ;;  %v735_v53 = vld [vmem:[#allocation9 + $0xd78] sm:$0xff] }
 0x209   :  { %1986 = vmatprep.mubr.f32.mxu0 %v6871_v36  ;;  %5127 = vmatpush1.bf16.msra.mxu1 %v5126_v56  ;;  %v5084_v56 = vpack.c.bf16 %v733_v51, %v701_v50  ;;  %v1053_v50 = vld [vmem:[#allocation9 + $0x1768] sm:$0xff]  ;;  %v1023_v51 = vld [vmem:[#allocation9 + $0x1678] sm:$0xff] }
 0x20a   :  { %2057 = vmatprep.mubr.f32.mxu1 %v6871_v36  ;;  %5065 = vmatprep.subr.bf16.mxu0 %v5064_v60  ;;  %v5148_v60 = vpack.c.bf16 %v735_v53, %v703_v52  ;;  %v1055_v52 = vld [vmem:[#allocation9 + $0x1778] sm:$0xff] }
 0x20b   :  { %5129 = vmatprep.subr.bf16.mxu1 %v5128_v1  ;;  %v767_v1 = vld [vmem:[#allocation9 + $0xe78] sm:$0xff] }
 0x20c   :  { %5067 = vmatpush1.bf16.msra.mxu0 %v5066_v4  ;;  %v5150_v4 = vpack.c.bf16 %v734_v61, %v702_v59  ;;  %v5152_v9 = vpack.c.bf16 %v799_v2, %v767_v1  ;;  %v5168_v59 = vpack.c.bf16 %v1055_v52, %v1023_v51  ;;  %v1085_v61 = vld [vmem:[#allocation9 + $0x1868] sm:$0xff]  ;;  %v1119_v1 = vld [vmem:[#allocation9 + $0x1978] sm:$0xff] }
 0x20d   :  { %5131 = vmatpush1.bf16.msra.mxu1 %v5130_v5  ;;  %5069 = vmatprep.subr.bf16.mxu0 %v5068_v6  ;;  %v5088_v5 = vpack.c.bf16 %v797_v63, %v765_v62  ;;  %v764_v6 = vld [vmem:[#allocation9 + $0xe60] sm:$0xff]  ;;  %v1117_v62 = vld [vmem:[#allocation9 + $0x1968] sm:$0xff]  ;;  %v1087_v63 = vld [vmem:[#allocation9 + $0x1878] sm:$0xff] }
 0x20e   :  { %5133 = vmatprep.subr.bf16.mxu1 %v5132_v10  ;;  %v798_v10 = vld [vmem:[#allocation9 + $0xf70] sm:$0xff]  ;;  %v5090_v15 = vpack.c.bf16 %v796_v7, %v764_v6  ;;  %v1116_v6 = vld [vmem:[#allocation9 + $0x1960] sm:$0xff]  ;;  %v355_v51 = vld [vmem:[#allocation9 + $0x198] sm:$0xff] }
 0x20f   :  { %v1086_v7 = vld [vmem:[#allocation9 + $0x1870] sm:$0xff] }
 0x210   :  { %5071 = vmatpush1.bf16.msra.mxu0 %v5070_v16  ;;  %v5154_v16 = vpack.c.bf16 %v798_v10, %v766_v8  ;;  %v5172_v8 = vpack.c.bf16 %v1119_v1, %v1087_v63  ;;  %v1149_v10 = vld [vmem:[#allocation9 + $0x1a68] sm:$0xff]  ;;  %v387_v63 = vld [vmem:[#allocation9 + $0x298] sm:$0xff] }
 0x211   :  { %5135 = vmatpush1.bf16.msra.mxu1 %v5134_v17  ;;  %5073 = vmatprep.subr.bf16.mxu0 %v5072_v18  ;;  %v5092_v17 = vpack.c.bf16 %v861_v12, %v829_v11  ;;  %v828_v18 = vld [vmem:[#allocation9 + $0x1060] sm:$0xff]  ;;  %v1181_v11 = vld [vmem:[#allocation9 + $0x1b68] sm:$0xff]  ;;  %v1151_v12 = vld [vmem:[#allocation9 + $0x1a78] sm:$0xff] }
 0x212   :  { %5137 = vmatprep.subr.bf16.mxu1 %v5136_v22  ;;  %v862_v22 = vld [vmem:[#allocation9 + $0x1170] sm:$0xff]  ;;  %v5094_v27 = vpack.c.bf16 %v860_v19, %v828_v18  ;;  %v1180_v18 = vld [vmem:[#allocation9 + $0x1b60] sm:$0xff]  ;;  %v419_v1 = vld [vmem:[#allocation9 + $0x398] sm:$0xff] }
 0x213   :  { %v1150_v19 = vld [vmem:[#allocation9 + $0x1a70] sm:$0xff] }
 0x214   :  { %5075 = vmatpush1.bf16.msra.mxu0 %v5074_v28  ;;  %v5158_v28 = vpack.c.bf16 %v862_v22, %v830_v20  ;;  %v5176_v20 = vpack.c.bf16 %v1183_v13, %v1151_v12  ;;  %v1213_v22 = vld [vmem:[#allocation9 + $0x1c68] sm:$0xff]  ;;  %v483_v12 = vld [vmem:[#allocation9 + $0x598] sm:$0xff] }
 0x215   :  { %5139 = vmatpush1.bf16.msra.mxu1 %v5138_v29  ;;  %5077 = vmatprep.subr.bf16.mxu0 %v5076_v30  ;;  %v5096_v29 = vpack.c.bf16 %v925_v24, %v893_v23  ;;  %v892_v30 = vld [vmem:[#allocation9 + $0x1260] sm:$0xff]  ;;  %v1245_v23 = vld [vmem:[#allocation9 + $0x1d68] sm:$0xff]  ;;  %v1215_v24 = vld [vmem:[#allocation9 + $0x1c78] sm:$0xff] }
 0x216   :  { %5141 = vmatprep.subr.bf16.mxu1 %v5140_v35  ;;  %v926_v35 = vld [vmem:[#allocation9 + $0x1370] sm:$0xff]  ;;  %v5098_v41 = vpack.c.bf16 %v924_v32, %v892_v30  ;;  %v1244_v30 = vld [vmem:[#allocation9 + $0x1d60] sm:$0xff] }
 0x217   :  { %v1214_v32 = vld [vmem:[#allocation9 + $0x1c70] sm:$0xff] }
 0x218   :  { %5079 = vmatpush1.bf16.msra.mxu0 %v5078_v42  ;;  %v5162_v42 = vpack.c.bf16 %v926_v35, %v894_v33  ;;  %v5180_v33 = vpack.c.bf16 %v1247_v25, %v1215_v24  ;;  %v1277_v35 = vld [vmem:[#allocation9 + $0x1e68] sm:$0xff]  ;;  %v547_v24 = vld [vmem:[#allocation9 + $0x798] sm:$0xff]  ;;  %v1336_v25 = vlaneseq }
 0x219   :  { %5143 = vmatpush1.bf16.msra.mxu1 %v5142_v43  ;;  %5081 = vmatprep.subr.bf16.mxu0 %v5080_v44  ;;  %v5100_v43 = vpack.c.bf16 %v989_v38, %v957_v37  ;;  %v956_v44 = vld [vmem:[#allocation9 + $0x1460] sm:$0xff]  ;;  %v1309_v37 = vld [vmem:[#allocation9 + $0x1f68] sm:$0xff]  ;;  %v1279_v38 = vld [vmem:[#allocation9 + $0x1e78] sm:$0xff] }
 0x21a   :  { %5145 = vmatprep.subr.bf16.mxu1 %v5144_v48  ;;  %v990_v48 = vld [vmem:[#allocation9 + $0x1570] sm:$0xff]  ;;  %v5102_v53 = vpack.c.bf16 %v988_v45, %v956_v44  ;;  %v1308_v44 = vld [vmem:[#allocation9 + $0x1f60] sm:$0xff] }
 0x21b   :  { %v1278_v45 = vld [vmem:[#allocation9 + $0x1e70] sm:$0xff] }
 0x21c   :  { %5083 = vmatpush1.bf16.msra.mxu0 %v5082_v54  ;;  %v5166_v54 = vpack.c.bf16 %v990_v48, %v958_v46  ;;  %v5184_v46 = vpack.c.bf16 %v1311_v39, %v1279_v38  ;;  %v321_v48 = vld [vmem:[#allocation9 + $0x88] sm:$0xff]  ;;  %v579_v38 = vld [vmem:[#allocation9 + $0x898] sm:$0xff] }
 0x21d   :  { %5147 = vmatpush1.bf16.msra.mxu1 %v5146_v55  ;;  %5085 = vmatprep.subr.bf16.mxu0 %v5084_v56  ;;  %v5104_v55 = vpack.c.bf16 %v1053_v50, %v1021_v49  ;;  %v1020_v56 = vld [vmem:[#allocation9 + $0x1660] sm:$0xff]  ;;  %v353_v49 = vld [vmem:[#allocation9 + $0x188] sm:$0xff]  ;;  %v323_v50 = vld [vmem:[#allocation9 + $0x98] sm:$0xff] }
 0x21e   :  { %5149 = vmatprep.subr.bf16.mxu1 %v5148_v60  ;;  %v1054_v60 = vld [vmem:[#allocation9 + $0x1770] sm:$0xff]  ;;  %v5106_v2 = vpack.c.bf16 %v1052_v57, %v1020_v56  ;;  %v352_v56 = vld [vmem:[#allocation9 + $0x180] sm:$0xff]  ;;  %v5252_v57 = vpack.c.bf16 %v355_v51, %v323_v50  ;;  %v611_v39 = vld [vmem:[#allocation9 + $0x998] sm:$0xff] }
 0x21f   :  { %v673_v50 = vld [vmem:[#allocation9 + $0xb88] sm:$0xff] }
 0x220   :  { %5087 = vmatpush1.bf16.msra.mxu0 %v5086_v3  ;;  %v5170_v3 = vpack.c.bf16 %v1054_v60, %v1022_v58  ;;  %v322_v58 = vld [vmem:[#allocation9 + $0x90] sm:$0xff]  ;;  %v385_v60 = vld [vmem:[#allocation9 + $0x288] sm:$0xff] }
 0x221   :  { %5151 = vmatpush1.bf16.msra.mxu1 %v5150_v4  ;;  %5089 = vmatprep.subr.bf16.mxu0 %v5088_v5  ;;  %v5108_v4 = vpack.c.bf16 %v1117_v62, %v1085_v61  ;;  %v1084_v5 = vld [vmem:[#allocation9 + $0x1860] sm:$0xff]  ;;  %v417_v61 = vld [vmem:[#allocation9 + $0x388] sm:$0xff] }
 0x222   :  { %5153 = vmatprep.subr.bf16.mxu1 %v5152_v9  ;;  %v1118_v9 = vld [vmem:[#allocation9 + $0x1970] sm:$0xff]  ;;  %v5110_v14 = vpack.c.bf16 %v1116_v6, %v1084_v5  ;;  %v5192_v6 = vpack.c.bf16 %v417_v61, %v385_v60 }
 0x223   :  { %v386_v5 = vld [vmem:[#allocation9 + $0x290] sm:$0xff] }
 0x224   :  { %5091 = vmatpush1.bf16.msra.mxu0 %v5090_v15  ;;  %v5174_v15 = vpack.c.bf16 %v1118_v9, %v1086_v7  ;;  %v418_v7 = vld [vmem:[#allocation9 + $0x390] sm:$0xff]  ;;  %v481_v9 = vld [vmem:[#allocation9 + $0x588] sm:$0xff] }
 0x225   :  { %5155 = vmatpush1.bf16.msra.mxu1 %v5154_v16  ;;  %5093 = vmatprep.subr.bf16.mxu0 %v5092_v17  ;;  %v5112_v16 = vpack.c.bf16 %v1181_v11, %v1149_v10  ;;  %v1148_v17 = vld [vmem:[#allocation9 + $0x1a60] sm:$0xff]  ;;  %v5256_v10 = vpack.c.bf16 %v419_v1, %v387_v63  ;;  %v451_v11 = vld [vmem:[#allocation9 + $0x498] sm:$0xff]  ;;  %v642_v60 = vld [vmem:[#allocation9 + $0xa90] sm:$0xff] }
 0x226   :  { %5157 = vmatprep.subr.bf16.mxu1 %v5156_v21  ;;  %v1182_v21 = vld [vmem:[#allocation9 + $0x1b70] sm:$0xff]  ;;  %v5114_v26 = vpack.c.bf16 %v1180_v18, %v1148_v17  ;;  %v480_v17 = vld [vmem:[#allocation9 + $0x580] sm:$0xff]  ;;  %v705_v63 = vld [vmem:[#allocation9 + $0xc88] sm:$0xff] }
 0x227   :  { %v450_v18 = vld [vmem:[#allocation9 + $0x490] sm:$0xff]  ;;  %v737_v1 = vld [vmem:[#allocation9 + $0xd88] sm:$0xff] }
 0x228   :  { %5095 = vmatpush1.bf16.msra.mxu0 %v5094_v27  ;;  %v5178_v27 = vpack.c.bf16 %v1182_v21, %v1150_v19  ;;  %v5260_v19 = vpack.c.bf16 %v483_v12, %v451_v11  ;;  %v513_v21 = vld [vmem:[#allocation9 + $0x688] sm:$0xff]  ;;  %v706_v11 = vld [vmem:[#allocation9 + $0xc90] sm:$0xff] }
 0x229   :  { %5159 = vmatpush1.bf16.msra.mxu1 %v5158_v28  ;;  %5097 = vmatprep.subr.bf16.mxu0 %v5096_v29  ;;  %v5116_v28 = vpack.c.bf16 %v1245_v23, %v1213_v22  ;;  %v1212_v29 = vld [vmem:[#allocation9 + $0x1c60] sm:$0xff]  ;;  %v545_v22 = vld [vmem:[#allocation9 + $0x788] sm:$0xff]  ;;  %v515_v23 = vld [vmem:[#allocation9 + $0x698] sm:$0xff] }
 0x22a   :  { %5161 = vmatprep.subr.bf16.mxu1 %v5160_v34  ;;  %v1246_v34 = vld [vmem:[#allocation9 + $0x1d70] sm:$0xff]  ;;  %v5118_v40 = vpack.c.bf16 %v1244_v30, %v1212_v29  ;;  %v512_v29 = vld [vmem:[#allocation9 + $0x680] sm:$0xff] }
 0x22b   :  { %v544_v30 = vld [vmem:[#allocation9 + $0x780] sm:$0xff] }
 0x22c   :  { %5099 = vmatpush1.bf16.msra.mxu0 %v5098_v41  ;;  %v5182_v41 = vpack.c.bf16 %v1246_v34, %v1214_v32  ;;  %v514_v32 = vld [vmem:[#allocation9 + $0x690] sm:$0xff] }
 0x22d   :  { %5163 = vmatpush1.bf16.msra.mxu1 %v5162_v42  ;;  %5101 = vmatprep.subr.bf16.mxu0 %v5100_v43  ;;  %v5120_v42 = vpack.c.bf16 %v1309_v37, %v1277_v35  ;;  %v1276_v43 = vld [vmem:[#allocation9 + $0x1e60] sm:$0xff]  ;;  %v546_v34 = vld [vmem:[#allocation9 + $0x790] sm:$0xff]  ;;  %v577_v35 = vld [vmem:[#allocation9 + $0x888] sm:$0xff] }
 0x22e   :  { %5165 = vmatprep.subr.bf16.mxu1 %v5164_v47  ;;  %v1310_v47 = vld [vmem:[#allocation9 + $0x1f70] sm:$0xff]  ;;  %v5122_v52 = vpack.c.bf16 %v1308_v44, %v1276_v43  ;;  %v609_v37 = vld [vmem:[#allocation9 + $0x988] sm:$0xff]  ;;  %v576_v44 = vld [vmem:[#allocation9 + $0x880] sm:$0xff] }
 0x22f   :  { %v5204_v43 = vpack.c.bf16 %v609_v37, %v577_v35  ;;  %v865_v35 = vld [vmem:[#allocation9 + $0x1188] sm:$0xff] }
 0x230   :  { %5103 = vmatpush1.bf16.msra.mxu0 %v5102_v53  ;;  %v5186_v53 = vpack.c.bf16 %v1310_v47, %v1278_v45  ;;  %v608_v45 = vld [vmem:[#allocation9 + $0x980] sm:$0xff]  ;;  %v5268_v47 = vpack.c.bf16 %v611_v39, %v579_v38  ;;  %v835_v38 = vld [vmem:[#allocation9 + $0x1098] sm:$0xff] }
 0x231   :  { %5167 = vmatpush1.bf16.msra.mxu1 %v5166_v54  ;;  %5105 = vmatprep.subr.bf16.mxu0 %v5104_v55  ;;  %v5188_v54 = vpack.c.bf16 %v353_v49, %v321_v48  ;;  %v320_v55 = vld [vmem:[#allocation9 + $0x80] sm:$0xff]  ;;  %v610_v48 = vld [vmem:[#allocation9 + $0x990] sm:$0xff]  ;;  %v641_v49 = vld [vmem:[#allocation9 + $0xa88] sm:$0xff] }
 0x232   :  { %5169 = vmatprep.subr.bf16.mxu1 %v5168_v59  ;;  %v354_v59 = vld [vmem:[#allocation9 + $0x190] sm:$0xff]  ;;  %v5190_v62 = vpack.c.bf16 %v352_v56, %v320_v55  ;;  %v1328_v55 = vld [vmem:[#allocation10] sm:$0xff]  ;;  %v867_v39 = vld [vmem:[#allocation9 + $0x1198] sm:$0xff] }
 0x234   :  { %5107 = vmatpush1.bf16.msra.mxu0 %v5106_v2  ;;  %v5254_v2 = vpack.c.bf16 %v354_v59, %v322_v58  ;;  %v640_v58 = vld [vmem:[#allocation9 + $0xa80] sm:$0xff] }
 0x235   :  { %5171 = vmatpush1.bf16.msra.mxu1 %v5170_v3  ;;  %5109 = vmatprep.subr.bf16.mxu0 %v5108_v4  ;;  %v384_v3 = vld [vmem:[#allocation9 + $0x280] sm:$0xff] }
 0x236   :  { %5173 = vmatprep.subr.bf16.mxu1 %v5172_v8  ;;  %v416_v4 = vld [vmem:[#allocation9 + $0x380] sm:$0xff]  ;;  %v449_v8 = vld [vmem:[#allocation9 + $0x488] sm:$0xff] }
 0x237   :  { %v5194_v13 = vpack.c.bf16 %v416_v4, %v384_v3  ;;  %v672_v59 = vld [vmem:[#allocation9 + $0xb80] sm:$0xff]  ;;  %v707_v4 = vld [vmem:[#allocation9 + $0xc98] sm:$0xff] }
 0x238   :  { %5111 = vmatpush1.bf16.msra.mxu0 %v5110_v14  ;;  %v5258_v14 = vpack.c.bf16 %v418_v7, %v386_v5  ;;  %v739_v5 = vld [vmem:[#allocation9 + $0xd98] sm:$0xff] }
 0x239   :  { %5175 = vmatpush1.bf16.msra.mxu1 %v5174_v15  ;;  %5113 = vmatprep.subr.bf16.mxu0 %v5112_v16  ;;  %v5196_v15 = vpack.c.bf16 %v481_v9, %v449_v8  ;;  %v448_v16 = vld [vmem:[#allocation9 + $0x480] sm:$0xff]  ;;  %v5212_v8 = vpack.c.bf16 %v737_v1, %v705_v63  ;;  %v993_v63 = vld [vmem:[#allocation9 + $0x1588] sm:$0xff]  ;;  %v963_v1 = vld [vmem:[#allocation9 + $0x1498] sm:$0xff] }
 0x23a   :  { %5177 = vmatprep.subr.bf16.mxu1 %v5176_v20  ;;  %v482_v20 = vld [vmem:[#allocation9 + $0x590] sm:$0xff]  ;;  %v704_v9 = vld [vmem:[#allocation9 + $0xc80] sm:$0xff] }
 0x23c   :  { %5115 = vmatpush1.bf16.msra.mxu0 %v5114_v26  ;;  %v5198_v26 = vpack.c.bf16 %v480_v17, %v448_v16  ;;  %v769_v16 = vld [vmem:[#allocation9 + $0xe88] sm:$0xff] }
 0x23d   :  { %5179 = vmatpush1.bf16.msra.mxu1 %v5178_v27  ;;  %5117 = vmatprep.subr.bf16.mxu0 %v5116_v28  ;;  %v5262_v27 = vpack.c.bf16 %v482_v20, %v450_v18  ;;  %v5200_v28 = vpack.c.bf16 %v545_v22, %v513_v21  ;;  %v801_v17 = vld [vmem:[#allocation9 + $0xf88] sm:$0xff]  ;;  %v771_v22 = vld [vmem:[#allocation9 + $0xe98] sm:$0xff] }
 0x23e   :  { %5181 = vmatprep.subr.bf16.mxu1 %v5180_v33  ;;  %v5264_v33 = vpack.c.bf16 %v547_v24, %v515_v23  ;;  %v803_v23 = vld [vmem:[#allocation9 + $0xf98] sm:$0xff] }
 0x240   :  { %5119 = vmatpush1.bf16.msra.mxu0 %v5118_v40  ;;  %v6891_v40 = vshrl.u32 %v1336_v25, 7 }
 0x241   :  { %5183 = vmatpush1.bf16.msra.mxu1 %v5182_v41  ;;  %5121 = vmatprep.subr.bf16.mxu0 %v5120_v42  ;;  %v5202_v41 = vpack.c.bf16 %v544_v30, %v512_v29  ;;  %v5266_v42 = vpack.c.bf16 %v546_v34, %v514_v32  ;;  %v800_v29 = vld [vmem:[#allocation9 + $0xf80] sm:$0xff]  ;;  %v770_v30 = vld [vmem:[#allocation9 + $0xe90] sm:$0xff]  ;;  %v5280_v32 = vpack.c.bf16 %v803_v23, %v771_v22  ;;  %v833_v34 = vld [vmem:[#allocation9 + $0x1088] sm:$0xff] }
 0x242   :  { %5185 = vmatprep.subr.bf16.mxu1 %v5184_v46  ;;  %v578_v46 = vld [vmem:[#allocation9 + $0x890] sm:$0xff]  ;;  %v6894_v51 = vsub.s32 0, %v6891_v40  ;;  %v6898_v3 = vsub.s32 2, %v6891_v40 }
 0x243   :  { %v5270_v56 = vpack.c.bf16 %v610_v48, %v578_v46  ;;  %v834_v46 = vld [vmem:[#allocation9 + $0x1090] sm:$0xff] }
 0x244   :  { %5123 = vmatpush1.bf16.msra.mxu0 %v5122_v52  ;;  %v643_v52 = vld [vmem:[#allocation9 + $0xa98] sm:$0xff]  ;;  %v866_v48 = vld [vmem:[#allocation9 + $0x1190] sm:$0xff] }
 0x245   :  { %5187 = vmatpush1.bf16.msra.mxu1 %v5186_v53  ;;  %5189 = vmatprep.subr.bf16.mxu0 %v5188_v54  ;;  %v675_v53 = vld [vmem:[#allocation9 + $0xb98] sm:$0xff]  ;;  %v5206_v54 = vpack.c.bf16 %v608_v45, %v576_v44  ;;  %v832_v44 = vld [vmem:[#allocation9 + $0x1080] sm:$0xff] }
 0x246   :  { %5253 = vmatprep.subr.bf16.mxu1 %v5252_v57  ;;  %v5208_v57 = vpack.c.bf16 %v673_v50, %v641_v49  ;;  %v5272_v61 = vpack.c.bf16 %v675_v53, %v643_v52  ;;  %v864_v45 = vld [vmem:[#allocation9 + $0x1180] sm:$0xff]  ;;  %v897_v49 = vld [vmem:[#allocation9 + $0x1288] sm:$0xff]  ;;  %v899_v52 = vld [vmem:[#allocation9 + $0x1298] sm:$0xff] }
 0x247   :  { %1987 = vmatmul.mubr.f32.vlgmr.msra.gmra.mrb[6].mxu0 %v6869_v31  ;;  %v929_v50 = vld [vmem:[#allocation9 + $0x1388] sm:$0xff]  ;;  %v931_v53 = vld [vmem:[#allocation9 + $0x1398] sm:$0xff] }
 0x248   :  { %2058 = vmatmul.mubr.f32.vlgmr.msra.gmra.mrb[10].mxu1 %v6869_v31  ;;  %5191 = vmatpush1.bf16.msra.mxu0 %v5190_v62  ;;  %v674_v62 = vld [vmem:[#allocation9 + $0xb90] sm:$0xff] }
 0x249   :  { %2128 = vmatprep.mubr.f32.mxu0 %v6871_v36  ;;  %5255 = vmatpush1.bf16.msra.mxu1 %v5254_v2  ;;  %v1339_v2 = vrot.slane %v1328_v55, %v6894_v51  ;;  %v5274_v7 = vpack.c.bf16 %v674_v62, %v642_v60  ;;  %v5288_v60 = vpack.c.bf16 %v931_v53, %v899_v52  ;;  %v961_v62 = vld [vmem:[#allocation9 + $0x1488] sm:$0xff]  ;;  %v1152_v53 = vld [vmem:[#allocation9 + $0x1a80] sm:$0xff] }
 0x24a   :  { %2199 = vmatprep.mubr.f32.mxu1 %v6871_v36  ;;  %5193 = vmatprep.subr.bf16.mxu0 %v5192_v6  ;;  %v5210_v6 = vpack.c.bf16 %v672_v59, %v640_v58  ;;  %v928_v58 = vld [vmem:[#allocation9 + $0x1380] sm:$0xff]  ;;  %v898_v59 = vld [vmem:[#allocation9 + $0x1290] sm:$0xff] }
 0x24b   :  { %5257 = vmatprep.subr.bf16.mxu1 %v5256_v10  ;;  %v736_v10 = vld [vmem:[#allocation9 + $0xd80] sm:$0xff] }
 0x24c   :  { %5195 = vmatpush1.bf16.msra.mxu0 %v5194_v13  ;;  %v5214_v24 = vpack.c.bf16 %v736_v10, %v704_v9  ;;  %v992_v9 = vld [vmem:[#allocation9 + $0x1580] sm:$0xff]  ;;  %v962_v10 = vld [vmem:[#allocation9 + $0x1490] sm:$0xff] }
 0x24d   :  { %5259 = vmatpush1.bf16.msra.mxu1 %v5258_v14  ;;  %5197 = vmatprep.subr.bf16.mxu0 %v5196_v15  ;;  %v5276_v14 = vpack.c.bf16 %v739_v5, %v707_v4  ;;  %v738_v15 = vld [vmem:[#allocation9 + $0xd90] sm:$0xff] }
 0x24e   :  { %5261 = vmatprep.subr.bf16.mxu1 %v5260_v19  ;;  %v1347_v19 = vrot.slane %v1328_v55, %v6898_v3  ;;  %v5286_v55 = vpack.c.bf16 %v866_v48, %v834_v46  ;;  %v1185_v46 = vld [vmem:[#allocation9 + $0x1b88] sm:$0xff]  ;;  %v1187_v48 = vld [vmem:[#allocation9 + $0x1b98] sm:$0xff] }
 0x250   :  { %5199 = vmatpush1.bf16.msra.mxu0 %v5198_v26  ;;  %v5278_v26 = vpack.c.bf16 %v738_v15, %v706_v11  ;;  %v1057_v15 = vld [vmem:[#allocation9 + $0x1788] sm:$0xff] }
 0x251   :  { %5263 = vmatpush1.bf16.msra.mxu1 %v5262_v27  ;;  %5201 = vmatprep.subr.bf16.mxu0 %v5200_v28  ;;  %v5216_v27 = vpack.c.bf16 %v801_v17, %v769_v16  ;;  %v768_v28 = vld [vmem:[#allocation9 + $0xe80] sm:$0xff]  ;;  %v1027_v16 = vld [vmem:[#allocation9 + $0x1698] sm:$0xff] }
 0x252   :  { %5265 = vmatprep.subr.bf16.mxu1 %v5264_v33  ;;  %v802_v33 = vld [vmem:[#allocation9 + $0xf90] sm:$0xff]  ;;  %v1059_v17 = vld [vmem:[#allocation9 + $0x1798] sm:$0xff] }
 0x254   :  { %5203 = vmatpush1.bf16.msra.mxu0 %v5202_v41  ;;  %v5218_v41 = vpack.c.bf16 %v800_v29, %v768_v28  ;;  %v5296_v28 = vpack.c.bf16 %v1059_v17, %v1027_v16  ;;  %v1058_v29 = vld [vmem:[#allocation9 + $0x1790] sm:$0xff]  ;;  %v1312_v16 = vld [vmem:[#allocation9 + $0x1f80] sm:$0xff] }
 0x255   :  { %5267 = vmatpush1.bf16.msra.mxu1 %v5266_v42  ;;  %5205 = vmatprep.subr.bf16.mxu0 %v5204_v43  ;;  %v5282_v42 = vpack.c.bf16 %v802_v33, %v770_v30  ;;  %v5220_v43 = vpack.c.bf16 %v865_v35, %v833_v34  ;;  %v1089_v30 = vld [vmem:[#allocation9 + $0x1888] sm:$0xff]  ;;  %v1091_v33 = vld [vmem:[#allocation9 + $0x1898] sm:$0xff]  ;;  %v1282_v17 = vld [vmem:[#allocation9 + $0x1e90] sm:$0xff] }
 0x256   :  { %5269 = vmatprep.subr.bf16.mxu1 %v5268_v47  ;;  %v5284_v47 = vpack.c.bf16 %v867_v39, %v835_v38  ;;  %v1123_v34 = vld [vmem:[#allocation9 + $0x1998] sm:$0xff]  ;;  %v1088_v39 = vld [vmem:[#allocation9 + $0x1880] sm:$0xff] }
 0x258   :  { %5207 = vmatpush1.bf16.msra.mxu0 %v5206_v54  ;;  %v5222_v54 = vpack.c.bf16 %v864_v45, %v832_v44  ;;  %v1122_v44 = vld [vmem:[#allocation9 + $0x1990] sm:$0xff]  ;;  %v1153_v45 = vld [vmem:[#allocation9 + $0x1a88] sm:$0xff] }
 0x259   :  { %5271 = vmatpush1.bf16.msra.mxu1 %v5270_v56  ;;  %5209 = vmatprep.subr.bf16.mxu0 %v5208_v57  ;;  %v5224_v56 = vpack.c.bf16 %v929_v50, %v897_v49  ;;  %v896_v57 = vld [vmem:[#allocation9 + $0x1280] sm:$0xff]  ;;  %v5240_v52 = vpack.c.bf16 %v1185_v46, %v1153_v45  ;;  %v390_v45 = vld [vmem:[#allocation9 + $0x2b0] sm:$0xff] }
 0x25a   :  { %v1562_v12 = vpop.f32.mrb[0].mxu0  ;;  %v1633_v13 = vpop.f32.mrb[4].mxu1  ;;  %5273 = vmatprep.subr.bf16.mxu1 %v5272_v61  ;;  %v930_v61 = vld [vmem:[#allocation9 + $0x1390] sm:$0xff]  ;;  %v5226_v4 = vpack.c.bf16 %v928_v58, %v896_v57  ;;  %v1217_v58 = vld [vmem:[#allocation9 + $0x1c88] sm:$0xff] }
 0x25b   :  { %v1563_v18 = vadd.f32 %v1562_v12, %v1339_v2  ;;  %v1564_v20 = vpop.f32.mrb[1].mxu0  ;;  %v6901_v21 = vpop.f32.mrb[5].mxu1  ;;  %v1634_v37 = vadd.f32 %v1633_v13, %v1347_v19  ;;  %v995_v2 = vld [vmem:[#allocation9 + $0x1598] sm:$0xff]  ;;  %v994_v13 = vld [vmem:[#allocation9 + $0x1590] sm:$0xff] }
 0x25c   :  { %5211 = vmatpush1.bf16.msra.mxu0 %v5210_v6  ;;  %v5290_v6 = vpack.c.bf16 %v930_v61, %v898_v59  ;;  %v5292_v12 = vpack.c.bf16 %v995_v2, %v963_v1  ;;  %v5294_v22 = vpack.c.bf16 %v994_v13, %v962_v10  ;;  %v1186_v57 = vld [vmem:[#allocation9 + $0x1b90] sm:$0xff]  ;;  %v1249_v59 = vld [vmem:[#allocation9 + $0x1d88] sm:$0xff]  ;;  %v1251_v61 = vld [vmem:[#allocation9 + $0x1d98] sm:$0xff] }
 0x25d   :  { %v2731_v25 = vmul.f32 0.5, %v1563_v18  ;;  %5275 = vmatpush1.bf16.msra.mxu1 %v5274_v7  ;;  %5213 = vmatprep.subr.bf16.mxu0 %v5212_v8  ;;  %v5228_v7 = vpack.c.bf16 %v993_v63, %v961_v62  ;;  %v960_v8 = vld [vmem:[#allocation9 + $0x1480] sm:$0xff]  ;;  %v5244_v1 = vpack.c.bf16 %v1249_v59, %v1217_v58  ;;  %v1283_v10 = vld [vmem:[#allocation9 + $0x1e98] sm:$0xff]  ;;  %v454_v59 = vld [vmem:[#allocation9 + $0x4b0] sm:$0xff] }
 0x25e   :  { %5277 = vmatprep.subr.bf16.mxu1 %v5276_v14  ;;  %v1025_v14 = vld [vmem:[#allocation9 + $0x1688] sm:$0xff]  ;;  %v5230_v19 = vpack.c.bf16 %v992_v9, %v960_v8  ;;  %v1216_v2 = vld [vmem:[#allocation9 + $0x1c80] sm:$0xff] }
 0x25f   :  { %6367 = vtanh.f32 %v2731_v25  ;;  %v5232_v23 = vpack.c.bf16 %v1057_v15, %v1025_v14  ;;  %v1056_v25 = vld [vmem:[#allocation9 + $0x1780] sm:$0xff]  ;;  %v1281_v8 = vld [vmem:[#allocation9 + $0x1e88] sm:$0xff] }
 0x260   :  { %5215 = vmatpush1.bf16.msra.mxu0 %v5214_v24  ;;  %6369 = vtanh.f32 %v1634_v37  ;;  %v1024_v24 = vld [vmem:[#allocation9 + $0x1680] sm:$0xff]  ;;  %v1313_v9 = vld [vmem:[#allocation9 + $0x1f88] sm:$0xff] }
 0x261   :  { %5279 = vmatpush1.bf16.msra.mxu1 %v5278_v26  ;;  %5217 = vmatprep.subr.bf16.mxu0 %v5216_v27  ;;  %v1026_v26 = vld [vmem:[#allocation9 + $0x1690] sm:$0xff]  ;;  %v5234_v35 = vpack.c.bf16 %v1056_v25, %v1024_v24  ;;  %v5248_v14 = vpack.c.bf16 %v1313_v9, %v1281_v8  ;;  %v1280_v15 = vld [vmem:[#allocation9 + $0x1e80] sm:$0xff]  ;;  %v359_v24 = vld [vmem:[#allocation9 + $0x1b8] sm:$0xff] }
 0x262   :  { %5281 = vmatprep.subr.bf16.mxu1 %v5280_v32  ;;  %v1121_v32 = vld [vmem:[#allocation9 + $0x1988] sm:$0xff]  ;;  %v5298_v37 = vpack.c.bf16 %v1058_v29, %v1026_v26  ;;  %v5250_v25 = vpack.c.bf16 %v1312_v16, %v1280_v15  ;;  %v324_v29 = vld [vmem:[#allocation9 + $0xa0] sm:$0xff]  ;;  %v518_v9 = vld [vmem:[#allocation9 + $0x6b0] sm:$0xff] }
 0x263   :  { %v5236_v38 = vpack.c.bf16 %v1121_v32, %v1089_v30  ;;  %v356_v30 = vld [vmem:[#allocation9 + $0x1a0] sm:$0xff]  ;;  %v615_v15 = vld [vmem:[#allocation9 + $0x9b8] sm:$0xff] }
 0x264   :  { %5219 = vmatpush1.bf16.msra.mxu0 %v5218_v41  ;;  %v1120_v41 = vld [vmem:[#allocation9 + $0x1980] sm:$0xff] }
 0x265   :  { %5283 = vmatpush1.bf16.msra.mxu1 %v5282_v42  ;;  %5221 = vmatprep.subr.bf16.mxu0 %v5220_v43  ;;  %v1090_v42 = vld [vmem:[#allocation9 + $0x1890] sm:$0xff]  ;;  %v5300_v43 = vpack.c.bf16 %v1123_v34, %v1091_v33  ;;  %v5238_v49 = vpack.c.bf16 %v1120_v41, %v1088_v39  ;;  %v391_v39 = vld [vmem:[#allocation9 + $0x2b8] sm:$0xff]  ;;  %v484_v58 = vld [vmem:[#allocation9 + $0x5a0] sm:$0xff] }
 0x266   :  { %5285 = vmatprep.subr.bf16.mxu1 %v5284_v47  ;;  %v1155_v47 = vld [vmem:[#allocation9 + $0x1a98] sm:$0xff]  ;;  %v5302_v50 = vpack.c.bf16 %v1122_v44, %v1090_v42  ;;  %v326_v33 = vld [vmem:[#allocation9 + $0xb0] sm:$0xff]  ;;  %v420_v44 = vld [vmem:[#allocation9 + $0x3a0] sm:$0xff] }
 0x267   :  { %v358_v34 = vld [vmem:[#allocation9 + $0x1b0] sm:$0xff]  ;;  %v423_v41 = vld [vmem:[#allocation9 + $0x3b8] sm:$0xff]  ;;  %v548_v8 = vld [vmem:[#allocation9 + $0x7a0] sm:$0xff] }
 0x268   :  { %5223 = vmatpush1.bf16.msra.mxu0 %v5222_v54  ;;  %v1184_v54 = vld [vmem:[#allocation9 + $0x1b80] sm:$0xff]  ;;  %v5382_v42 = vpack.c.bf16 %v358_v34, %v326_v33 }
 0x269   :  { %v6368_v5 = vpop.eup %6367  ;;  %5287 = vmatpush1.bf16.msra.mxu1 %v5286_v55  ;;  %5225 = vmatprep.subr.bf16.mxu0 %v5224_v56  ;;  %v1154_v55 = vld [vmem:[#allocation9 + $0x1a90] sm:$0xff]  ;;  %v5304_v56 = vpack.c.bf16 %v1187_v48, %v1155_v47  ;;  %v5242_v62 = vpack.c.bf16 %v1184_v54, %v1152_v53  ;;  %v453_v48 = vld [vmem:[#allocation9 + $0x4a8] sm:$0xff]  ;;  %v487_v53 = vld [vmem:[#allocation9 + $0x5b8] sm:$0xff] }
 0x26a   :  { %v2733_v11 = vmul.f32 0.5, %v6368_v5  ;;  %5289 = vmatprep.subr.bf16.mxu1 %v5288_v60  ;;  %v6370_v20 = vpop.eup %6369  ;;  %v1219_v60 = vld [vmem:[#allocation9 + $0x1c98] sm:$0xff]  ;;  %v5306_v63 = vpack.c.bf16 %v1186_v57, %v1154_v55  ;;  %v1218_v5 = vld [vmem:[#allocation9 + $0x1c90] sm:$0xff]  ;;  %v452_v57 = vld [vmem:[#allocation9 + $0x4a0] sm:$0xff] }
 0x26b   :  { %v422_v47 = vld [vmem:[#allocation9 + $0x3b0] sm:$0xff]  ;;  %v644_v34 = vld [vmem:[#allocation9 + $0xaa0] sm:$0xff] }
 0x26c   :  { %v2734_v18 = vadd.f32 0.5, %v2733_v11  ;;  %5227 = vmatpush1.bf16.msra.mxu0 %v5226_v4  ;;  %v1248_v4 = vld [vmem:[#allocation9 + $0x1d80] sm:$0xff]  ;;  %v1315_v11 = vld [vmem:[#allocation9 + $0x1f98] sm:$0xff]  ;;  %v5386_v55 = vpack.c.bf16 %v422_v47, %v390_v45 }
 0x26d   :  { %5291 = vmatpush1.bf16.msra.mxu1 %v5290_v6  ;;  %5229 = vmatprep.subr.bf16.mxu0 %v5228_v7  ;;  %v5308_v6 = vpack.c.bf16 %v1251_v61, %v1219_v60  ;;  %v1250_v7 = vld [vmem:[#allocation9 + $0x1d90] sm:$0xff] }
 0x26e   :  { %v6903_v27 = vmul.f32 %v6370_v20, %v2734_v18  ;;  %5293 = vmatprep.subr.bf16.mxu1 %v5292_v12  ;;  %v5246_v12 = vpack.c.bf16 %v1248_v4, %v1216_v2  ;;  %v5310_v13 = vpack.c.bf16 %v1250_v7, %v1218_v5  ;;  %v5312_v18 = vpack.c.bf16 %v1315_v11, %v1283_v10  ;;  %v325_v20 = vld [vmem:[#allocation9 + $0xa8] sm:$0xff]  ;;  %v486_v61 = vld [vmem:[#allocation9 + $0x5b0] sm:$0xff]  ;;  %v551_v2 = vld [vmem:[#allocation9 + $0x7b8] sm:$0xff] }
 0x26f   :  { %v5326_v4 = vpack.c.bf16 %v484_v58, %v452_v57  ;;  %v5390_v5 = vpack.c.bf16 %v486_v61, %v454_v59  ;;  %v516_v7 = vld [vmem:[#allocation9 + $0x6a0] sm:$0xff]  ;;  %v550_v11 = vld [vmem:[#allocation9 + $0x7b0] sm:$0xff]  ;;  %v807_v57 = vld [vmem:[#allocation9 + $0xfb8] sm:$0xff] }
 0x270   :  { %5231 = vmatpush1.bf16.msra.mxu0 %v5230_v19  ;;  %v1314_v19 = vld [vmem:[#allocation9 + $0x1f90] sm:$0xff]  ;;  %v5330_v16 = vpack.c.bf16 %v548_v8, %v516_v7  ;;  %v772_v61 = vld [vmem:[#allocation9 + $0xea0] sm:$0xff]  ;;  %v871_v7 = vld [vmem:[#allocation9 + $0x11b8] sm:$0xff] }
 0x271   :  { %5295 = vmatpush1.bf16.msra.mxu1 %v5294_v22  ;;  %5233 = vmatprep.subr.bf16.mxu0 %v5232_v23  ;;  %v357_v22 = vld [vmem:[#allocation9 + $0x1a8] sm:$0xff]  ;;  %v327_v23 = vld [vmem:[#allocation9 + $0xb8] sm:$0xff]  ;;  %v5314_v26 = vpack.c.bf16 %v1314_v19, %v1282_v17  ;;  %v5394_v17 = vpack.c.bf16 %v550_v11, %v518_v9  ;;  %v580_v19 = vld [vmem:[#allocation9 + $0x8a0] sm:$0xff] }
 0x272   :  { %5297 = vmatprep.subr.bf16.mxu1 %v5296_v28  ;;  %v5316_v28 = vpack.c.bf16 %v357_v22, %v325_v20  ;;  %v5380_v32 = vpack.c.bf16 %v359_v24, %v327_v23  ;;  %v612_v20 = vld [vmem:[#allocation9 + $0x9a0] sm:$0xff]  ;;  %v582_v22 = vld [vmem:[#allocation9 + $0x8b0] sm:$0xff] }
 0x273   :  { %v614_v24 = vld [vmem:[#allocation9 + $0x9b0] sm:$0xff]  ;;  %v836_v11 = vld [vmem:[#allocation9 + $0x10a0] sm:$0xff] }
 0x274   :  { %5235 = vmatpush1.bf16.msra.mxu0 %v5234_v35  ;;  %v389_v35 = vld [vmem:[#allocation9 + $0x2a8] sm:$0xff] }
 0x275   :  { %5299 = vmatpush1.bf16.msra.mxu1 %v5298_v37  ;;  %5237 = vmatprep.subr.bf16.mxu0 %v5236_v38  ;;  %v421_v37 = vld [vmem:[#allocation9 + $0x3a8] sm:$0xff]  ;;  %v5318_v38 = vpack.c.bf16 %v356_v30, %v324_v29  ;;  %v679_v29 = vld [vmem:[#allocation9 + $0xbb8] sm:$0xff]  ;;  %v5334_v30 = vpack.c.bf16 %v612_v20, %v580_v19 }
 0x276   :  { %5301 = vmatprep.subr.bf16.mxu1 %v5300_v43  ;;  %v388_v43 = vld [vmem:[#allocation9 + $0x2a0] sm:$0xff]  ;;  %v5320_v46 = vpack.c.bf16 %v421_v37, %v389_v35  ;;  %v646_v37 = vld [vmem:[#allocation9 + $0xab0] sm:$0xff]  ;;  %v935_v19 = vld [vmem:[#allocation9 + $0x13b8] sm:$0xff] }
 0x277   :  { %v5322_v54 = vpack.c.bf16 %v420_v44, %v388_v43  ;;  %v676_v35 = vld [vmem:[#allocation9 + $0xba0] sm:$0xff]  ;;  %v711_v43 = vld [vmem:[#allocation9 + $0xcb8] sm:$0xff] }
 0x278   :  { %5239 = vmatpush1.bf16.msra.mxu0 %v5238_v49  ;;  %v485_v49 = vld [vmem:[#allocation9 + $0x5a8] sm:$0xff]  ;;  %v743_v44 = vld [vmem:[#allocation9 + $0xdb8] sm:$0xff]  ;;  %v5338_v45 = vpack.c.bf16 %v676_v35, %v644_v34 }
 0x279   :  { %5303 = vmatpush1.bf16.msra.mxu1 %v5302_v50  ;;  %5241 = vmatprep.subr.bf16.mxu0 %v5240_v52  ;;  %v5384_v50 = vpack.c.bf16 %v423_v41, %v391_v39  ;;  %v455_v52 = vld [vmem:[#allocation9 + $0x4b8] sm:$0xff]  ;;  %v678_v39 = vld [vmem:[#allocation9 + $0xbb0] sm:$0xff]  ;;  %v709_v41 = vld [vmem:[#allocation9 + $0xca8] sm:$0xff] }
 0x27a   :  { %5305 = vmatprep.subr.bf16.mxu1 %v5304_v56  ;;  %v5324_v56 = vpack.c.bf16 %v485_v49, %v453_v48  ;;  %v5388_v60 = vpack.c.bf16 %v487_v53, %v455_v52  ;;  %v708_v48 = vld [vmem:[#allocation9 + $0xca0] sm:$0xff]  ;;  %v5404_v52 = vpack.c.bf16 %v743_v44, %v711_v43  ;;  %v742_v53 = vld [vmem:[#allocation9 + $0xdb0] sm:$0xff]  ;;  %v999_v34 = vld [vmem:[#allocation9 + $0x15b8] sm:$0xff] }
 0x27b   :  { %v740_v49 = vld [vmem:[#allocation9 + $0xda0] sm:$0xff]  ;;  %v998_v44 = vld [vmem:[#allocation9 + $0x15b0] sm:$0xff] }
 0x27c   :  { %5243 = vmatpush1.bf16.msra.mxu0 %v5242_v62  ;;  %v517_v62 = vld [vmem:[#allocation9 + $0x6a8] sm:$0xff]  ;;  %v5342_v58 = vpack.c.bf16 %v740_v49, %v708_v48  ;;  %v1063_v48 = vld [vmem:[#allocation9 + $0x17b8] sm:$0xff] }
 0x27d   :  { %5307 = vmatpush1.bf16.msra.mxu1 %v5306_v63  ;;  %5245 = vmatprep.subr.bf16.mxu0 %v5244_v1  ;;  %v549_v63 = vld [vmem:[#allocation9 + $0x7a8] sm:$0xff]  ;;  %v519_v1 = vld [vmem:[#allocation9 + $0x6b8] sm:$0xff] }
 0x27e   :  { %5309 = vmatprep.subr.bf16.mxu1 %v5308_v6  ;;  %v5328_v6 = vpack.c.bf16 %v549_v63, %v517_v62  ;;  %v5392_v10 = vpack.c.bf16 %v551_v2, %v519_v1  ;;  %v804_v62 = vld [vmem:[#allocation9 + $0xfa0] sm:$0xff]  ;;  %v774_v63 = vld [vmem:[#allocation9 + $0xeb0] sm:$0xff] }
 0x27f   :  { %v806_v2 = vld [vmem:[#allocation9 + $0xfb0] sm:$0xff]  ;;  %v5346_v8 = vpack.c.bf16 %v804_v62, %v772_v61  ;;  %v1127_v61 = vld [vmem:[#allocation9 + $0x19b8] sm:$0xff] }
 0x280   :  { %5247 = vmatpush1.bf16.msra.mxu0 %v5246_v12  ;;  %v581_v12 = vld [vmem:[#allocation9 + $0x8a8] sm:$0xff]  ;;  %v5410_v9 = vpack.c.bf16 %v806_v2, %v774_v63  ;;  %v1092_v2 = vld [vmem:[#allocation9 + $0x18a0] sm:$0xff] }
 0x281   :  { %5311 = vmatpush1.bf16.msra.mxu1 %v5310_v13  ;;  %5249 = vmatprep.subr.bf16.mxu0 %v5248_v14  ;;  %v613_v13 = vld [vmem:[#allocation9 + $0x9a8] sm:$0xff]  ;;  %v583_v14 = vld [vmem:[#allocation9 + $0x8b8] sm:$0xff] }
 0x282   :  { %5313 = vmatprep.subr.bf16.mxu1 %v5312_v18  ;;  %v5332_v18 = vpack.c.bf16 %v613_v13, %v581_v12  ;;  %v5396_v23 = vpack.c.bf16 %v615_v15, %v583_v14  ;;  %v868_v12 = vld [vmem:[#allocation9 + $0x11a0] sm:$0xff]  ;;  %v838_v13 = vld [vmem:[#allocation9 + $0x10b0] sm:$0xff] }
 0x283   :  { %v870_v15 = vld [vmem:[#allocation9 + $0x11b0] sm:$0xff]  ;;  %v5350_v20 = vpack.c.bf16 %v868_v12, %v836_v11  ;;  %v1191_v11 = vld [vmem:[#allocation9 + $0x1bb8] sm:$0xff] }
 0x284   :  { %5251 = vmatpush1.bf16.msra.mxu0 %v5250_v25  ;;  %v645_v25 = vld [vmem:[#allocation9 + $0xaa8] sm:$0xff] }
 0x285   :  { %5315 = vmatpush1.bf16.msra.mxu1 %v5314_v26  ;;  %5317 = vmatprep.subr.bf16.mxu0 %v5316_v28  ;;  %v677_v26 = vld [vmem:[#allocation9 + $0xba8] sm:$0xff]  ;;  %v647_v28 = vld [vmem:[#allocation9 + $0xab8] sm:$0xff] }
 0x286   :  { %5381 = vmatprep.subr.bf16.mxu1 %v5380_v32  ;;  %v5398_v32 = vpack.c.bf16 %v614_v24, %v582_v22  ;;  %v5336_v33 = vpack.c.bf16 %v677_v26, %v645_v25  ;;  %v5414_v22 = vpack.c.bf16 %v870_v15, %v838_v13  ;;  %v900_v24 = vld [vmem:[#allocation9 + $0x12a0] sm:$0xff]  ;;  %v902_v26 = vld [vmem:[#allocation9 + $0x12b0] sm:$0xff] }
 0x287   :  { %2129 = vmatmul.mubr.f32.vlgmr.msra.gmra.mrb[8].mxu0 %v6869_v31  ;;  %v932_v25 = vld [vmem:[#allocation9 + $0x13a0] sm:$0xff] }
 0x288   :  { %2200 = vmatmul.mubr.f32.vlgmr.msra.gmra.mrb[12].mxu1 %v6869_v31  ;;  %5319 = vmatpush1.bf16.msra.mxu0 %v5318_v38  ;;  %v5400_v38 = vpack.c.bf16 %v679_v29, %v647_v28  ;;  %v934_v29 = vld [vmem:[#allocation9 + $0x13b0] sm:$0xff]  ;;  %v5354_v35 = vpack.c.bf16 %v932_v25, %v900_v24  ;;  %v1156_v15 = vld [vmem:[#allocation9 + $0x1aa0] sm:$0xff]  ;;  %v1255_v24 = vld [vmem:[#allocation9 + $0x1db8] sm:$0xff] }
 0x289   :  { %2270 = vmatprep.mubr.f32.mxu0 %v6871_v36  ;;  %5383 = vmatpush1.bf16.msra.mxu1 %v5382_v42  ;;  %v741_v42 = vld [vmem:[#allocation9 + $0xda8] sm:$0xff] }
 0x28a   :  { %2341 = vmatprep.mubr.f32.mxu1 %v6871_v36  ;;  %5321 = vmatprep.subr.bf16.mxu0 %v5320_v46  ;;  %v5402_v46 = vpack.c.bf16 %v678_v39, %v646_v37  ;;  %v5340_v47 = vpack.c.bf16 %v741_v42, %v709_v41  ;;  %v5418_v37 = vpack.c.bf16 %v934_v29, %v902_v26  ;;  %v964_v39 = vld [vmem:[#allocation9 + $0x14a0] sm:$0xff]  ;;  %v966_v42 = vld [vmem:[#allocation9 + $0x14b0] sm:$0xff] }
 0x28b   :  { %5385 = vmatprep.subr.bf16.mxu1 %v5384_v50  ;;  %v710_v50 = vld [vmem:[#allocation9 + $0xcb0] sm:$0xff]  ;;  %v996_v41 = vld [vmem:[#allocation9 + $0x15a0] sm:$0xff] }
 0x28c   :  { %5323 = vmatpush1.bf16.msra.mxu0 %v5322_v54  ;;  %v773_v54 = vld [vmem:[#allocation9 + $0xea8] sm:$0xff]  ;;  %v5406_v59 = vpack.c.bf16 %v742_v53, %v710_v50  ;;  %v5358_v49 = vpack.c.bf16 %v996_v41, %v964_v39  ;;  %v5422_v50 = vpack.c.bf16 %v998_v44, %v966_v42  ;;  %v1028_v53 = vld [vmem:[#allocation9 + $0x16a0] sm:$0xff]  ;;  %v1319_v39 = vld [vmem:[#allocation9 + $0x1fb8] sm:$0xff] }
 0x28d   :  { %5387 = vmatpush1.bf16.msra.mxu1 %v5386_v55  ;;  %5325 = vmatprep.subr.bf16.mxu0 %v5324_v56  ;;  %v805_v55 = vld [vmem:[#allocation9 + $0xfa8] sm:$0xff]  ;;  %v775_v56 = vld [vmem:[#allocation9 + $0xeb8] sm:$0xff]  ;;  %v1220_v29 = vld [vmem:[#allocation9 + $0x1ca0] sm:$0xff] }
 0x28e   :  { %5389 = vmatprep.subr.bf16.mxu1 %v5388_v60  ;;  %v5344_v60 = vpack.c.bf16 %v805_v55, %v773_v54  ;;  %v5408_v1 = vpack.c.bf16 %v807_v57, %v775_v56  ;;  %v1060_v54 = vld [vmem:[#allocation9 + $0x17a0] sm:$0xff]  ;;  %v1030_v55 = vld [vmem:[#allocation9 + $0x16b0] sm:$0xff] }
 0x28f   :  { %v1062_v57 = vld [vmem:[#allocation9 + $0x17b0] sm:$0xff]  ;;  %v5362_v62 = vpack.c.bf16 %v1060_v54, %v1028_v53  ;;  %v1284_v44 = vld [vmem:[#allocation9 + $0x1ea0] sm:$0xff]  ;;  %v363_v53 = vld [vmem:[#allocation9 + $0x1d8] sm:$0xff] }
 0x290   :  { %5327 = vmatpush1.bf16.msra.mxu0 %v5326_v4  ;;  %v837_v4 = vld [vmem:[#allocation9 + $0x10a8] sm:$0xff]  ;;  %v5426_v63 = vpack.c.bf16 %v1062_v57, %v1030_v55  ;;  %v328_v57 = vld [vmem:[#allocation9 + $0xc0] sm:$0xff] }
 0x291   :  { %5391 = vmatpush1.bf16.msra.mxu1 %v5390_v5  ;;  %5329 = vmatprep.subr.bf16.mxu0 %v5328_v6  ;;  %v869_v5 = vld [vmem:[#allocation9 + $0x11a8] sm:$0xff]  ;;  %v839_v6 = vld [vmem:[#allocation9 + $0x10b8] sm:$0xff] }
 0x292   :  { %5393 = vmatprep.subr.bf16.mxu1 %v5392_v10  ;;  %v5348_v10 = vpack.c.bf16 %v869_v5, %v837_v4  ;;  %v5412_v14 = vpack.c.bf16 %v871_v7, %v839_v6  ;;  %v1124_v4 = vld [vmem:[#allocation9 + $0x19a0] sm:$0xff]  ;;  %v1094_v5 = vld [vmem:[#allocation9 + $0x18b0] sm:$0xff] }
 0x293   :  { %v1126_v7 = vld [vmem:[#allocation9 + $0x19b0] sm:$0xff]  ;;  %v5366_v12 = vpack.c.bf16 %v1124_v4, %v1092_v2  ;;  %v395_v2 = vld [vmem:[#allocation9 + $0x2d8] sm:$0xff] }
 0x294   :  { %5331 = vmatpush1.bf16.msra.mxu0 %v5330_v16  ;;  %v901_v16 = vld [vmem:[#allocation9 + $0x12a8] sm:$0xff]  ;;  %v5430_v13 = vpack.c.bf16 %v1126_v7, %v1094_v5  ;;  %v427_v4 = vld [vmem:[#allocation9 + $0x3d8] sm:$0xff]  ;;  %v424_v7 = vld [vmem:[#allocation9 + $0x3c0] sm:$0xff] }
 0x295   :  { %5395 = vmatpush1.bf16.msra.mxu1 %v5394_v17  ;;  %5333 = vmatprep.subr.bf16.mxu0 %v5332_v18  ;;  %v933_v17 = vld [vmem:[#allocation9 + $0x13a8] sm:$0xff]  ;;  %v903_v18 = vld [vmem:[#allocation9 + $0x12b8] sm:$0xff] }
 0x296   :  { %5397 = vmatprep.subr.bf16.mxu1 %v5396_v23  ;;  %v5352_v23 = vpack.c.bf16 %v933_v17, %v901_v16  ;;  %v5416_v28 = vpack.c.bf16 %v935_v19, %v903_v18  ;;  %v1188_v16 = vld [vmem:[#allocation9 + $0x1ba0] sm:$0xff]  ;;  %v1158_v17 = vld [vmem:[#allocation9 + $0x1ab0] sm:$0xff] }
 0x297   :  { %v1190_v19 = vld [vmem:[#allocation9 + $0x1bb0] sm:$0xff]  ;;  %v5370_v25 = vpack.c.bf16 %v1188_v16, %v1156_v15  ;;  %v491_v15 = vld [vmem:[#allocation9 + $0x5d8] sm:$0xff] }
 0x298   :  { %5335 = vmatpush1.bf16.msra.mxu0 %v5334_v30  ;;  %v965_v30 = vld [vmem:[#allocation9 + $0x14a8] sm:$0xff]  ;;  %v5434_v26 = vpack.c.bf16 %v1190_v19, %v1158_v17  ;;  %v456_v19 = vld [vmem:[#allocation9 + $0x4c0] sm:$0xff] }
 0x299   :  { %5399 = vmatpush1.bf16.msra.mxu1 %v5398_v32  ;;  %5337 = vmatprep.subr.bf16.mxu0 %v5336_v33  ;;  %v997_v32 = vld [vmem:[#allocation9 + $0x15a8] sm:$0xff]  ;;  %v967_v33 = vld [vmem:[#allocation9 + $0x14b8] sm:$0xff] }
 0x29a   :  { %5401 = vmatprep.subr.bf16.mxu1 %v5400_v38  ;;  %v5356_v38 = vpack.c.bf16 %v997_v32, %v965_v30  ;;  %v5420_v43 = vpack.c.bf16 %v999_v34, %v967_v33  ;;  %v1252_v30 = vld [vmem:[#allocation9 + $0x1da0] sm:$0xff]  ;;  %v1222_v32 = vld [vmem:[#allocation9 + $0x1cb0] sm:$0xff] }
 0x29b   :  { %v1254_v34 = vld [vmem:[#allocation9 + $0x1db0] sm:$0xff]  ;;  %v5374_v41 = vpack.c.bf16 %v1252_v30, %v1220_v29  ;;  %v555_v29 = vld [vmem:[#allocation9 + $0x7d8] sm:$0xff] }
 0x29c   :  { %5339 = vmatpush1.bf16.msra.mxu0 %v5338_v45  ;;  %v1029_v45 = vld [vmem:[#allocation9 + $0x16a8] sm:$0xff]  ;;  %v5438_v42 = vpack.c.bf16 %v1254_v34, %v1222_v32  ;;  %v520_v34 = vld [vmem:[#allocation9 + $0x6c0] sm:$0xff] }
 0x29d   :  { %5403 = vmatpush1.bf16.msra.mxu1 %v5402_v46  ;;  %5341 = vmatprep.subr.bf16.mxu0 %v5340_v47  ;;  %v1061_v46 = vld [vmem:[#allocation9 + $0x17a8] sm:$0xff]  ;;  %v1031_v47 = vld [vmem:[#allocation9 + $0x16b8] sm:$0xff] }
 0x29e   :  { %5405 = vmatprep.subr.bf16.mxu1 %v5404_v52  ;;  %v5360_v52 = vpack.c.bf16 %v1061_v46, %v1029_v45  ;;  %v5424_v56 = vpack.c.bf16 %v1063_v48, %v1031_v47  ;;  %v1316_v45 = vld [vmem:[#allocation9 + $0x1fa0] sm:$0xff]  ;;  %v1286_v46 = vld [vmem:[#allocation9 + $0x1eb0] sm:$0xff] }
 0x29f   :  { %v1318_v48 = vld [vmem:[#allocation9 + $0x1fb0] sm:$0xff]  ;;  %v5378_v54 = vpack.c.bf16 %v1316_v45, %v1284_v44  ;;  %v619_v44 = vld [vmem:[#allocation9 + $0x9d8] sm:$0xff] }
 0x2a0   :  { %5343 = vmatpush1.bf16.msra.mxu0 %v5342_v58  ;;  %v1093_v58 = vld [vmem:[#allocation9 + $0x18a8] sm:$0xff]  ;;  %v5442_v55 = vpack.c.bf16 %v1318_v48, %v1286_v46  ;;  %v584_v48 = vld [vmem:[#allocation9 + $0x8c0] sm:$0xff] }
 0x2a1   :  { %5407 = vmatpush1.bf16.msra.mxu1 %v5406_v59  ;;  %5345 = vmatprep.subr.bf16.mxu0 %v5344_v60  ;;  %v1125_v59 = vld [vmem:[#allocation9 + $0x19a8] sm:$0xff]  ;;  %v1095_v60 = vld [vmem:[#allocation9 + $0x18b8] sm:$0xff] }
 0x2a2   :  { %5409 = vmatprep.subr.bf16.mxu1 %v5408_v1  ;;  %v5364_v1 = vpack.c.bf16 %v1125_v59, %v1093_v58  ;;  %v5428_v6 = vpack.c.bf16 %v1127_v61, %v1095_v60  ;;  %v360_v58 = vld [vmem:[#allocation9 + $0x1c0] sm:$0xff]  ;;  %v330_v60 = vld [vmem:[#allocation9 + $0xd0] sm:$0xff] }
 0x2a3   :  { %v362_v61 = vld [vmem:[#allocation9 + $0x1d0] sm:$0xff] }
 0x2a4   :  { %5347 = vmatpush1.bf16.msra.mxu0 %v5346_v8  ;;  %v1157_v8 = vld [vmem:[#allocation9 + $0x1aa8] sm:$0xff]  ;;  %v5510_v5 = vpack.c.bf16 %v362_v61, %v330_v60  ;;  %v648_v61 = vld [vmem:[#allocation9 + $0xac0] sm:$0xff] }
 0x2a5   :  { %5411 = vmatpush1.bf16.msra.mxu1 %v5410_v9  ;;  %5349 = vmatprep.subr.bf16.mxu0 %v5348_v10  ;;  %v1189_v9 = vld [vmem:[#allocation9 + $0x1ba8] sm:$0xff]  ;;  %v1159_v10 = vld [vmem:[#allocation9 + $0x1ab8] sm:$0xff] }
 0x2a6   :  { %5413 = vmatprep.subr.bf16.mxu1 %v5412_v14  ;;  %v5368_v14 = vpack.c.bf16 %v1189_v9, %v1157_v8  ;;  %v5432_v18 = vpack.c.bf16 %v1191_v11, %v1159_v10  ;;  %v394_v8 = vld [vmem:[#allocation9 + $0x2d0] sm:$0xff]  ;;  %v457_v11 = vld [vmem:[#allocation9 + $0x4c8] sm:$0xff] }
 0x2a7   :  { %v426_v10 = vld [vmem:[#allocation9 + $0x3d0] sm:$0xff] }
 0x2a8   :  { %5351 = vmatpush1.bf16.msra.mxu0 %v5350_v20  ;;  %v1221_v20 = vld [vmem:[#allocation9 + $0x1ca8] sm:$0xff]  ;;  %v5514_v17 = vpack.c.bf16 %v426_v10, %v394_v8 }
 0x2a9   :  { %5415 = vmatpush1.bf16.msra.mxu1 %v5414_v22  ;;  %5353 = vmatprep.subr.bf16.mxu0 %v5352_v23  ;;  %v1253_v22 = vld [vmem:[#allocation9 + $0x1da8] sm:$0xff]  ;;  %v1223_v23 = vld [vmem:[#allocation9 + $0x1cb8] sm:$0xff] }
 0x2aa   :  { %5417 = vmatprep.subr.bf16.mxu1 %v5416_v28  ;;  %v5372_v28 = vpack.c.bf16 %v1253_v22, %v1221_v20  ;;  %v5436_v33 = vpack.c.bf16 %v1255_v24, %v1223_v23  ;;  %v488_v20 = vld [vmem:[#allocation9 + $0x5c0] sm:$0xff]  ;;  %v458_v22 = vld [vmem:[#allocation9 + $0x4d0] sm:$0xff] }
 0x2ab   :  { %v490_v24 = vld [vmem:[#allocation9 + $0x5d0] sm:$0xff]  ;;  %v5454_v30 = vpack.c.bf16 %v488_v20, %v456_v19  ;;  %v811_v19 = vld [vmem:[#allocation9 + $0xfd8] sm:$0xff] }
 0x2ac   :  { %5355 = vmatpush1.bf16.msra.mxu0 %v5354_v35  ;;  %v1285_v35 = vld [vmem:[#allocation9 + $0x1ea8] sm:$0xff]  ;;  %v5518_v32 = vpack.c.bf16 %v490_v24, %v458_v22  ;;  %v776_v24 = vld [vmem:[#allocation9 + $0xec0] sm:$0xff] }
 0x2ad   :  { %5419 = vmatpush1.bf16.msra.mxu1 %v5418_v37  ;;  %5357 = vmatprep.subr.bf16.mxu0 %v5356_v38  ;;  %v1317_v37 = vld [vmem:[#allocation9 + $0x1fa8] sm:$0xff]  ;;  %v1287_v38 = vld [vmem:[#allocation9 + $0x1eb8] sm:$0xff] }
 0x2ae   :  { %5421 = vmatprep.subr.bf16.mxu1 %v5420_v43  ;;  %v5376_v43 = vpack.c.bf16 %v1317_v37, %v1285_v35  ;;  %v5440_v47 = vpack.c.bf16 %v1319_v39, %v1287_v38  ;;  %v552_v35 = vld [vmem:[#allocation9 + $0x7c0] sm:$0xff]  ;;  %v522_v37 = vld [vmem:[#allocation9 + $0x6d0] sm:$0xff] }
 0x2af   :  { %v554_v39 = vld [vmem:[#allocation9 + $0x7d0] sm:$0xff]  ;;  %v5458_v45 = vpack.c.bf16 %v552_v35, %v520_v34  ;;  %v875_v34 = vld [vmem:[#allocation9 + $0x11d8] sm:$0xff] }
 0x2b0   :  { %5359 = vmatpush1.bf16.msra.mxu0 %v5358_v49  ;;  %v329_v49 = vld [vmem:[#allocation9 + $0xc8] sm:$0xff]  ;;  %v5522_v46 = vpack.c.bf16 %v554_v39, %v522_v37  ;;  %v840_v39 = vld [vmem:[#allocation9 + $0x10c0] sm:$0xff] }
 0x2b1   :  { %5423 = vmatpush1.bf16.msra.mxu1 %v5422_v50  ;;  %5361 = vmatprep.subr.bf16.mxu0 %v5360_v52  ;;  %v361_v50 = vld [vmem:[#allocation9 + $0x1c8] sm:$0xff]  ;;  %v331_v52 = vld [vmem:[#allocation9 + $0xd8] sm:$0xff] }
 0x2b2   :  { %5425 = vmatprep.subr.bf16.mxu1 %v5424_v56  ;;  %v5444_v56 = vpack.c.bf16 %v361_v50, %v329_v49  ;;  %v5508_v59 = vpack.c.bf16 %v363_v53, %v331_v52  ;;  %v616_v49 = vld [vmem:[#allocation9 + $0x9c0] sm:$0xff]  ;;  %v586_v50 = vld [vmem:[#allocation9 + $0x8d0] sm:$0xff] }
 0x2b3   :  { %v618_v53 = vld [vmem:[#allocation9 + $0x9d0] sm:$0xff] }
 0x2b4   :  { %5363 = vmatpush1.bf16.msra.mxu0 %v5362_v62  ;;  %v393_v62 = vld [vmem:[#allocation9 + $0x2c8] sm:$0xff] }
 0x2b5   :  { %5427 = vmatpush1.bf16.msra.mxu1 %v5426_v63  ;;  %5365 = vmatprep.subr.bf16.mxu0 %v5364_v1  ;;  %v425_v63 = vld [vmem:[#allocation9 + $0x3c8] sm:$0xff]  ;;  %v5446_v1 = vpack.c.bf16 %v360_v58, %v328_v57  ;;  %v683_v57 = vld [vmem:[#allocation9 + $0xbd8] sm:$0xff]  ;;  %v5462_v58 = vpack.c.bf16 %v616_v49, %v584_v48 }
 0x2b6   :  { %5429 = vmatprep.subr.bf16.mxu1 %v5428_v6  ;;  %v392_v6 = vld [vmem:[#allocation9 + $0x2c0] sm:$0xff]  ;;  %v5448_v9 = vpack.c.bf16 %v425_v63, %v393_v62  ;;  %v650_v63 = vld [vmem:[#allocation9 + $0xad0] sm:$0xff]  ;;  %v939_v48 = vld [vmem:[#allocation9 + $0x13d8] sm:$0xff] }
 0x2b7   :  { %v5450_v16 = vpack.c.bf16 %v424_v7, %v392_v6  ;;  %v680_v62 = vld [vmem:[#allocation9 + $0xbc0] sm:$0xff]  ;;  %v715_v6 = vld [vmem:[#allocation9 + $0xcd8] sm:$0xff] }
 0x2b8   :  { %5367 = vmatpush1.bf16.msra.mxu0 %v5366_v12  ;;  %v489_v12 = vld [vmem:[#allocation9 + $0x5c8] sm:$0xff]  ;;  %v747_v7 = vld [vmem:[#allocation9 + $0xdd8] sm:$0xff]  ;;  %v5466_v8 = vpack.c.bf16 %v680_v62, %v648_v61 }
 0x2b9   :  { %5431 = vmatpush1.bf16.msra.mxu1 %v5430_v13  ;;  %5369 = vmatprep.subr.bf16.mxu0 %v5368_v14  ;;  %v5512_v13 = vpack.c.bf16 %v427_v4, %v395_v2  ;;  %v459_v14 = vld [vmem:[#allocation9 + $0x4d8] sm:$0xff]  ;;  %v682_v2 = vld [vmem:[#allocation9 + $0xbd0] sm:$0xff]  ;;  %v713_v4 = vld [vmem:[#allocation9 + $0xcc8] sm:$0xff] }
 0x2ba   :  { %5433 = vmatprep.subr.bf16.mxu1 %v5432_v18  ;;  %v5452_v18 = vpack.c.bf16 %v489_v12, %v457_v11  ;;  %v5516_v23 = vpack.c.bf16 %v491_v15, %v459_v14  ;;  %v712_v11 = vld [vmem:[#allocation9 + $0xcc0] sm:$0xff]  ;;  %v5532_v14 = vpack.c.bf16 %v747_v7, %v715_v6  ;;  %v746_v15 = vld [vmem:[#allocation9 + $0xdd0] sm:$0xff]  ;;  %v1003_v61 = vld [vmem:[#allocation9 + $0x15d8] sm:$0xff] }
 0x2bb   :  { %v744_v12 = vld [vmem:[#allocation9 + $0xdc0] sm:$0xff]  ;;  %v1002_v7 = vld [vmem:[#allocation9 + $0x15d0] sm:$0xff] }
 0x2bc   :  { %5371 = vmatpush1.bf16.msra.mxu0 %v5370_v25  ;;  %v521_v25 = vld [vmem:[#allocation9 + $0x6c8] sm:$0xff]  ;;  %v5470_v20 = vpack.c.bf16 %v744_v12, %v712_v11  ;;  %v1067_v11 = vld [vmem:[#allocation9 + $0x17d8] sm:$0xff] }
 0x2bd   :  { %5435 = vmatpush1.bf16.msra.mxu1 %v5434_v26  ;;  %5373 = vmatprep.subr.bf16.mxu0 %v5372_v28  ;;  %v553_v26 = vld [vmem:[#allocation9 + $0x7c8] sm:$0xff]  ;;  %v523_v28 = vld [vmem:[#allocation9 + $0x6d8] sm:$0xff] }
 0x2be   :  { %5437 = vmatprep.subr.bf16.mxu1 %v5436_v33  ;;  %v5456_v33 = vpack.c.bf16 %v553_v26, %v521_v25  ;;  %v5520_v38 = vpack.c.bf16 %v555_v29, %v523_v28  ;;  %v808_v25 = vld [vmem:[#allocation9 + $0xfc0] sm:$0xff]  ;;  %v778_v26 = vld [vmem:[#allocation9 + $0xed0] sm:$0xff] }
 0x2bf   :  { %v810_v29 = vld [vmem:[#allocation9 + $0xfd0] sm:$0xff]  ;;  %v5474_v35 = vpack.c.bf16 %v808_v25, %v776_v24  ;;  %v1131_v24 = vld [vmem:[#allocation9 + $0x19d8] sm:$0xff] }
 0x2c0   :  { %5375 = vmatpush1.bf16.msra.mxu0 %v5374_v41  ;;  %v585_v41 = vld [vmem:[#allocation9 + $0x8c8] sm:$0xff]  ;;  %v5538_v37 = vpack.c.bf16 %v810_v29, %v778_v26  ;;  %v1096_v29 = vld [vmem:[#allocation9 + $0x18c0] sm:$0xff] }
 0x2c1   :  { %5439 = vmatpush1.bf16.msra.mxu1 %v5438_v42  ;;  %5377 = vmatprep.subr.bf16.mxu0 %v5376_v43  ;;  %v617_v42 = vld [vmem:[#allocation9 + $0x9c8] sm:$0xff]  ;;  %v587_v43 = vld [vmem:[#allocation9 + $0x8d8] sm:$0xff] }
 0x2c2   :  { %5441 = vmatprep.subr.bf16.mxu1 %v5440_v47  ;;  %v5460_v47 = vpack.c.bf16 %v617_v42, %v585_v41  ;;  %v5524_v52 = vpack.c.bf16 %v619_v44, %v587_v43  ;;  %v872_v41 = vld [vmem:[#allocation9 + $0x11c0] sm:$0xff]  ;;  %v842_v42 = vld [vmem:[#allocation9 + $0x10d0] sm:$0xff] }
 0x2c3   :  { %v874_v44 = vld [vmem:[#allocation9 + $0x11d0] sm:$0xff]  ;;  %v5478_v49 = vpack.c.bf16 %v872_v41, %v840_v39  ;;  %v1195_v39 = vld [vmem:[#allocation9 + $0x1bd8] sm:$0xff] }
 0x2c4   :  { %5379 = vmatpush1.bf16.msra.mxu0 %v5378_v54  ;;  %v649_v54 = vld [vmem:[#allocation9 + $0xac8] sm:$0xff] }
 0x2c5   :  { %5443 = vmatpush1.bf16.msra.mxu1 %v5442_v55  ;;  %5445 = vmatprep.subr.bf16.mxu0 %v5444_v56  ;;  %v681_v55 = vld [vmem:[#allocation9 + $0xbc8] sm:$0xff]  ;;  %v651_v56 = vld [vmem:[#allocation9 + $0xad8] sm:$0xff] }
 0x2c6   :  { %5509 = vmatprep.subr.bf16.mxu1 %v5508_v59  ;;  %v5526_v59 = vpack.c.bf16 %v618_v53, %v586_v50  ;;  %v5464_v60 = vpack.c.bf16 %v681_v55, %v649_v54  ;;  %v5542_v50 = vpack.c.bf16 %v874_v44, %v842_v42  ;;  %v904_v53 = vld [vmem:[#allocation9 + $0x12c0] sm:$0xff]  ;;  %v906_v55 = vld [vmem:[#allocation9 + $0x12d0] sm:$0xff] }
 0x2c7   :  { %2271 = vmatmul.mubr.f32.vlgmr.msra.gmra.mrb[10].mxu0 %v6869_v31  ;;  %v936_v54 = vld [vmem:[#allocation9 + $0x13c0] sm:$0xff] }
 0x2c8   :  { %2342 = vmatmul.mubr.f32.vlgmr.msra.gmra.mrb[14].mxu1 %v6869_v31  ;;  %5447 = vmatpush1.bf16.msra.mxu0 %v5446_v1  ;;  %v5528_v1 = vpack.c.bf16 %v683_v57, %v651_v56  ;;  %v938_v57 = vld [vmem:[#allocation9 + $0x13d0] sm:$0xff]  ;;  %v5482_v62 = vpack.c.bf16 %v936_v54, %v904_v53  ;;  %v1160_v44 = vld [vmem:[#allocation9 + $0x1ac0] sm:$0xff]  ;;  %v1259_v53 = vld [vmem:[#allocation9 + $0x1dd8] sm:$0xff] }
 0x2c9   :  { %2412 = vmatprep.mubr.f32.mxu0 %v6871_v36  ;;  %5511 = vmatpush1.bf16.msra.mxu1 %v5510_v5  ;;  %v745_v5 = vld [vmem:[#allocation9 + $0xdc8] sm:$0xff] }
 0x2ca   :  { %2483 = vmatprep.mubr.f32.mxu1 %v6871_v36  ;;  %5449 = vmatprep.subr.bf16.mxu0 %v5448_v9  ;;  %v5530_v9 = vpack.c.bf16 %v682_v2, %v650_v63  ;;  %v5468_v10 = vpack.c.bf16 %v745_v5, %v713_v4  ;;  %v5546_v63 = vpack.c.bf16 %v938_v57, %v906_v55  ;;  %v968_v2 = vld [vmem:[#allocation9 + $0x14c0] sm:$0xff]  ;;  %v970_v5 = vld [vmem:[#allocation9 + $0x14d0] sm:$0xff] }
 0x2cb   :  { %5513 = vmatprep.subr.bf16.mxu1 %v5512_v13  ;;  %v714_v13 = vld [vmem:[#allocation9 + $0xcd0] sm:$0xff]  ;;  %v1000_v4 = vld [vmem:[#allocation9 + $0x15c0] sm:$0xff] }
 0x2cc   :  { %5451 = vmatpush1.bf16.msra.mxu0 %v5450_v16  ;;  %v777_v16 = vld [vmem:[#allocation9 + $0xec8] sm:$0xff]  ;;  %v5534_v22 = vpack.c.bf16 %v746_v15, %v714_v13  ;;  %v5486_v12 = vpack.c.bf16 %v1000_v4, %v968_v2  ;;  %v5550_v13 = vpack.c.bf16 %v1002_v7, %v970_v5  ;;  %v1032_v15 = vld [vmem:[#allocation9 + $0x16c0] sm:$0xff]  ;;  %v1323_v2 = vld [vmem:[#allocation9 + $0x1fd8] sm:$0xff] }
 0x2cd   :  { %5515 = vmatpush1.bf16.msra.mxu1 %v5514_v17  ;;  %5453 = vmatprep.subr.bf16.mxu0 %v5452_v18  ;;  %v809_v17 = vld [vmem:[#allocation9 + $0xfc8] sm:$0xff]  ;;  %v779_v18 = vld [vmem:[#allocation9 + $0xed8] sm:$0xff]  ;;  %v1224_v57 = vld [vmem:[#allocation9 + $0x1cc0] sm:$0xff] }
 0x2ce   :  { %5517 = vmatprep.subr.bf16.mxu1 %v5516_v23  ;;  %v5472_v23 = vpack.c.bf16 %v809_v17, %v777_v16  ;;  %v5536_v28 = vpack.c.bf16 %v811_v19, %v779_v18  ;;  %v1064_v16 = vld [vmem:[#allocation9 + $0x17c0] sm:$0xff]  ;;  %v1034_v17 = vld [vmem:[#allocation9 + $0x16d0] sm:$0xff] }
 0x2cf   :  { %v1066_v19 = vld [vmem:[#allocation9 + $0x17d0] sm:$0xff]  ;;  %v5490_v25 = vpack.c.bf16 %v1064_v16, %v1032_v15  ;;  %v1288_v7 = vld [vmem:[#allocation9 + $0x1ec0] sm:$0xff]  ;;  %v367_v15 = vld [vmem:[#allocation9 + $0x1f8] sm:$0xff] }
 0x2d0   :  { %5455 = vmatpush1.bf16.msra.mxu0 %v5454_v30  ;;  %v841_v30 = vld [vmem:[#allocation9 + $0x10c8] sm:$0xff]  ;;  %v5554_v26 = vpack.c.bf16 %v1066_v19, %v1034_v17  ;;  %v332_v19 = vld [vmem:[#allocation9 + $0xe0] sm:$0xff] }
 0x2d1   :  { %5519 = vmatpush1.bf16.msra.mxu1 %v5518_v32  ;;  %5457 = vmatprep.subr.bf16.mxu0 %v5456_v33  ;;  %v873_v32 = vld [vmem:[#allocation9 + $0x11c8] sm:$0xff]  ;;  %v843_v33 = vld [vmem:[#allocation9 + $0x10d8] sm:$0xff] }
 0x2d2   :  { %5521 = vmatprep.subr.bf16.mxu1 %v5520_v38  ;;  %v5476_v38 = vpack.c.bf16 %v873_v32, %v841_v30  ;;  %v5540_v43 = vpack.c.bf16 %v875_v34, %v843_v33  ;;  %v1128_v30 = vld [vmem:[#allocation9 + $0x19c0] sm:$0xff]  ;;  %v1098_v32 = vld [vmem:[#allocation9 + $0x18d0] sm:$0xff] }
 0x2d3   :  { %v1130_v34 = vld [vmem:[#allocation9 + $0x19d0] sm:$0xff]  ;;  %v5494_v41 = vpack.c.bf16 %v1128_v30, %v1096_v29  ;;  %v399_v29 = vld [vmem:[#allocation9 + $0x2f8] sm:$0xff] }
 0x2d4   :  { %5459 = vmatpush1.bf16.msra.mxu0 %v5458_v45  ;;  %v905_v45 = vld [vmem:[#allocation9 + $0x12c8] sm:$0xff]  ;;  %v5558_v42 = vpack.c.bf16 %v1130_v34, %v1098_v32  ;;  %v431_v30 = vld [vmem:[#allocation9 + $0x3f8] sm:$0xff]  ;;  %v428_v34 = vld [vmem:[#allocation9 + $0x3e0] sm:$0xff] }
 0x2d5   :  { %5523 = vmatpush1.bf16.msra.mxu1 %v5522_v46  ;;  %5461 = vmatprep.subr.bf16.mxu0 %v5460_v47  ;;  %v937_v46 = vld [vmem:[#allocation9 + $0x13c8] sm:$0xff]  ;;  %v907_v47 = vld [vmem:[#allocation9 + $0x12d8] sm:$0xff] }
 0x2d6   :  { %5525 = vmatprep.subr.bf16.mxu1 %v5524_v52  ;;  %v5480_v52 = vpack.c.bf16 %v937_v46, %v905_v45  ;;  %v5544_v56 = vpack.c.bf16 %v939_v48, %v907_v47  ;;  %v1192_v45 = vld [vmem:[#allocation9 + $0x1bc0] sm:$0xff]  ;;  %v1162_v46 = vld [vmem:[#allocation9 + $0x1ad0] sm:$0xff] }
 0x2d7   :  { %v1194_v48 = vld [vmem:[#allocation9 + $0x1bd0] sm:$0xff]  ;;  %v5498_v54 = vpack.c.bf16 %v1192_v45, %v1160_v44  ;;  %v495_v44 = vld [vmem:[#allocation9 + $0x5f8] sm:$0xff] }
 0x2d8   :  { %5463 = vmatpush1.bf16.msra.mxu0 %v5462_v58  ;;  %v969_v58 = vld [vmem:[#allocation9 + $0x14c8] sm:$0xff]  ;;  %v5562_v55 = vpack.c.bf16 %v1194_v48, %v1162_v46  ;;  %v460_v48 = vld [vmem:[#allocation9 + $0x4e0] sm:$0xff] }
 0x2d9   :  { %5527 = vmatpush1.bf16.msra.mxu1 %v5526_v59  ;;  %5465 = vmatprep.subr.bf16.mxu0 %v5464_v60  ;;  %v1001_v59 = vld [vmem:[#allocation9 + $0x15c8] sm:$0xff]  ;;  %v971_v60 = vld [vmem:[#allocation9 + $0x14d8] sm:$0xff] }
 0x2da   :  { %5529 = vmatprep.subr.bf16.mxu1 %v5528_v1  ;;  %v5484_v1 = vpack.c.bf16 %v1001_v59, %v969_v58  ;;  %v5548_v6 = vpack.c.bf16 %v1003_v61, %v971_v60  ;;  %v1256_v58 = vld [vmem:[#allocation9 + $0x1dc0] sm:$0xff]  ;;  %v1226_v59 = vld [vmem:[#allocation9 + $0x1cd0] sm:$0xff] }
 0x2db   :  { %v1258_v61 = vld [vmem:[#allocation9 + $0x1dd0] sm:$0xff]  ;;  %v5502_v4 = vpack.c.bf16 %v1256_v58, %v1224_v57  ;;  %v559_v57 = vld [vmem:[#allocation9 + $0x7f8] sm:$0xff] }
 0x2dc   :  { %5467 = vmatpush1.bf16.msra.mxu0 %v5466_v8  ;;  %v1033_v8 = vld [vmem:[#allocation9 + $0x16c8] sm:$0xff]  ;;  %v5566_v5 = vpack.c.bf16 %v1258_v61, %v1226_v59  ;;  %v524_v61 = vld [vmem:[#allocation9 + $0x6e0] sm:$0xff] }
 0x2dd   :  { %5531 = vmatpush1.bf16.msra.mxu1 %v5530_v9  ;;  %5469 = vmatprep.subr.bf16.mxu0 %v5468_v10  ;;  %v1065_v9 = vld [vmem:[#allocation9 + $0x17c8] sm:$0xff]  ;;  %v1035_v10 = vld [vmem:[#allocation9 + $0x16d8] sm:$0xff] }
 0x2de   :  { %5533 = vmatprep.subr.bf16.mxu1 %v5532_v14  ;;  %v5488_v14 = vpack.c.bf16 %v1065_v9, %v1033_v8  ;;  %v5552_v18 = vpack.c.bf16 %v1067_v11, %v1035_v10  ;;  %v1320_v8 = vld [vmem:[#allocation9 + $0x1fc0] sm:$0xff]  ;;  %v1290_v9 = vld [vmem:[#allocation9 + $0x1ed0] sm:$0xff] }
 0x2df   :  { %v1322_v11 = vld [vmem:[#allocation9 + $0x1fd0] sm:$0xff]  ;;  %v5506_v16 = vpack.c.bf16 %v1320_v8, %v1288_v7 }
 0x2e0   :  { %5471 = vmatpush1.bf16.msra.mxu0 %v5470_v20  ;;  %v1097_v20 = vld [vmem:[#allocation9 + $0x18c8] sm:$0xff]  ;;  %v5570_v17 = vpack.c.bf16 %v1322_v11, %v1290_v9  ;;  %v620_v11 = vld [vmem:[#allocation9 + $0x9e0] sm:$0xff] }
 0x2e1   :  { %5535 = vmatpush1.bf16.msra.mxu1 %v5534_v22  ;;  %5473 = vmatprep.subr.bf16.mxu0 %v5472_v23  ;;  %v1129_v22 = vld [vmem:[#allocation9 + $0x19c8] sm:$0xff]  ;;  %v1099_v23 = vld [vmem:[#allocation9 + $0x18d8] sm:$0xff] }
 0x2e2   :  { %5537 = vmatprep.subr.bf16.mxu1 %v5536_v28  ;;  %v5492_v28 = vpack.c.bf16 %v1129_v22, %v1097_v20  ;;  %v5556_v33 = vpack.c.bf16 %v1131_v24, %v1099_v23  ;;  %v364_v20 = vld [vmem:[#allocation9 + $0x1e0] sm:$0xff]  ;;  %v334_v23 = vld [vmem:[#allocation9 + $0xf0] sm:$0xff] }
 0x2e3   :  { %v366_v24 = vld [vmem:[#allocation9 + $0x1f0] sm:$0xff] }
 0x2e4   :  { %5475 = vmatpush1.bf16.msra.mxu0 %v5474_v35  ;;  %v1161_v35 = vld [vmem:[#allocation9 + $0x1ac8] sm:$0xff]  ;;  %v5638_v32 = vpack.c.bf16 %v366_v24, %v334_v23  ;;  %v652_v23 = vld [vmem:[#allocation9 + $0xae0] sm:$0xff] }
 0x2e5   :  { %5539 = vmatpush1.bf16.msra.mxu1 %v5538_v37  ;;  %5477 = vmatprep.subr.bf16.mxu0 %v5476_v38  ;;  %v1193_v37 = vld [vmem:[#allocation9 + $0x1bc8] sm:$0xff]  ;;  %v1163_v38 = vld [vmem:[#allocation9 + $0x1ad8] sm:$0xff]  ;;  %v684_v24 = vld [vmem:[#allocation9 + $0xbe0] sm:$0xff] }
 0x2e6   :  { %5541 = vmatprep.subr.bf16.mxu1 %v5540_v43  ;;  %v5496_v43 = vpack.c.bf16 %v1193_v37, %v1161_v35  ;;  %v5560_v47 = vpack.c.bf16 %v1195_v39, %v1163_v38  ;;  %v398_v35 = vld [vmem:[#allocation9 + $0x2f0] sm:$0xff]  ;;  %v461_v39 = vld [vmem:[#allocation9 + $0x4e8] sm:$0xff] }
 0x2e7   :  { %v430_v38 = vld [vmem:[#allocation9 + $0x3f0] sm:$0xff] }
 0x2e8   :  { %5479 = vmatpush1.bf16.msra.mxu0 %v5478_v49  ;;  %v1225_v49 = vld [vmem:[#allocation9 + $0x1cc8] sm:$0xff]  ;;  %v5642_v46 = vpack.c.bf16 %v430_v38, %v398_v35  ;;  %v716_v38 = vld [vmem:[#allocation9 + $0xce0] sm:$0xff] }
 0x2e9   :  { %5543 = vmatpush1.bf16.msra.mxu1 %v5542_v50  ;;  %5481 = vmatprep.subr.bf16.mxu0 %v5480_v52  ;;  %v1257_v50 = vld [vmem:[#allocation9 + $0x1dc8] sm:$0xff]  ;;  %v1227_v52 = vld [vmem:[#allocation9 + $0x1cd8] sm:$0xff] }
 0x2ea   :  { %5545 = vmatprep.subr.bf16.mxu1 %v5544_v56  ;;  %v5500_v56 = vpack.c.bf16 %v1257_v50, %v1225_v49  ;;  %v5564_v60 = vpack.c.bf16 %v1259_v53, %v1227_v52  ;;  %v492_v49 = vld [vmem:[#allocation9 + $0x5e0] sm:$0xff]  ;;  %v462_v50 = vld [vmem:[#allocation9 + $0x4f0] sm:$0xff] }
 0x2eb   :  { %v494_v53 = vld [vmem:[#allocation9 + $0x5f0] sm:$0xff]  ;;  %v5582_v58 = vpack.c.bf16 %v492_v49, %v460_v48 }
 0x2ec   :  { %5483 = vmatpush1.bf16.msra.mxu0 %v5482_v62  ;;  %v1289_v62 = vld [vmem:[#allocation9 + $0x1ec8] sm:$0xff]  ;;  %v5646_v59 = vpack.c.bf16 %v494_v53, %v462_v50  ;;  %v812_v53 = vld [vmem:[#allocation9 + $0xfe0] sm:$0xff] }
 0x2ed   :  { %5547 = vmatpush1.bf16.msra.mxu1 %v5546_v63  ;;  %5485 = vmatprep.subr.bf16.mxu0 %v5484_v1  ;;  %v1321_v63 = vld [vmem:[#allocation9 + $0x1fc8] sm:$0xff]  ;;  %v1291_v1 = vld [vmem:[#allocation9 + $0x1ed8] sm:$0xff] }
 0x2ee   :  { %5549 = vmatprep.subr.bf16.mxu1 %v5548_v6  ;;  %v5504_v6 = vpack.c.bf16 %v1321_v63, %v1289_v62  ;;  %v5568_v10 = vpack.c.bf16 %v1323_v2, %v1291_v1  ;;  %v556_v62 = vld [vmem:[#allocation9 + $0x7e0] sm:$0xff]  ;;  %v526_v63 = vld [vmem:[#allocation9 + $0x6f0] sm:$0xff]  ;;  %v589_v2 = vld [vmem:[#allocation9 + $0x8e8] sm:$0xff] }
 0x2ef   :  { %v5586_v7 = vpack.c.bf16 %v556_v62, %v524_v61 }
 0x2f0   :  { %5487 = vmatpush1.bf16.msra.mxu0 %v5486_v12  ;;  %v333_v12 = vld [vmem:[#allocation9 + $0xe8] sm:$0xff] }
 0x2f1   :  { %5551 = vmatpush1.bf16.msra.mxu1 %v5550_v13  ;;  %5489 = vmatprep.subr.bf16.mxu0 %v5488_v14  ;;  %v365_v13 = vld [vmem:[#allocation9 + $0x1e8] sm:$0xff]  ;;  %v335_v14 = vld [vmem:[#allocation9 + $0xf8] sm:$0xff] }
 0x2f2   :  { %5553 = vmatprep.subr.bf16.mxu1 %v5552_v18  ;;  %v5572_v18 = vpack.c.bf16 %v365_v13, %v333_v12  ;;  %v5636_v22 = vpack.c.bf16 %v367_v15, %v335_v14  ;;  %v590_v12 = vld [vmem:[#allocation9 + $0x8f0] sm:$0xff]  ;;  %v653_v15 = vld [vmem:[#allocation9 + $0xae8] sm:$0xff] }
 0x2f3   :  { %v622_v14 = vld [vmem:[#allocation9 + $0x9f0] sm:$0xff] }
 0x2f4   :  { %5491 = vmatpush1.bf16.msra.mxu0 %v5490_v25  ;;  %v397_v25 = vld [vmem:[#allocation9 + $0x2e8] sm:$0xff] }
 0x2f5   :  { %5555 = vmatpush1.bf16.msra.mxu1 %v5554_v26  ;;  %5493 = vmatprep.subr.bf16.mxu0 %v5492_v28  ;;  %v429_v26 = vld [vmem:[#allocation9 + $0x3e8] sm:$0xff]  ;;  %v5574_v28 = vpack.c.bf16 %v364_v20, %v332_v19  ;;  %v5654_v20 = vpack.c.bf16 %v622_v14, %v590_v12  ;;  %v940_v14 = vld [vmem:[#allocation9 + $0x13e0] sm:$0xff] }
 0x2f6   :  { %5557 = vmatprep.subr.bf16.mxu1 %v5556_v33  ;;  %v396_v33 = vld [vmem:[#allocation9 + $0x2e0] sm:$0xff]  ;;  %v5576_v37 = vpack.c.bf16 %v429_v26, %v397_v25  ;;  %v654_v25 = vld [vmem:[#allocation9 + $0xaf0] sm:$0xff] }
 0x2f7   :  { %v5578_v45 = vpack.c.bf16 %v428_v34, %v396_v33  ;;  %v751_v33 = vld [vmem:[#allocation9 + $0xdf8] sm:$0xff]  ;;  %v5594_v34 = vpack.c.bf16 %v684_v24, %v652_v23 }
 0x2f8   :  { %5495 = vmatpush1.bf16.msra.mxu0 %v5494_v41  ;;  %v493_v41 = vld [vmem:[#allocation9 + $0x5e8] sm:$0xff] }
 0x2f9   :  { %5559 = vmatpush1.bf16.msra.mxu1 %v5558_v42  ;;  %5497 = vmatprep.subr.bf16.mxu0 %v5496_v43  ;;  %v5640_v42 = vpack.c.bf16 %v431_v30, %v399_v29  ;;  %v463_v43 = vld [vmem:[#allocation9 + $0x4f8] sm:$0xff]  ;;  %v717_v29 = vld [vmem:[#allocation9 + $0xce8] sm:$0xff] }
 0x2fa   :  { %5561 = vmatprep.subr.bf16.mxu1 %v5560_v47  ;;  %v5580_v47 = vpack.c.bf16 %v493_v41, %v461_v39  ;;  %v5644_v52 = vpack.c.bf16 %v495_v44, %v463_v43  ;;  %v749_v30 = vld [vmem:[#allocation9 + $0xde8] sm:$0xff]  ;;  %v748_v39 = vld [vmem:[#allocation9 + $0xde0] sm:$0xff]  ;;  %v718_v41 = vld [vmem:[#allocation9 + $0xcf0] sm:$0xff] }
 0x2fb   :  { %v750_v43 = vld [vmem:[#allocation9 + $0xdf0] sm:$0xff]  ;;  %v781_v44 = vld [vmem:[#allocation9 + $0xee8] sm:$0xff]  ;;  %v5598_v48 = vpack.c.bf16 %v748_v39, %v716_v38 }
 0x2fc   :  { %5499 = vmatpush1.bf16.msra.mxu0 %v5498_v54  ;;  %v525_v54 = vld [vmem:[#allocation9 + $0x6e8] sm:$0xff]  ;;  %v5662_v49 = vpack.c.bf16 %v750_v43, %v718_v41  ;;  %v1068_v43 = vld [vmem:[#allocation9 + $0x17e0] sm:$0xff] }
 0x2fd   :  { %5563 = vmatpush1.bf16.msra.mxu1 %v5562_v55  ;;  %5501 = vmatprep.subr.bf16.mxu0 %v5500_v56  ;;  %v557_v55 = vld [vmem:[#allocation9 + $0x7e8] sm:$0xff]  ;;  %v527_v56 = vld [vmem:[#allocation9 + $0x6f8] sm:$0xff] }
 0x2fe   :  { %5565 = vmatprep.subr.bf16.mxu1 %v5564_v60  ;;  %v5584_v60 = vpack.c.bf16 %v557_v55, %v525_v54  ;;  %v5648_v1 = vpack.c.bf16 %v559_v57, %v527_v56  ;;  %v782_v54 = vld [vmem:[#allocation9 + $0xef0] sm:$0xff]  ;;  %v845_v57 = vld [vmem:[#allocation9 + $0x10e8] sm:$0xff] }
 0x2ff   :  { %v814_v56 = vld [vmem:[#allocation9 + $0xff0] sm:$0xff] }
 0x300   :  { %5503 = vmatpush1.bf16.msra.mxu0 %v5502_v4  ;;  %v621_v4 = vld [vmem:[#allocation9 + $0x9e8] sm:$0xff]  ;;  %v5666_v62 = vpack.c.bf16 %v814_v56, %v782_v54  ;;  %v1132_v56 = vld [vmem:[#allocation9 + $0x19e0] sm:$0xff] }
 0x301   :  { %5567 = vmatpush1.bf16.msra.mxu1 %v5566_v5  ;;  %5505 = vmatprep.subr.bf16.mxu0 %v5504_v6  ;;  %v591_v5 = vld [vmem:[#allocation9 + $0x8f8] sm:$0xff]  ;;  %v5588_v9 = vpack.c.bf16 %v621_v4, %v589_v2  ;;  %v846_v2 = vld [vmem:[#allocation9 + $0x10f0] sm:$0xff] }
 0x302   :  { %5569 = vmatprep.subr.bf16.mxu1 %v5568_v10  ;;  %v623_v6 = vld [vmem:[#allocation9 + $0x9f8] sm:$0xff]  ;;  %v588_v10 = vld [vmem:[#allocation9 + $0x8e0] sm:$0xff] }
 0x303   :  { %v5652_v13 = vpack.c.bf16 %v623_v6, %v591_v5  ;;  %v5590_v19 = vpack.c.bf16 %v620_v11, %v588_v10  ;;  %v878_v5 = vld [vmem:[#allocation9 + $0x11f0] sm:$0xff]  ;;  %v909_v6 = vld [vmem:[#allocation9 + $0x12e8] sm:$0xff] }
 0x304   :  { %5507 = vmatpush1.bf16.msra.mxu0 %v5506_v16  ;;  %v685_v16 = vld [vmem:[#allocation9 + $0xbe8] sm:$0xff]  ;;  %v5670_v11 = vpack.c.bf16 %v878_v5, %v846_v2  ;;  %v1196_v5 = vld [vmem:[#allocation9 + $0x1be0] sm:$0xff] }
 0x305   :  { %5571 = vmatpush1.bf16.msra.mxu1 %v5570_v17  ;;  %5573 = vmatprep.subr.bf16.mxu0 %v5572_v18  ;;  %v655_v17 = vld [vmem:[#allocation9 + $0xaf8] sm:$0xff] }
 0x306   :  { %5637 = vmatprep.subr.bf16.mxu1 %v5636_v22  ;;  %v687_v18 = vld [vmem:[#allocation9 + $0xbf8] sm:$0xff]  ;;  %v5592_v22 = vpack.c.bf16 %v685_v16, %v653_v15  ;;  %v910_v15 = vld [vmem:[#allocation9 + $0x12f0] sm:$0xff] }
 0x307   :  { %2413 = vmatmul.mubr.f32.vlgmr.msra.gmra.mrb[12].mxu0 %v6869_v31  ;;  %v5656_v26 = vpack.c.bf16 %v687_v18, %v655_v17  ;;  %v942_v17 = vld [vmem:[#allocation9 + $0x13f0] sm:$0xff]  ;;  %v973_v18 = vld [vmem:[#allocation9 + $0x14e8] sm:$0xff] }
 0x308   :  { %2484 = vmatmul.mubr.f32.vlgmr.msra.gmra.mrb[16].mxu1 %v6869_v31  ;;  %5575 = vmatpush1.bf16.msra.mxu0 %v5574_v28  ;;  %v686_v28 = vld [vmem:[#allocation9 + $0xbf0] sm:$0xff]  ;;  %v5674_v24 = vpack.c.bf16 %v942_v17, %v910_v15  ;;  %v1260_v17 = vld [vmem:[#allocation9 + $0x1de0] sm:$0xff] }
 0x309   :  { %2554 = vmatprep.mubr.f32.mxu0 %v6871_v36  ;;  %5639 = vmatpush1.bf16.msra.mxu1 %v5638_v32  ;;  %v719_v32 = vld [vmem:[#allocation9 + $0xcf8] sm:$0xff]  ;;  %v5658_v35 = vpack.c.bf16 %v686_v28, %v654_v25  ;;  %v1004_v28 = vld [vmem:[#allocation9 + $0x15e0] sm:$0xff] }
 0x30a   :  { %2625 = vmatprep.mubr.f32.mxu1 %v6871_v36  ;;  %5577 = vmatprep.subr.bf16.mxu0 %v5576_v37  ;;  %v558_v36 = vld [vmem:[#allocation9 + $0x7f0] sm:$0xff]  ;;  %v5596_v37 = vpack.c.bf16 %v749_v30, %v717_v29 }
 0x30b   :  { %5641 = vmatprep.subr.bf16.mxu1 %v5640_v42  ;;  %v5650_v8 = vpack.c.bf16 %v558_v36, %v526_v63  ;;  %v5660_v42 = vpack.c.bf16 %v751_v33, %v719_v32  ;;  %v876_v36 = vld [vmem:[#allocation9 + $0x11e0] sm:$0xff]  ;;  %v974_v29 = vld [vmem:[#allocation9 + $0x14f0] sm:$0xff]  ;;  %v1037_v33 = vld [vmem:[#allocation9 + $0x16e8] sm:$0xff] }
 0x30c   :  { %5579 = vmatpush1.bf16.msra.mxu0 %v5578_v45  ;;  %v813_v45 = vld [vmem:[#allocation9 + $0xfe8] sm:$0xff]  ;;  %v1006_v32 = vld [vmem:[#allocation9 + $0x15f0] sm:$0xff] }
 0x30d   :  { %5643 = vmatpush1.bf16.msra.mxu1 %v5642_v46  ;;  %5581 = vmatprep.subr.bf16.mxu0 %v5580_v47  ;;  %v783_v46 = vld [vmem:[#allocation9 + $0xef8] sm:$0xff]  ;;  %v5600_v50 = vpack.c.bf16 %v813_v45, %v781_v44  ;;  %v5678_v39 = vpack.c.bf16 %v1006_v32, %v974_v29  ;;  %v1038_v44 = vld [vmem:[#allocation9 + $0x16f0] sm:$0xff]  ;;  %v1324_v32 = vld [vmem:[#allocation9 + $0x1fe0] sm:$0xff] }
 0x30e   :  { %5645 = vmatprep.subr.bf16.mxu1 %v5644_v52  ;;  %v815_v47 = vld [vmem:[#allocation9 + $0xff8] sm:$0xff]  ;;  %v780_v52 = vld [vmem:[#allocation9 + $0xee0] sm:$0xff] }
 0x30f   :  { %v5664_v55 = vpack.c.bf16 %v815_v47, %v783_v46  ;;  %v5602_v61 = vpack.c.bf16 %v812_v53, %v780_v52  ;;  %v1070_v46 = vld [vmem:[#allocation9 + $0x17f0] sm:$0xff]  ;;  %v1101_v47 = vld [vmem:[#allocation9 + $0x18e8] sm:$0xff] }
 0x310   :  { %5583 = vmatpush1.bf16.msra.mxu0 %v5582_v58  ;;  %v877_v58 = vld [vmem:[#allocation9 + $0x11e8] sm:$0xff]  ;;  %v5682_v53 = vpack.c.bf16 %v1070_v46, %v1038_v44  ;;  %v2668_v46 = vld [vmem:[#allocation12 + $0x20] sm:$0xff] }
 0x311   :  { %5647 = vmatpush1.bf16.msra.mxu1 %v5646_v59  ;;  %5585 = vmatprep.subr.bf16.mxu0 %v5584_v60  ;;  %v847_v59 = vld [vmem:[#allocation9 + $0x10f8] sm:$0xff]  ;;  %v5604_v63 = vpack.c.bf16 %v877_v58, %v845_v57  ;;  %v1102_v57 = vld [vmem:[#allocation9 + $0x18f0] sm:$0xff] }
 0x312   :  { %5649 = vmatprep.subr.bf16.mxu1 %v5648_v1  ;;  %v879_v60 = vld [vmem:[#allocation9 + $0x11f8] sm:$0xff]  ;;  %v844_v1 = vld [vmem:[#allocation9 + $0x10e0] sm:$0xff] }
 0x313   :  { %v5668_v4 = vpack.c.bf16 %v879_v60, %v847_v59  ;;  %v5606_v10 = vpack.c.bf16 %v876_v36, %v844_v1  ;;  %v1134_v59 = vld [vmem:[#allocation9 + $0x19f0] sm:$0xff]  ;;  %v1165_v60 = vld [vmem:[#allocation9 + $0x1ae8] sm:$0xff] }
 0x314   :  { %5587 = vmatpush1.bf16.msra.mxu0 %v5586_v7  ;;  %v941_v7 = vld [vmem:[#allocation9 + $0x13e8] sm:$0xff]  ;;  %v5686_v36 = vpack.c.bf16 %v1134_v59, %v1102_v57  ;;  %v2672_v59 = vld [vmem:[#allocation12 + $0x40] sm:$0xff] }
 0x315   :  { %5651 = vmatpush1.bf16.msra.mxu1 %v5650_v8  ;;  %5589 = vmatprep.subr.bf16.mxu0 %v5588_v9  ;;  %v911_v8 = vld [vmem:[#allocation9 + $0x12f8] sm:$0xff]  ;;  %v5608_v12 = vpack.c.bf16 %v941_v7, %v909_v6  ;;  %v1166_v6 = vld [vmem:[#allocation9 + $0x1af0] sm:$0xff] }
 0x316   :  { %5653 = vmatprep.subr.bf16.mxu1 %v5652_v13  ;;  %v943_v9 = vld [vmem:[#allocation9 + $0x13f8] sm:$0xff]  ;;  %v908_v13 = vld [vmem:[#allocation9 + $0x12e0] sm:$0xff] }
 0x317   :  { %v5672_v16 = vpack.c.bf16 %v943_v9, %v911_v8  ;;  %v5610_v23 = vpack.c.bf16 %v940_v14, %v908_v13  ;;  %v1198_v8 = vld [vmem:[#allocation9 + $0x1bf0] sm:$0xff]  ;;  %v1229_v9 = vld [vmem:[#allocation9 + $0x1ce8] sm:$0xff] }
 0x318   :  { %5591 = vmatpush1.bf16.msra.mxu0 %v5590_v19  ;;  %v1005_v19 = vld [vmem:[#allocation9 + $0x15e8] sm:$0xff]  ;;  %v5690_v14 = vpack.c.bf16 %v1198_v8, %v1166_v6  ;;  %v2687_v6 = vld [vmem:[#allocation12 + $0xb8] sm:$0xff] }
 0x319   :  { %5655 = vmatpush1.bf16.msra.mxu1 %v5654_v20  ;;  %5593 = vmatprep.subr.bf16.mxu0 %v5592_v22  ;;  %v975_v20 = vld [vmem:[#allocation9 + $0x14f8] sm:$0xff]  ;;  %v5612_v25 = vpack.c.bf16 %v1005_v19, %v973_v18  ;;  %v1230_v18 = vld [vmem:[#allocation9 + $0x1cf0] sm:$0xff] }
 0x31a   :  { %5657 = vmatprep.subr.bf16.mxu1 %v5656_v26  ;;  %v1007_v22 = vld [vmem:[#allocation9 + $0x15f8] sm:$0xff]  ;;  %v972_v26 = vld [vmem:[#allocation9 + $0x14e0] sm:$0xff] }
 0x31b   :  { %v5676_v30 = vpack.c.bf16 %v1007_v22, %v975_v20  ;;  %v5614_v38 = vpack.c.bf16 %v1004_v28, %v972_v26  ;;  %v1262_v20 = vld [vmem:[#allocation9 + $0x1df0] sm:$0xff]  ;;  %v1293_v22 = vld [vmem:[#allocation9 + $0x1ee8] sm:$0xff] }
 0x31c   :  { %5595 = vmatpush1.bf16.msra.mxu0 %v5594_v34  ;;  %v1069_v34 = vld [vmem:[#allocation9 + $0x17e8] sm:$0xff]  ;;  %v5694_v28 = vpack.c.bf16 %v1262_v20, %v1230_v18  ;;  %v2695_v18 = vld [vmem:[#allocation12 + $0xf8] sm:$0xff] }
 0x31d   :  { %5659 = vmatpush1.bf16.msra.mxu1 %v5658_v35  ;;  %5597 = vmatprep.subr.bf16.mxu0 %v5596_v37  ;;  %v1039_v35 = vld [vmem:[#allocation9 + $0x16f8] sm:$0xff]  ;;  %v5616_v41 = vpack.c.bf16 %v1069_v34, %v1037_v33  ;;  %v1294_v33 = vld [vmem:[#allocation9 + $0x1ef0] sm:$0xff] }
 0x31e   :  { %5661 = vmatprep.subr.bf16.mxu1 %v5660_v42  ;;  %v1071_v37 = vld [vmem:[#allocation9 + $0x17f8] sm:$0xff]  ;;  %v1036_v42 = vld [vmem:[#allocation9 + $0x16e0] sm:$0xff] }
 0x31f   :  { %v5680_v45 = vpack.c.bf16 %v1071_v37, %v1039_v35  ;;  %v5618_v52 = vpack.c.bf16 %v1068_v43, %v1036_v42  ;;  %v1326_v35 = vld [vmem:[#allocation9 + $0x1ff0] sm:$0xff]  ;;  %v2665_v37 = vld [vmem:[#allocation12 + $0x8] sm:$0xff] }
 0x320   :  { %5599 = vmatpush1.bf16.msra.mxu0 %v5598_v48  ;;  %v1133_v48 = vld [vmem:[#allocation9 + $0x19e8] sm:$0xff]  ;;  %v5698_v43 = vpack.c.bf16 %v1326_v35, %v1294_v33  ;;  %v2703_v33 = vld [vmem:[#allocation12 + $0x138] sm:$0xff] }
 0x321   :  { %5663 = vmatpush1.bf16.msra.mxu1 %v5662_v49  ;;  %5601 = vmatprep.subr.bf16.mxu0 %v5600_v50  ;;  %v1103_v49 = vld [vmem:[#allocation9 + $0x18f8] sm:$0xff]  ;;  %v5620_v54 = vpack.c.bf16 %v1133_v48, %v1101_v47  ;;  %v2666_v47 = vld [vmem:[#allocation12 + $0x10] sm:$0xff]  ;;  %v6920_v48 = vsub.s32 3, %v6891_v40 }
 0x322   :  { %5665 = vmatprep.subr.bf16.mxu1 %v5664_v55  ;;  %v1135_v50 = vld [vmem:[#allocation9 + $0x19f8] sm:$0xff]  ;;  %v1100_v55 = vld [vmem:[#allocation9 + $0x18e0] sm:$0xff] }
 0x323   :  { %v5684_v58 = vpack.c.bf16 %v1135_v50, %v1103_v49  ;;  %v5622_v1 = vpack.c.bf16 %v1132_v56, %v1100_v55  ;;  %v2670_v50 = vld [vmem:[#allocation12 + $0x30] sm:$0xff]  ;;  %v2679_v55 = vld [vmem:[#allocation12 + $0x78] sm:$0xff] }
 0x324   :  { %5603 = vmatpush1.bf16.msra.mxu0 %v5602_v61  ;;  %v1197_v61 = vld [vmem:[#allocation9 + $0x1be8] sm:$0xff]  ;;  %v6927_v57 = vpack.c.bf16 %v2670_v50, %v2666_v47  ;;  %v2707_v47 = vld [vmem:[#allocation12 + $0x158] sm:$0xff] }
 0x325   :  { %5667 = vmatpush1.bf16.msra.mxu1 %v5666_v62  ;;  %5605 = vmatprep.subr.bf16.mxu0 %v5604_v63  ;;  %v1167_v62 = vld [vmem:[#allocation9 + $0x1af8] sm:$0xff]  ;;  %v5624_v2 = vpack.c.bf16 %v1197_v61, %v1165_v60  ;;  %v2676_v60 = vld [vmem:[#allocation12 + $0x60] sm:$0xff]  ;;  %v2674_v61 = vld [vmem:[#allocation12 + $0x50] sm:$0xff] }
 0x326   :  { %5669 = vmatprep.subr.bf16.mxu1 %v5668_v4  ;;  %v1199_v63 = vld [vmem:[#allocation9 + $0x1bf8] sm:$0xff]  ;;  %v1164_v4 = vld [vmem:[#allocation9 + $0x1ae0] sm:$0xff] }
 0x327   :  { %v5688_v7 = vpack.c.bf16 %v1199_v63, %v1167_v62  ;;  %v5626_v13 = vpack.c.bf16 %v1196_v5, %v1164_v4  ;;  %v6931_v62 = vld [vmem:[#allocation10] sm:$0xff]  ;;  %v2685_v4 = vld [vmem:[#allocation12 + $0xa8] sm:$0xff]  ;;  %v2683_v5 = vld [vmem:[#allocation12 + $0x98] sm:$0xff] }
 0x328   :  { %5607 = vmatpush1.bf16.msra.mxu0 %v5606_v10  ;;  %v1261_v10 = vld [vmem:[#allocation9 + $0x1de8] sm:$0xff]  ;;  %v1351_v63 = vrot.slane %v6931_v62, %v6920_v48  ;;  %v2711_v50 = vld [vmem:[#allocation12 + $0x178] sm:$0xff] }
 0x329   :  { %5671 = vmatpush1.bf16.msra.mxu1 %v5670_v11  ;;  %5609 = vmatprep.subr.bf16.mxu0 %v5608_v12  ;;  %v1231_v11 = vld [vmem:[#allocation9 + $0x1cf8] sm:$0xff]  ;;  %v5628_v15 = vpack.c.bf16 %v1261_v10, %v1229_v9  ;;  %v2680_v10 = vld [vmem:[#allocation12 + $0x80] sm:$0xff] }
 0x32a   :  { %5673 = vmatprep.subr.bf16.mxu1 %v5672_v16  ;;  %v1263_v12 = vld [vmem:[#allocation9 + $0x1df8] sm:$0xff]  ;;  %v1228_v16 = vld [vmem:[#allocation9 + $0x1ce0] sm:$0xff] }
 0x32b   :  { %v5692_v19 = vpack.c.bf16 %v1263_v12, %v1231_v11  ;;  %v5630_v26 = vpack.c.bf16 %v1260_v17, %v1228_v16  ;;  %v2684_v11 = vld [vmem:[#allocation12 + $0xa0] sm:$0xff]  ;;  %v2682_v12 = vld [vmem:[#allocation12 + $0x90] sm:$0xff]  ;;  %v2693_v16 = vld [vmem:[#allocation12 + $0xe8] sm:$0xff] }
 0x32c   :  { %5611 = vmatpush1.bf16.msra.mxu0 %v5610_v23  ;;  %v1325_v23 = vld [vmem:[#allocation9 + $0x1fe8] sm:$0xff]  ;;  %v2691_v17 = vld [vmem:[#allocation12 + $0xd8] sm:$0xff] }
 0x32d   :  { %5675 = vmatpush1.bf16.msra.mxu1 %v5674_v24  ;;  %5613 = vmatprep.subr.bf16.mxu0 %v5612_v25  ;;  %v1295_v24 = vld [vmem:[#allocation9 + $0x1ef8] sm:$0xff]  ;;  %v5632_v29 = vpack.c.bf16 %v1325_v23, %v1293_v22  ;;  %v2688_v22 = vld [vmem:[#allocation12 + $0xc0] sm:$0xff] }
 0x32e   :  { %5677 = vmatprep.subr.bf16.mxu1 %v5676_v30  ;;  %v1327_v25 = vld [vmem:[#allocation9 + $0x1ff8] sm:$0xff]  ;;  %v1292_v30 = vld [vmem:[#allocation9 + $0x1ee0] sm:$0xff] }
 0x32f   :  { %v5696_v34 = vpack.c.bf16 %v1327_v25, %v1295_v24  ;;  %v5634_v42 = vpack.c.bf16 %v1324_v32, %v1292_v30  ;;  %v2692_v23 = vld [vmem:[#allocation12 + $0xe0] sm:$0xff]  ;;  %v2690_v24 = vld [vmem:[#allocation12 + $0xd0] sm:$0xff]  ;;  %v2701_v30 = vld [vmem:[#allocation12 + $0x128] sm:$0xff] }
 0x330   :  { %5615 = vmatpush1.bf16.msra.mxu0 %v5614_v38  ;;  %v2669_v38 = vld [vmem:[#allocation12 + $0x28] sm:$0xff]  ;;  %v2699_v32 = vld [vmem:[#allocation12 + $0x118] sm:$0xff] }
 0x331   :  { %5679 = vmatpush1.bf16.msra.mxu1 %v5678_v39  ;;  %5617 = vmatprep.subr.bf16.mxu0 %v5616_v41  ;;  %v2667_v39 = vld [vmem:[#allocation12 + $0x18] sm:$0xff]  ;;  %v6917_v44 = vpack.c.bf16 %v2669_v38, %v2665_v37  ;;  %v2696_v38 = vld [vmem:[#allocation12 + $0x100] sm:$0xff] }
 0x332   :  { %5681 = vmatprep.subr.bf16.mxu1 %v5680_v45  ;;  %v2671_v41 = vld [vmem:[#allocation12 + $0x38] sm:$0xff]  ;;  %v2664_v45 = vld [vmem:[#allocation12] sm:$0xff] }
 0x333   :  { %v6922_v49 = vpack.c.bf16 %v2671_v41, %v2667_v39  ;;  %v6924_v56 = vpack.c.bf16 %v2668_v46, %v2664_v45  ;;  %v2700_v39 = vld [vmem:[#allocation12 + $0x120] sm:$0xff]  ;;  %v2698_v41 = vld [vmem:[#allocation12 + $0x110] sm:$0xff]  ;;  %v2705_v45 = vld [vmem:[#allocation12 + $0x148] sm:$0xff] }
 0x334   :  { %5619 = vmatpush1.bf16.msra.mxu0 %v5618_v52  ;;  %v2673_v52 = vld [vmem:[#allocation12 + $0x48] sm:$0xff] }
 0x335   :  { %5683 = vmatpush1.bf16.msra.mxu1 %v5682_v53  ;;  %5621 = vmatprep.subr.bf16.mxu0 %v5620_v54  ;;  %v2677_v53 = vld [vmem:[#allocation12 + $0x68] sm:$0xff]  ;;  %v2675_v54 = vld [vmem:[#allocation12 + $0x58] sm:$0xff] }
 0x336   :  { %5685 = vmatprep.subr.bf16.mxu1 %v5684_v58  ;;  %v6929_v58 = vpack.c.bf16 %v2677_v53, %v2673_v52  ;;  %v2709_v46 = vld [vmem:[#allocation12 + $0x168] sm:$0xff]  ;;  %v6980_v52 = vpack.c.bf16 %v2700_v39, %v2696_v38  ;;  %v2722_v38 = vld [vmem:[#allocation12 + $0x1d0] sm:$0xff] }
 0x337   :  { %v2726_v39 = vld [vmem:[#allocation12 + $0x1f0] sm:$0xff] }
 0x338   :  { %5623 = vmatpush1.bf16.msra.mxu0 %v5622_v1  ;;  %v6936_v1 = vpack.c.bf16 %v2679_v55, %v2675_v54  ;;  %v6986_v54 = vpack.c.bf16 %v2709_v46, %v2705_v45  ;;  %v2704_v55 = vld [vmem:[#allocation12 + $0x140] sm:$0xff]  ;;  %v7021_v45 = vpack.c.bf16 %v2726_v39, %v2722_v38 }
 0x339   :  { %5687 = vmatpush1.bf16.msra.mxu1 %v5686_v36  ;;  %5625 = vmatprep.subr.bf16.mxu0 %v5624_v2  ;;  %v2678_v36 = vld [vmem:[#allocation12 + $0x70] sm:$0xff]  ;;  %v2681_v2 = vld [vmem:[#allocation12 + $0x88] sm:$0xff] }
 0x33a   :  { %5689 = vmatprep.subr.bf16.mxu1 %v5688_v7  ;;  %v6941_v7 = vpack.c.bf16 %v2676_v60, %v2672_v59  ;;  %v6945_v8 = vpack.c.bf16 %v2678_v36, %v2674_v61  ;;  %v6947_v9 = vpack.c.bf16 %v2685_v4, %v2681_v2  ;;  %v2708_v59 = vld [vmem:[#allocation12 + $0x160] sm:$0xff]  ;;  %v2706_v60 = vld [vmem:[#allocation12 + $0x150] sm:$0xff]  ;;  %v6989_v61 = vpack.c.bf16 %v2711_v50, %v2707_v47  ;;  %v2713_v36 = vld [vmem:[#allocation12 + $0x188] sm:$0xff] }
 0x33b   :  { %v2717_v2 = vld [vmem:[#allocation12 + $0x1a8] sm:$0xff]  ;;  %v2715_v4 = vld [vmem:[#allocation12 + $0x198] sm:$0xff] }
 0x33c   :  { %5627 = vmatpush1.bf16.msra.mxu0 %v5626_v13  ;;  %v1636_v13 = vadd.f32 %v6901_v21, %v1351_v63  ;;  %v2710_v63 = vld [vmem:[#allocation12 + $0x170] sm:$0xff] }
 0x33d   :  { %5691 = vmatpush1.bf16.msra.mxu1 %v5690_v14  ;;  %5629 = vmatprep.subr.bf16.mxu0 %v5628_v15  ;;  %v2686_v14 = vld [vmem:[#allocation12 + $0xb0] sm:$0xff]  ;;  %v2689_v15 = vld [vmem:[#allocation12 + $0xc8] sm:$0xff] }
 0x33e   :  { %5693 = vmatprep.subr.bf16.mxu1 %v5692_v19  ;;  %v6956_v19 = vpack.c.bf16 %v2684_v11, %v2680_v10  ;;  %v6960_v21 = vpack.c.bf16 %v2686_v14, %v2682_v12  ;;  %v6962_v20 = vpack.c.bf16 %v2693_v16, %v2689_v15  ;;  %v2736_v25 = vmul.f32 0.5, %v1636_v13  ;;  %v2712_v12 = vld [vmem:[#allocation12 + $0x180] sm:$0xff]  ;;  %v2714_v14 = vld [vmem:[#allocation12 + $0x190] sm:$0xff] }
 0x33f   :  { %v6997_v10 = vpack.c.bf16 %v2710_v63, %v2706_v60  ;;  %v6999_v11 = vpack.c.bf16 %v2717_v2, %v2713_v36  ;;  %v2716_v13 = vld [vmem:[#allocation12 + $0x1a0] sm:$0xff]  ;;  %v2718_v16 = vld [vmem:[#allocation12 + $0x1b0] sm:$0xff]  ;;  %v7071_v63 = vsub.s32 6, %v6891_v40 }
 0x340   :  { %5631 = vmatpush1.bf16.msra.mxu0 %v5630_v26  ;;  %v6965_v26 = vpack.c.bf16 %v2695_v18, %v2691_v17  ;;  %6371 = vtanh.f32 %v2736_v25  ;;  %v2721_v17 = vld [vmem:[#allocation12 + $0x1c8] sm:$0xff]  ;;  %v7005_v25 = vpack.c.bf16 %v2716_v13, %v2712_v12 }
 0x341   :  { %5695 = vmatpush1.bf16.msra.mxu1 %v5694_v28  ;;  %5633 = vmatprep.subr.bf16.mxu0 %v5632_v29  ;;  %v2694_v28 = vld [vmem:[#allocation12 + $0xf0] sm:$0xff]  ;;  %v2697_v29 = vld [vmem:[#allocation12 + $0x108] sm:$0xff]  ;;  %6373 = vtanh.f32 %v6903_v27 }
 0x342   :  { %5697 = vmatprep.subr.bf16.mxu1 %v5696_v34  ;;  %v6968_v34 = vpack.c.bf16 %v2692_v23, %v2688_v22  ;;  %v6972_v35 = vpack.c.bf16 %v2694_v28, %v2690_v24  ;;  %v6974_v37 = vpack.c.bf16 %v2701_v30, %v2697_v29  ;;  %v2725_v18 = vld [vmem:[#allocation12 + $0x1e8] sm:$0xff]  ;;  %v2723_v22 = vld [vmem:[#allocation12 + $0x1d8] sm:$0xff]  ;;  %v7009_v28 = vpack.c.bf16 %v2718_v16, %v2714_v14  ;;  %v2720_v30 = vld [vmem:[#allocation12 + $0x1c0] sm:$0xff] }
 0x343   :  { %v2727_v23 = vld [vmem:[#allocation12 + $0x1f8] sm:$0xff]  ;;  %v7011_v29 = vpack.c.bf16 %v2725_v18, %v2721_v17  ;;  %v7078_v14 = vsub.s32 7, %v6891_v40 }
 0x344   :  { %5635 = vmatpush1.bf16.msra.mxu0 %v5634_v42  ;;  %v6977_v42 = vpack.c.bf16 %v2703_v33, %v2699_v32  ;;  %v2724_v32 = vld [vmem:[#allocation12 + $0x1e0] sm:$0xff]  ;;  %v7014_v33 = vpack.c.bf16 %v2727_v23, %v2723_v22 }
 0x345   :  { %5699 = vmatpush1.bf16.msra.mxu1 %v5698_v43  ;;  %5701 = vmatprep.subr.bf16.mxu0 %v6917_v44  ;;  %v2702_v43 = vld [vmem:[#allocation12 + $0x130] sm:$0xff] }
 0x346   :  { %5733 = vmatprep.subr.bf16.mxu1 %v6922_v49  ;;  %v6984_v53 = vpack.c.bf16 %v2702_v43, %v2698_v41  ;;  %v7017_v43 = vpack.c.bf16 %v2724_v32, %v2720_v30 }
 0x347   :  { %2555 = vmatmul.mubr.f32.vlgmr.msra.gmra.mrb[14].mxu0 %v6869_v31 }
 0x348   :  { %2626 = vmatmul.mubr.f32.vlgmr.msra.gmra.mrb[18].mxu1 %v6869_v31  ;;  %5703 = vmatpush1.bf16.msra.mxu0 %v6924_v56  ;;  %v6951_v31 = vpack.c.bf16 %v2687_v6, %v2683_v5  ;;  %v2719_v5 = vld [vmem:[#allocation12 + $0x1b8] sm:$0xff]  ;;  %v6993_v6 = vpack.c.bf16 %v2708_v59, %v2704_v55  ;;  %v7063_v55 = vsub.s32 4, %v6891_v40  ;;  %v7066_v59 = vsub.s32 5, %v6891_v40 }
 0x349   :  { %5735 = vmatpush1.bf16.msra.mxu1 %v6927_v57  ;;  %5705 = vmatprep.subr.bf16.mxu0 %v6929_v58  ;;  %v7002_v15 = vpack.c.bf16 %v2719_v5, %v2715_v4  ;;  %v1363_v5 = vrot.slane %v6931_v62, %v7071_v63 }
 0x34a   :  { %5737 = vmatprep.subr.bf16.mxu1 %v6936_v1  ;;  %2811 = vmatprep.mubr.f32.mxu0 %v7402_v0  ;;  %v6372_v24 = vpop.eup %6371  ;;  %v1355_v60 = vrot.slane %v6931_v62, %v7063_v55  ;;  %v1359_v36 = vrot.slane %v6931_v62, %v7066_v59 }
 0x34b   :  { %2882 = vmatprep.mubr.f32.mxu1 %v7402_v0  ;;  %v2738_v41 = vmul.f32 0.5, %v6372_v24  ;;  %v6374_v46 = vpop.eup %6373  ;;  %v1367_v24 = vrot.slane %v6931_v62, %v7078_v14 }
 0x34c   :  { %5707 = vmatpush1.bf16.msra.mxu0 %v6941_v7 }
 0x34d   :  { %5739 = vmatpush1.bf16.msra.mxu1 %v6945_v8  ;;  %5709 = vmatprep.subr.bf16.mxu0 %v6947_v9  ;;  %v2739_v47 = vadd.f32 0.5, %v2738_v41 }
 0x34e   :  { %5741 = vmatprep.subr.bf16.mxu1 %v6951_v31 }
 0x34f   :  { %v2742_v50 = vmul.f32 %v6374_v46, %v2739_v47 }
 0x350   :  { %5711 = vmatpush1.bf16.msra.mxu0 %v6956_v19 }
 0x351   :  { %5743 = vmatpush1.bf16.msra.mxu1 %v6960_v21  ;;  %5713 = vmatprep.subr.bf16.mxu0 %v6962_v20 }
 0x352   :  { %5745 = vmatprep.subr.bf16.mxu1 %v6965_v26 }
 0x354   :  { %5715 = vmatpush1.bf16.msra.mxu0 %v6968_v34 }
 0x355   :  { %5747 = vmatpush1.bf16.msra.mxu1 %v6972_v35  ;;  %5717 = vmatprep.subr.bf16.mxu0 %v6974_v37 }
 0x356   :  { %5749 = vmatprep.subr.bf16.mxu1 %v6977_v42 }
 0x358   :  { %5719 = vmatpush1.bf16.msra.mxu0 %v6980_v52 }
 0x359   :  { %5751 = vmatpush1.bf16.msra.mxu1 %v6984_v53  ;;  %5721 = vmatprep.subr.bf16.mxu0 %v6986_v54 }
 0x35a   :  { %5753 = vmatprep.subr.bf16.mxu1 %v6989_v61 }
 0x35c   :  { %5723 = vmatpush1.bf16.msra.mxu0 %v6993_v6 }
 0x35d   :  { %5755 = vmatpush1.bf16.msra.mxu1 %v6997_v10  ;;  %5725 = vmatprep.subr.bf16.mxu0 %v6999_v11 }
 0x35e   :  { %5757 = vmatprep.subr.bf16.mxu1 %v7002_v15 }
 0x360   :  { %5727 = vmatpush1.bf16.msra.mxu0 %v7005_v25 }
 0x361   :  { %5759 = vmatpush1.bf16.msra.mxu1 %v7009_v28  ;;  %5729 = vmatprep.subr.bf16.mxu0 %v7011_v29 }
 0x362   :  { %5761 = vmatprep.subr.bf16.mxu1 %v7014_v33 }
 0x364   :  { %5731 = vmatpush1.bf16.msra.mxu0 %v7017_v43 }
 0x365   :  { %5763 = vmatpush1.bf16.msra.mxu1 %v7021_v45  ;;  %5765 = vmatprep.subr.bf16.mxu0 %v6917_v44 }
 0x366   :  { %5797 = vmatprep.subr.bf16.mxu1 %v6922_v49 }
 0x367   :  { %2812 = vmatmul.mubr.f32.vlgmr.msra.gmra.mrb[2].mxu0 %v2742_v50 }
 0x368   :  { %2883 = vmatmul.mubr.f32.vlgmr.msra.gmra.mrb[6].mxu1 %v2742_v50  ;;  %5767 = vmatpush1.bf16.msra.mxu0 %v6924_v56 }
 0x369   :  { %5799 = vmatpush1.bf16.msra.mxu1 %v6927_v57  ;;  %5769 = vmatprep.subr.bf16.mxu0 %v6929_v58 }
 0x36a   :  { %5801 = vmatprep.subr.bf16.mxu1 %v6936_v1  ;;  %2980 = vmatprep.mubr.f32.mxu0 %v7402_v0 }
 0x36b   :  { %3051 = vmatprep.mubr.f32.mxu1 %v7402_v0 }
 0x36c   :  { %5771 = vmatpush1.bf16.msra.mxu0 %v6941_v7 }
 0x36d   :  { %5803 = vmatpush1.bf16.msra.mxu1 %v6945_v8  ;;  %5773 = vmatprep.subr.bf16.mxu0 %v6947_v9 }
 0x36e   :  { %5805 = vmatprep.subr.bf16.mxu1 %v6951_v31 }
 0x370   :  { %5775 = vmatpush1.bf16.msra.mxu0 %v6956_v19 }
 0x371   :  { %5807 = vmatpush1.bf16.msra.mxu1 %v6960_v21  ;;  %5777 = vmatprep.subr.bf16.mxu0 %v6962_v20 }
 0x372   :  { %5809 = vmatprep.subr.bf16.mxu1 %v6965_v26 }
 0x374   :  { %5779 = vmatpush1.bf16.msra.mxu0 %v6968_v34 }
 0x375   :  { %5811 = vmatpush1.bf16.msra.mxu1 %v6972_v35  ;;  %5781 = vmatprep.subr.bf16.mxu0 %v6974_v37 }
 0x376   :  { %5813 = vmatprep.subr.bf16.mxu1 %v6977_v42 }
 0x378   :  { %5783 = vmatpush1.bf16.msra.mxu0 %v6980_v52 }
 0x379   :  { %5815 = vmatpush1.bf16.msra.mxu1 %v6984_v53  ;;  %5785 = vmatprep.subr.bf16.mxu0 %v6986_v54 }
 0x37a   :  { %5817 = vmatprep.subr.bf16.mxu1 %v6989_v61 }
 0x37c   :  { %5787 = vmatpush1.bf16.msra.mxu0 %v6993_v6 }
 0x37d   :  { %5819 = vmatpush1.bf16.msra.mxu1 %v6997_v10  ;;  %5789 = vmatprep.subr.bf16.mxu0 %v6999_v11 }
 0x37e   :  { %5821 = vmatprep.subr.bf16.mxu1 %v7002_v15 }
 0x380   :  { %5791 = vmatpush1.bf16.msra.mxu0 %v7005_v25 }
 0x381   :  { %5823 = vmatpush1.bf16.msra.mxu1 %v7009_v28  ;;  %5793 = vmatprep.subr.bf16.mxu0 %v7011_v29 }
 0x382   :  { %5825 = vmatprep.subr.bf16.mxu1 %v7014_v33 }
 0x384   :  { %5795 = vmatpush1.bf16.msra.mxu0 %v7017_v43 }
 0x385   :  { %5827 = vmatpush1.bf16.msra.mxu1 %v7021_v45  ;;  %5829 = vmatprep.subr.bf16.mxu0 %v6917_v44 }
 0x386   :  { %5861 = vmatprep.subr.bf16.mxu1 %v6922_v49 }
 0x43a   :  { %v2813_v2 = vpop.f32.mrb[2].mxu0 }
 0x43b   :  { %v6292_v4 = vadd.f32 %v2813_v2, %v1355_v60  ;;  %v2884_v12 = vpop.f32.mrb[6].mxu1  ;;  %v2815_v13 = vpop.f32.mrb[3].mxu0 }
 0x43c   :  { %v6293_v16 = vadd.f32 %v2815_v13, %v1359_v36  ;;  %v2886_v17 = vpop.f32.mrb[7].mxu1  ;;  %v6294_v23 = vadd.f32 %v2884_v12, %v1363_v5 }
 0x43d   :  { %v2893_v18 = vmul.f32 0.5, %v6292_v4  ;;  %v6295_v30 = vadd.f32 %v2886_v17, %v1367_v24  ;;  %v7127_v17 = vsub.s32 1, %v6891_v40 }
 0x43e   :  { %v2897_v22 = vmul.f32 0.5, %v6293_v16 }
 0x43f   :  { %6375 = vtanh.f32 %v2893_v18  ;;  %v2902_v32 = vmul.f32 0.5, %v6295_v30 }
 0x440   :  { %6377 = vtanh.f32 %v2897_v22 }
 0x441   :  { %6379 = vtanh.f32 %v6294_v23 }
 0x442   :  { %6381 = vtanh.f32 %v2902_v32 }
 0x449   :  { %v6376_v38 = vpop.eup %6375 }
 0x44a   :  { %v6378_v39 = vpop.eup %6377  ;;  %v2895_v41 = vmul.f32 0.5, %v6376_v38 }
 0x44b   :  { %v2899_v46 = vmul.f32 0.5, %v6378_v39  ;;  %v6380_v50 = vpop.eup %6379 }
 0x44c   :  { %v2896_v47 = vadd.f32 0.5, %v2895_v41  ;;  %v6382_v62 = vpop.eup %6381 }
 0x44d   :  { %v2900_v60 = vadd.f32 0.5, %v2899_v46  ;;  %v2904_v5 = vmul.f32 0.5, %v6382_v62 }
 0x44e   :  { %v2907_v36 = vmul.f32 %v6380_v50, %v2896_v47 }
 0x44f   :  { %v2906_v2 = vmul.f32 %v2900_v60, %v6903_v27  ;;  %v2905_v12 = vadd.f32 0.5, %v2904_v5  ;;  %v7124_v27 = vld [vmem:[#allocation10 + $0x8] sm:$0xff] }
 0x450   :  { %v1371_v18 = vrot.slane %v7124_v27, %v6894_v51  ;;  %v1375_v22 = vrot.slane %v7124_v27, %v7127_v17  ;;  %v1379_v32 = vrot.slane %v7124_v27, %v6898_v3  ;;  %v1383_v50 = vrot.slane %v7124_v27, %v6920_v48 }
 0x451   :  { %v7083_v4 = vadd.f32 %v2907_v36, %v2906_v2 }
 0x453   :  { %6383 = vtanh.f32 %v7083_v4 }
 0x45d   :  { %v6384_v13 = vpop.eup %6383 }
 0x45e   :  { %v7086_v16 = vmul.f32 %v6384_v13, %v2905_v12 }
 0x460   :  { %7406 = vst [vmem:[#allocation26_spill] sm:$0xff] %v7086_v16  ;;  %2981 = vmatmul.mubr.f32.vlgmr.msra.gmra.mrb[4].mxu0 %v7086_v16  ;;  %3052 = vmatmul.mubr.f32.vlgmr.msra.gmra.mrb[8].mxu1 %v7086_v16 }
 0x461   :  { %5831 = vmatpush1.bf16.msra.mxu0 %v6924_v56  ;;  %5863 = vmatpush1.bf16.msra.mxu1 %v6927_v57 }
 0x462   :  { %5833 = vmatprep.subr.bf16.mxu0 %v6929_v58  ;;  %5865 = vmatprep.subr.bf16.mxu1 %v6936_v1 }
 0x463   :  { %3149 = vmatprep.mubr.f32.mxu0 %v7402_v0  ;;  %3220 = vmatprep.mubr.f32.mxu1 %v7402_v0 }
 0x465   :  { %5835 = vmatpush1.bf16.msra.mxu0 %v6941_v7  ;;  %5867 = vmatpush1.bf16.msra.mxu1 %v6945_v8 }
 0x466   :  { %5837 = vmatprep.subr.bf16.mxu0 %v6947_v9  ;;  %5869 = vmatprep.subr.bf16.mxu1 %v6951_v31 }
 0x469   :  { %5839 = vmatpush1.bf16.msra.mxu0 %v6956_v19  ;;  %5871 = vmatpush1.bf16.msra.mxu1 %v6960_v21 }
 0x46a   :  { %5841 = vmatprep.subr.bf16.mxu0 %v6962_v20  ;;  %5873 = vmatprep.subr.bf16.mxu1 %v6965_v26 }
 0x46d   :  { %5843 = vmatpush1.bf16.msra.mxu0 %v6968_v34  ;;  %5875 = vmatpush1.bf16.msra.mxu1 %v6972_v35 }
 0x46e   :  { %5845 = vmatprep.subr.bf16.mxu0 %v6974_v37  ;;  %5877 = vmatprep.subr.bf16.mxu1 %v6977_v42 }
 0x471   :  { %5847 = vmatpush1.bf16.msra.mxu0 %v6980_v52  ;;  %5879 = vmatpush1.bf16.msra.mxu1 %v6984_v53 }
 0x472   :  { %5849 = vmatprep.subr.bf16.mxu0 %v6986_v54  ;;  %5881 = vmatprep.subr.bf16.mxu1 %v6989_v61 }
 0x475   :  { %5851 = vmatpush1.bf16.msra.mxu0 %v6993_v6  ;;  %5883 = vmatpush1.bf16.msra.mxu1 %v6997_v10 }
 0x476   :  { %5853 = vmatprep.subr.bf16.mxu0 %v6999_v11  ;;  %5885 = vmatprep.subr.bf16.mxu1 %v7002_v15 }
 0x479   :  { %5855 = vmatpush1.bf16.msra.mxu0 %v7005_v25  ;;  %5887 = vmatpush1.bf16.msra.mxu1 %v7009_v28 }
 0x47a   :  { %5857 = vmatprep.subr.bf16.mxu0 %v7011_v29  ;;  %5889 = vmatprep.subr.bf16.mxu1 %v7014_v33 }
 0x47d   :  { %5859 = vmatpush1.bf16.msra.mxu0 %v7017_v43  ;;  %5891 = vmatpush1.bf16.msra.mxu1 %v7021_v45 }
 0x47e   :  { %5893 = vmatprep.subr.bf16.mxu0 %v6917_v44  ;;  %5925 = vmatprep.subr.bf16.mxu1 %v6922_v49 }
 0x533   :  { %v2982_v23 = vpop.f32.mrb[4].mxu0  ;;  %v3053_v24 = vpop.f32.mrb[8].mxu1 }
 0x534   :  { %v6296_v30 = vadd.f32 %v2982_v23, %v1371_v18  ;;  %v2984_v38 = vpop.f32.mrb[5].mxu0  ;;  %v3055_v39 = vpop.f32.mrb[9].mxu1  ;;  %v6298_v40 = vadd.f32 %v3053_v24, %v1379_v32 }
 0x535   :  { %v6297_v41 = vadd.f32 %v2984_v38, %v1375_v22  ;;  %v6299_v60 = vadd.f32 %v3055_v39, %v1383_v50 }
 0x536   :  { %v3062_v46 = vmul.f32 0.5, %v6296_v30 }
 0x537   :  { %v3066_v47 = vmul.f32 0.5, %v6297_v41  ;;  %v3071_v36 = vmul.f32 0.5, %v6299_v60 }
 0x538   :  { %6385 = vtanh.f32 %v3062_v46 }
 0x539   :  { %6387 = vtanh.f32 %v3066_v47  ;;  %v1391_v47 = vrot.slane %v7124_v27, %v7066_v59 }
 0x53a   :  { %6389 = vtanh.f32 %v6298_v40 }
 0x53b   :  { %6391 = vtanh.f32 %v3071_v36  ;;  %v1395_v36 = vrot.slane %v7124_v27, %v7071_v63 }
 0x542   :  { %v6386_v2 = vpop.eup %6385 }
 0x543   :  { %v6388_v62 = vpop.eup %6387  ;;  %v3064_v5 = vmul.f32 0.5, %v6386_v2 }
 0x544   :  { %v3068_v12 = vmul.f32 0.5, %v6388_v62  ;;  %v6390_v18 = vpop.eup %6389 }
 0x545   :  { %v3065_v13 = vadd.f32 0.5, %v3064_v5  ;;  %v6392_v24 = vpop.eup %6391 }
 0x546   :  { %v3069_v23 = vadd.f32 0.5, %v3068_v12  ;;  %v3073_v32 = vmul.f32 0.5, %v6392_v24 }
 0x547   :  { %v3076_v22 = vmul.f32 %v6390_v18, %v3065_v13 }
 0x548   :  { %v3075_v30 = vmul.f32 %v3069_v23, %v7083_v4  ;;  %v3074_v41 = vadd.f32 0.5, %v3073_v32  ;;  %v1387_v4 = vrot.slane %v7124_v27, %v7063_v55  ;;  %v1399_v23 = vrot.slane %v7124_v27, %v7078_v14 }
 0x54a   :  { %v7138_v38 = vadd.f32 %v3076_v22, %v3075_v30 }
 0x54c   :  { %6393 = vtanh.f32 %v7138_v38 }
 0x556   :  { %v6394_v39 = vpop.eup %6393 }
 0x557   :  { %v7141_v46 = vmul.f32 %v6394_v39, %v3074_v41 }
 0x559   :  { %3150 = vmatmul.mubr.f32.vlgmr.msra.gmra.mrb[6].mxu0 %v7141_v46  ;;  %3221 = vmatmul.mubr.f32.vlgmr.msra.gmra.mrb[10].mxu1 %v7141_v46 }
 0x55a   :  { %5895 = vmatpush1.bf16.msra.mxu0 %v6924_v56  ;;  %5927 = vmatpush1.bf16.msra.mxu1 %v6927_v57 }
 0x55b   :  { %5897 = vmatprep.subr.bf16.mxu0 %v6929_v58  ;;  %5929 = vmatprep.subr.bf16.mxu1 %v6936_v1 }
 0x55c   :  { %3318 = vmatprep.mubr.f32.mxu0 %v7402_v0  ;;  %3389 = vmatprep.mubr.f32.mxu1 %v7402_v0 }
 0x55e   :  { %5899 = vmatpush1.bf16.msra.mxu0 %v6941_v7  ;;  %5931 = vmatpush1.bf16.msra.mxu1 %v6945_v8 }
 0x55f   :  { %5901 = vmatprep.subr.bf16.mxu0 %v6947_v9  ;;  %5933 = vmatprep.subr.bf16.mxu1 %v6951_v31 }
 0x562   :  { %5903 = vmatpush1.bf16.msra.mxu0 %v6956_v19  ;;  %5935 = vmatpush1.bf16.msra.mxu1 %v6960_v21 }
 0x563   :  { %5905 = vmatprep.subr.bf16.mxu0 %v6962_v20  ;;  %5937 = vmatprep.subr.bf16.mxu1 %v6965_v26 }
 0x566   :  { %5907 = vmatpush1.bf16.msra.mxu0 %v6968_v34  ;;  %5939 = vmatpush1.bf16.msra.mxu1 %v6972_v35 }
 0x567   :  { %5909 = vmatprep.subr.bf16.mxu0 %v6974_v37  ;;  %5941 = vmatprep.subr.bf16.mxu1 %v6977_v42 }
 0x56a   :  { %5911 = vmatpush1.bf16.msra.mxu0 %v6980_v52  ;;  %5943 = vmatpush1.bf16.msra.mxu1 %v6984_v53 }
 0x56b   :  { %5913 = vmatprep.subr.bf16.mxu0 %v6986_v54  ;;  %5945 = vmatprep.subr.bf16.mxu1 %v6989_v61 }
 0x56e   :  { %5915 = vmatpush1.bf16.msra.mxu0 %v6993_v6  ;;  %5947 = vmatpush1.bf16.msra.mxu1 %v6997_v10 }
 0x56f   :  { %5917 = vmatprep.subr.bf16.mxu0 %v6999_v11  ;;  %5949 = vmatprep.subr.bf16.mxu1 %v7002_v15 }
 0x572   :  { %5919 = vmatpush1.bf16.msra.mxu0 %v7005_v25  ;;  %5951 = vmatpush1.bf16.msra.mxu1 %v7009_v28 }
 0x573   :  { %5921 = vmatprep.subr.bf16.mxu0 %v7011_v29  ;;  %5953 = vmatprep.subr.bf16.mxu1 %v7014_v33 }
 0x576   :  { %5923 = vmatpush1.bf16.msra.mxu0 %v7017_v43  ;;  %5955 = vmatpush1.bf16.msra.mxu1 %v7021_v45 }
 0x577   :  { %5957 = vmatprep.subr.bf16.mxu0 %v6917_v44  ;;  %5989 = vmatprep.subr.bf16.mxu1 %v6922_v49 }
 0x62c   :  { %v3151_v40 = vpop.f32.mrb[6].mxu0  ;;  %v3222_v50 = vpop.f32.mrb[10].mxu1 }
 0x62d   :  { %v6300_v60 = vadd.f32 %v3151_v40, %v1387_v4  ;;  %v3153_v2 = vpop.f32.mrb[7].mxu0  ;;  %v3224_v62 = vpop.f32.mrb[11].mxu1  ;;  %v6302_v18 = vadd.f32 %v3222_v50, %v1395_v36 }
 0x62e   :  { %v6301_v5 = vadd.f32 %v3153_v2, %v1391_v47  ;;  %v6303_v22 = vadd.f32 %v3224_v62, %v1399_v23 }
 0x62f   :  { %v3231_v12 = vmul.f32 0.5, %v6300_v60 }
 0x630   :  { %v3235_v13 = vmul.f32 0.5, %v6301_v5  ;;  %v3240_v30 = vmul.f32 0.5, %v6303_v22 }
 0x631   :  { %6395 = vtanh.f32 %v3231_v12 }
 0x632   :  { %6397 = vtanh.f32 %v3235_v13 }
 0x633   :  { %6399 = vtanh.f32 %v6302_v18 }
 0x634   :  { %6401 = vtanh.f32 %v3240_v30 }
 0x63b   :  { %v6396_v24 = vpop.eup %6395 }
 0x63c   :  { %v6398_v32 = vpop.eup %6397  ;;  %v3233_v41 = vmul.f32 0.5, %v6396_v24 }
 0x63d   :  { %v3237_v39 = vmul.f32 0.5, %v6398_v32  ;;  %v6400_v40 = vpop.eup %6399 }
 0x63e   :  { %v3234_v4 = vadd.f32 0.5, %v3233_v41  ;;  %v6402_v27 = vpop.eup %6401 }
 0x63f   :  { %v3238_v0 = vadd.f32 0.5, %v3237_v39  ;;  %v3242_v50 = vmul.f32 0.5, %v6402_v27 }
 0x640   :  { %v3245_v47 = vmul.f32 %v6400_v40, %v3234_v4 }
 0x641   :  { %v3244_v60 = vmul.f32 %v3238_v0, %v7138_v38  ;;  %v3243_v36 = vadd.f32 0.5, %v3242_v50  ;;  %v7408_v0 = vmov 0.0   ;;  %v7229_v38 = vld [vmem:[#allocation10 + $0x10] sm:$0xff] }
 0x642   :  { %v1403_v12 = vrot.slane %v7229_v38, %v6894_v51  ;;  %v1407_v13 = vrot.slane %v7229_v38, %v7127_v17  ;;  %v1411_v30 = vrot.slane %v7229_v38, %v6898_v3 }
 0x643   :  { %v7188_v2 = vadd.f32 %v3245_v47, %v3244_v60  ;;  %v1415_v47 = vrot.slane %v7229_v38, %v6920_v48 }
 0x645   :  { %6403 = vtanh.f32 %v7188_v2 }
 0x64f   :  { %v6404_v62 = vpop.eup %6403 }
 0x650   :  { %v7191_v5 = vmul.f32 %v6404_v62, %v3243_v36 }
 0x652   :  { %7407 = vst [vmem:[#allocation27_spill] sm:$0xff] %v7191_v5  ;;  %3319 = vmatmul.mubr.f32.vlgmr.msra.gmra.mrb[8].mxu0 %v7191_v5  ;;  %3390 = vmatmul.mubr.f32.vlgmr.msra.gmra.mrb[12].mxu1 %v7191_v5 }
 0x653   :  { %5959 = vmatpush1.bf16.msra.mxu0 %v6924_v56  ;;  %5991 = vmatpush1.bf16.msra.mxu1 %v6927_v57 }
 0x654   :  { %5961 = vmatprep.subr.bf16.mxu0 %v6929_v58  ;;  %5993 = vmatprep.subr.bf16.mxu1 %v6936_v1 }
 0x655   :  { %3487 = vmatprep.mubr.f32.mxu0 %v7408_v0  ;;  %3558 = vmatprep.mubr.f32.mxu1 %v7408_v0 }
 0x657   :  { %5963 = vmatpush1.bf16.msra.mxu0 %v6941_v7  ;;  %5995 = vmatpush1.bf16.msra.mxu1 %v6945_v8 }
 0x658   :  { %5965 = vmatprep.subr.bf16.mxu0 %v6947_v9  ;;  %5997 = vmatprep.subr.bf16.mxu1 %v6951_v31 }
 0x65b   :  { %5967 = vmatpush1.bf16.msra.mxu0 %v6956_v19  ;;  %5999 = vmatpush1.bf16.msra.mxu1 %v6960_v21 }
 0x65c   :  { %5969 = vmatprep.subr.bf16.mxu0 %v6962_v20  ;;  %6001 = vmatprep.subr.bf16.mxu1 %v6965_v26 }
 0x65f   :  { %5971 = vmatpush1.bf16.msra.mxu0 %v6968_v34  ;;  %6003 = vmatpush1.bf16.msra.mxu1 %v6972_v35 }
 0x660   :  { %5973 = vmatprep.subr.bf16.mxu0 %v6974_v37  ;;  %6005 = vmatprep.subr.bf16.mxu1 %v6977_v42 }
 0x663   :  { %5975 = vmatpush1.bf16.msra.mxu0 %v6980_v52  ;;  %6007 = vmatpush1.bf16.msra.mxu1 %v6984_v53 }
 0x664   :  { %5977 = vmatprep.subr.bf16.mxu0 %v6986_v54  ;;  %6009 = vmatprep.subr.bf16.mxu1 %v6989_v61 }
 0x667   :  { %5979 = vmatpush1.bf16.msra.mxu0 %v6993_v6  ;;  %6011 = vmatpush1.bf16.msra.mxu1 %v6997_v10 }
 0x668   :  { %5981 = vmatprep.subr.bf16.mxu0 %v6999_v11  ;;  %6013 = vmatprep.subr.bf16.mxu1 %v7002_v15 }
 0x66b   :  { %5983 = vmatpush1.bf16.msra.mxu0 %v7005_v25  ;;  %6015 = vmatpush1.bf16.msra.mxu1 %v7009_v28 }
 0x66c   :  { %5985 = vmatprep.subr.bf16.mxu0 %v7011_v29  ;;  %6017 = vmatprep.subr.bf16.mxu1 %v7014_v33 }
 0x66f   :  { %5987 = vmatpush1.bf16.msra.mxu0 %v7017_v43  ;;  %6019 = vmatpush1.bf16.msra.mxu1 %v7021_v45 }
 0x670   :  { %6021 = vmatprep.subr.bf16.mxu0 %v6917_v44  ;;  %6053 = vmatprep.subr.bf16.mxu1 %v6922_v49 }
 0x725   :  { %v3320_v18 = vpop.f32.mrb[8].mxu0  ;;  %v3391_v23 = vpop.f32.mrb[12].mxu1 }
 0x726   :  { %v6304_v22 = vadd.f32 %v3320_v18, %v1403_v12  ;;  %v3322_v24 = vpop.f32.mrb[9].mxu0  ;;  %v3393_v32 = vpop.f32.mrb[13].mxu1  ;;  %v6306_v40 = vadd.f32 %v3391_v23, %v1411_v30 }
 0x727   :  { %v6305_v41 = vadd.f32 %v3322_v24, %v1407_v13  ;;  %v6307_v60 = vadd.f32 %v3393_v32, %v1415_v47  ;;  %v1427_v47 = vrot.slane %v7229_v38, %v7071_v63 }
 0x728   :  { %v3400_v39 = vmul.f32 0.5, %v6304_v22 }
 0x729   :  { %v3404_v4 = vmul.f32 0.5, %v6305_v41  ;;  %v3409_v27 = vmul.f32 0.5, %v6307_v60 }
 0x72a   :  { %6405 = vtanh.f32 %v3400_v39 }
 0x72b   :  { %6407 = vtanh.f32 %v3404_v4 }
 0x72c   :  { %6409 = vtanh.f32 %v6306_v40 }
 0x72d   :  { %6411 = vtanh.f32 %v3409_v27 }
 0x734   :  { %v6406_v50 = vpop.eup %6405 }
 0x735   :  { %v6408_v36 = vpop.eup %6407  ;;  %v3402_v62 = vmul.f32 0.5, %v6406_v50 }
 0x736   :  { %v3406_v12 = vmul.f32 0.5, %v6408_v36  ;;  %v6410_v5 = vpop.eup %6409 }
 0x737   :  { %v3403_v18 = vadd.f32 0.5, %v3402_v62  ;;  %v6412_v23 = vpop.eup %6411 }
 0x738   :  { %v3407_v16 = vadd.f32 0.5, %v3406_v12  ;;  %v3411_v30 = vmul.f32 0.5, %v6412_v23 }
 0x739   :  { %v3414_v13 = vmul.f32 %v6410_v5, %v3403_v18 }
 0x73a   :  { %v3413_v22 = vmul.f32 %v3407_v16, %v7188_v2  ;;  %v3412_v41 = vadd.f32 0.5, %v3411_v30  ;;  %v1419_v16 = vrot.slane %v7229_v38, %v7063_v55  ;;  %v1423_v2 = vrot.slane %v7229_v38, %v7066_v59 }
 0x73c   :  { %v7240_v24 = vadd.f32 %v3414_v13, %v3413_v22 }
 0x73e   :  { %6413 = vtanh.f32 %v7240_v24 }
 0x748   :  { %v6414_v32 = vpop.eup %6413 }
 0x749   :  { %v7243_v39 = vmul.f32 %v6414_v32, %v3412_v41 }
 0x74b   :  { %3488 = vmatmul.mubr.f32.vlgmr.msra.gmra.mrb[10].mxu0 %v7243_v39  ;;  %3559 = vmatmul.mubr.f32.vlgmr.msra.gmra.mrb[14].mxu1 %v7243_v39 }
 0x74c   :  { %6023 = vmatpush1.bf16.msra.mxu0 %v6924_v56  ;;  %6055 = vmatpush1.bf16.msra.mxu1 %v6927_v57 }
 0x74d   :  { %6025 = vmatprep.subr.bf16.mxu0 %v6929_v58  ;;  %6057 = vmatprep.subr.bf16.mxu1 %v6936_v1 }
 0x74e   :  { %3656 = vmatprep.mubr.f32.mxu0 %v7408_v0  ;;  %3727 = vmatprep.mubr.f32.mxu1 %v7408_v0 }
 0x750   :  { %6027 = vmatpush1.bf16.msra.mxu0 %v6941_v7  ;;  %6059 = vmatpush1.bf16.msra.mxu1 %v6945_v8 }
 0x751   :  { %6029 = vmatprep.subr.bf16.mxu0 %v6947_v9  ;;  %6061 = vmatprep.subr.bf16.mxu1 %v6951_v31 }
 0x754   :  { %6031 = vmatpush1.bf16.msra.mxu0 %v6956_v19  ;;  %6063 = vmatpush1.bf16.msra.mxu1 %v6960_v21 }
 0x755   :  { %6033 = vmatprep.subr.bf16.mxu0 %v6962_v20  ;;  %6065 = vmatprep.subr.bf16.mxu1 %v6965_v26 }
 0x758   :  { %6035 = vmatpush1.bf16.msra.mxu0 %v6968_v34  ;;  %6067 = vmatpush1.bf16.msra.mxu1 %v6972_v35 }
 0x759   :  { %6037 = vmatprep.subr.bf16.mxu0 %v6974_v37  ;;  %6069 = vmatprep.subr.bf16.mxu1 %v6977_v42 }
 0x75c   :  { %6039 = vmatpush1.bf16.msra.mxu0 %v6980_v52  ;;  %6071 = vmatpush1.bf16.msra.mxu1 %v6984_v53 }
 0x75d   :  { %6041 = vmatprep.subr.bf16.mxu0 %v6986_v54  ;;  %6073 = vmatprep.subr.bf16.mxu1 %v6989_v61 }
 0x760   :  { %6043 = vmatpush1.bf16.msra.mxu0 %v6993_v6  ;;  %6075 = vmatpush1.bf16.msra.mxu1 %v6997_v10 }
 0x761   :  { %6045 = vmatprep.subr.bf16.mxu0 %v6999_v11  ;;  %6077 = vmatprep.subr.bf16.mxu1 %v7002_v15 }
 0x764   :  { %6047 = vmatpush1.bf16.msra.mxu0 %v7005_v25  ;;  %6079 = vmatpush1.bf16.msra.mxu1 %v7009_v28 }
 0x765   :  { %6049 = vmatprep.subr.bf16.mxu0 %v7011_v29  ;;  %6081 = vmatprep.subr.bf16.mxu1 %v7014_v33 }
 0x768   :  { %6051 = vmatpush1.bf16.msra.mxu0 %v7017_v43  ;;  %6083 = vmatpush1.bf16.msra.mxu1 %v7021_v45 }
 0x769   :  { %6085 = vmatprep.subr.bf16.mxu0 %v6917_v44  ;;  %6117 = vmatprep.subr.bf16.mxu1 %v6922_v49  ;;  %v1431_v49 = vrot.slane %v7229_v38, %v7078_v14 }
 0x81e   :  { %v3489_v5 = vpop.f32.mrb[10].mxu0  ;;  %v3560_v4 = vpop.f32.mrb[14].mxu1 }
 0x81f   :  { %v6308_v40 = vadd.f32 %v3489_v5, %v1419_v16  ;;  %v3491_v60 = vpop.f32.mrb[11].mxu0  ;;  %v3562_v27 = vpop.f32.mrb[15].mxu1  ;;  %v6310_v44 = vadd.f32 %v3560_v4, %v1427_v47 }
 0x820   :  { %v6309_v50 = vadd.f32 %v3491_v60, %v1423_v2  ;;  %v6311_v12 = vadd.f32 %v3562_v27, %v1431_v49 }
 0x821   :  { %v3569_v36 = vmul.f32 0.5, %v6308_v40 }
 0x822   :  { %v3573_v62 = vmul.f32 0.5, %v6309_v50  ;;  %v3578_v18 = vmul.f32 0.5, %v6311_v12  ;;  %v3934_v50 = vld [vmem:[#allocation13 + $0x8] sm:$0xff]  ;;  %v3952_v12 = vld [vmem:[#allocation13 + $0x98] sm:$0xff] }
 0x823   :  { %6415 = vtanh.f32 %v3569_v36  ;;  %v3965_v36 = vld [vmem:[#allocation13 + $0x100] sm:$0xff] }
 0x824   :  { %6417 = vtanh.f32 %v3573_v62  ;;  %v3966_v62 = vld [vmem:[#allocation13 + $0x108] sm:$0xff] }
 0x825   :  { %6419 = vtanh.f32 %v6310_v44  ;;  %v3951_v44 = vld [vmem:[#allocation13 + $0x90] sm:$0xff] }
 0x826   :  { %6421 = vtanh.f32 %v3578_v18  ;;  %v3983_v18 = vld [vmem:[#allocation13 + $0x190] sm:$0xff] }
 0x82d   :  { %v6416_v13 = vpop.eup %6415 }
 0x82e   :  { %v6418_v22 = vpop.eup %6417  ;;  %v3571_v23 = vmul.f32 0.5, %v6416_v13  ;;  %v3984_v13 = vld [vmem:[#allocation13 + $0x198] sm:$0xff] }
 0x82f   :  { %v3575_v30 = vmul.f32 0.5, %v6418_v22  ;;  %v6420_v32 = vpop.eup %6419 }
 0x830   :  { %v3572_v41 = vadd.f32 0.5, %v3571_v23  ;;  %v6422_v38 = vpop.eup %6421 }
 0x831   :  { %v3576_v16 = vadd.f32 0.5, %v3575_v30  ;;  %v3580_v4 = vmul.f32 0.5, %v6422_v38  ;;  %v6182_v30 = vpack.c.bf16 %v3966_v62, %v3965_v36  ;;  %v6152_v38 = vpack.c.bf16 %v3952_v12, %v3951_v44  ;;  %v3992_v36 = vld [vmem:[#allocation13 + $0x1d8] sm:$0xff] }
 0x832   :  { %v3583_v2 = vmul.f32 %v6420_v32, %v3572_v41  ;;  %v3935_v41 = vld [vmem:[#allocation13 + $0x10] sm:$0xff]  ;;  %v3936_v32 = vld [vmem:[#allocation13 + $0x18] sm:$0xff] }
 0x833   :  { %v3582_v5 = vmul.f32 %v3576_v16, %v7240_v24  ;;  %v3581_v47 = vadd.f32 0.5, %v3580_v4  ;;  %v3933_v24 = vld [vmem:[#allocation13] sm:$0xff]  ;;  %v6184_v4 = vpack.c.bf16 %v3984_v13, %v3983_v18  ;;  %v3944_v12 = vld [vmem:[#allocation13 + $0x58] sm:$0xff] }
 0x834   :  { %v6150_v23 = vpack.c.bf16 %v3934_v50, %v3933_v24  ;;  %v3960_v24 = vld [vmem:[#allocation13 + $0xd8] sm:$0xff]  ;;  %v3991_v50 = vld [vmem:[#allocation13 + $0x1d0] sm:$0xff] }
 0x835   :  { %v7290_v40 = vadd.f32 %v3583_v2, %v3582_v5  ;;  %v3967_v2 = vld [vmem:[#allocation13 + $0x110] sm:$0xff]  ;;  %v3968_v5 = vld [vmem:[#allocation13 + $0x118] sm:$0xff]  ;;  %v6200_v13 = vpack.c.bf16 %v3992_v36, %v3991_v50 }
 0x836   :  { %v4019_v50 = vld [vmem:[#allocation13 + $0x2b0] sm:$0xff]  ;;  %v4020_v36 = vld [vmem:[#allocation13 + $0x2b8] sm:$0xff] }
 0x837   :  { %6423 = vtanh.f32 %v7290_v40 }
 0x841   :  { %v6424_v60 = vpop.eup %6423 }
 0x842   :  { %v7293_v27 = vmul.f32 %v6424_v60, %v3581_v47  ;;  %v3954_v47 = vld [vmem:[#allocation13 + $0xa8] sm:$0xff]  ;;  %v3985_v60 = vld [vmem:[#allocation13 + $0x1a0] sm:$0xff] }
 0x844   :  { %3657 = vmatmul.mubr.f32.vlgmr.msra.gmra.mrb[12].mxu0 %v7293_v27  ;;  %3728 = vmatmul.mubr.f32.vlgmr.msra.gmra.mrb[16].mxu1 %v7293_v27 }
 0x845   :  { %6087 = vmatpush1.bf16.msra.mxu0 %v6924_v56  ;;  %6119 = vmatpush1.bf16.msra.mxu1 %v6927_v57  ;;  %v3949_v56 = vld [vmem:[#allocation13 + $0x80] sm:$0xff]  ;;  %v3950_v57 = vld [vmem:[#allocation13 + $0x88] sm:$0xff] }
 0x846   :  { %6089 = vmatprep.subr.bf16.mxu0 %v6929_v58  ;;  %6121 = vmatprep.subr.bf16.mxu1 %v6936_v1  ;;  %v3981_v58 = vld [vmem:[#allocation13 + $0x180] sm:$0xff]  ;;  %v6148_v1 = vpack.c.bf16 %v3950_v57, %v3949_v56  ;;  %v3986_v56 = vld [vmem:[#allocation13 + $0x1a8] sm:$0xff]  ;;  %v6154_v57 = vpack.c.bf16 %v3936_v32, %v3935_v41 }
 0x847   :  { %3825 = vmatprep.mubr.f32.mxu0 %v7408_v0  ;;  %3896 = vmatprep.mubr.f32.mxu1 %v7408_v0  ;;  %v3962_v41 = vld [vmem:[#allocation13 + $0xe8] sm:$0xff]  ;;  %v3993_v32 = vld [vmem:[#allocation13 + $0x1e0] sm:$0xff] }
 0x849   :  { %6091 = vmatpush1.bf16.msra.mxu0 %v6941_v7  ;;  %6123 = vmatpush1.bf16.msra.mxu1 %v6945_v8  ;;  %v3982_v7 = vld [vmem:[#allocation13 + $0x188] sm:$0xff] }
 0x84a   :  { %6093 = vmatprep.subr.bf16.mxu0 %v6947_v9  ;;  %6125 = vmatprep.subr.bf16.mxu1 %v6951_v31  ;;  %v6180_v8 = vpack.c.bf16 %v3982_v7, %v3981_v58  ;;  %v7329_v9 = vld [vmem:[#allocation10 + $0x18] sm:$0xff]  ;;  %v6186_v58 = vpack.c.bf16 %v3968_v5, %v3967_v2  ;;  %v3938_v7 = vld [vmem:[#allocation13 + $0x28] sm:$0xff] }
 0x84b   :  { %v1435_v31 = vrot.slane %v7329_v9, %v6894_v51  ;;  %v3994_v2 = vld [vmem:[#allocation13 + $0x1e8] sm:$0xff] }
 0x84d   :  { %6095 = vmatpush1.bf16.msra.mxu0 %v6956_v19  ;;  %6127 = vmatpush1.bf16.msra.mxu1 %v6960_v21  ;;  %v1439_v19 = vrot.slane %v7329_v9, %v7127_v17 }
 0x84e   :  { %6097 = vmatprep.subr.bf16.mxu0 %v6962_v20  ;;  %6129 = vmatprep.subr.bf16.mxu1 %v6965_v26 }
 0x851   :  { %6099 = vmatpush1.bf16.msra.mxu0 %v6968_v34  ;;  %6131 = vmatpush1.bf16.msra.mxu1 %v6972_v35  ;;  %v1443_v34 = vrot.slane %v7329_v9, %v6898_v3 }
 0x852   :  { %6101 = vmatprep.subr.bf16.mxu0 %v6974_v37  ;;  %6133 = vmatprep.subr.bf16.mxu1 %v6977_v42 }
 0x855   :  { %6103 = vmatpush1.bf16.msra.mxu0 %v6980_v52  ;;  %6135 = vmatpush1.bf16.msra.mxu1 %v6984_v53 }
 0x856   :  { %6105 = vmatprep.subr.bf16.mxu0 %v6986_v54  ;;  %6137 = vmatprep.subr.bf16.mxu1 %v6989_v61  ;;  %v1447_v61 = vrot.slane %v7329_v9, %v6920_v48 }
 0x859   :  { %6107 = vmatpush1.bf16.msra.mxu0 %v6993_v6  ;;  %6139 = vmatpush1.bf16.msra.mxu1 %v6997_v10 }
 0x85a   :  { %6109 = vmatprep.subr.bf16.mxu0 %v6999_v11  ;;  %6141 = vmatprep.subr.bf16.mxu1 %v7002_v15 }
 0x85d   :  { %6111 = vmatpush1.bf16.msra.mxu0 %v7005_v25  ;;  %6143 = vmatpush1.bf16.msra.mxu1 %v7009_v28 }
 0x85e   :  { %6113 = vmatprep.subr.bf16.mxu0 %v7011_v29  ;;  %6145 = vmatprep.subr.bf16.mxu1 %v7014_v33 }
 0x861   :  { %6115 = vmatpush1.bf16.msra.mxu0 %v7017_v43  ;;  %6147 = vmatpush1.bf16.msra.mxu1 %v7021_v45 }
 0x862   :  { %6149 = vmatprep.subr.bf16.mxu0 %v6148_v1  ;;  %6181 = vmatprep.subr.bf16.mxu1 %v6180_v8  ;;  %v3937_v1 = vld [vmem:[#allocation13 + $0x20] sm:$0xff] }
 0x917   :  { %v3658_v21 = vpop.f32.mrb[12].mxu0  ;;  %v3729_v20 = vpop.f32.mrb[16].mxu1 }
 0x918   :  { %v6312_v26 = vadd.f32 %v3658_v21, %v1435_v31  ;;  %v3660_v35 = vpop.f32.mrb[13].mxu0  ;;  %v3731_v37 = vpop.f32.mrb[17].mxu1  ;;  %v6314_v54 = vadd.f32 %v3729_v20, %v1443_v34  ;;  %v6188_v31 = vpack.c.bf16 %v3986_v56, %v3985_v60  ;;  %v3970_v21 = vld [vmem:[#allocation13 + $0x128] sm:$0xff]  ;;  %v3955_v20 = vld [vmem:[#allocation13 + $0xb0] sm:$0xff]  ;;  %v6204_v60 = vpack.c.bf16 %v3994_v2, %v3993_v32  ;;  %v3977_v56 = vld [vmem:[#allocation13 + $0x160] sm:$0xff] }
 0x919   :  { %v6313_v42 = vadd.f32 %v3660_v35, %v1439_v19  ;;  %v6315_v51 = vadd.f32 %v3731_v37, %v1447_v61  ;;  %v3969_v19 = vld [vmem:[#allocation13 + $0x120] sm:$0xff]  ;;  %v3987_v34 = vld [vmem:[#allocation13 + $0x1b0] sm:$0xff]  ;;  %v3988_v35 = vld [vmem:[#allocation13 + $0x1b8] sm:$0xff]  ;;  %v6158_v37 = vpack.c.bf16 %v3938_v7, %v3937_v1 }
 0x91a   :  { %v3738_v52 = vmul.f32 0.5, %v6312_v26  ;;  %v3956_v26 = vld [vmem:[#allocation13 + $0xb8] sm:$0xff]  ;;  %v3995_v7 = vld [vmem:[#allocation13 + $0x1f0] sm:$0xff] }
 0x91b   :  { %v3742_v53 = vmul.f32 0.5, %v6313_v42  ;;  %v3747_v6 = vmul.f32 0.5, %v6315_v51  ;;  %v6190_v42 = vpack.c.bf16 %v3970_v21, %v3969_v19  ;;  %v3972_v61 = vld [vmem:[#allocation13 + $0x138] sm:$0xff]  ;;  %v3957_v51 = vld [vmem:[#allocation13 + $0xc0] sm:$0xff]  ;;  %v3947_v21 = vld [vmem:[#allocation13 + $0x70] sm:$0xff] }
 0x91c   :  { %6425 = vtanh.f32 %v3738_v52  ;;  %v3939_v52 = vld [vmem:[#allocation13 + $0x30] sm:$0xff]  ;;  %v3964_v1 = vld [vmem:[#allocation13 + $0xf8] sm:$0xff] }
 0x91d   :  { %6427 = vtanh.f32 %v3742_v53  ;;  %v3940_v53 = vld [vmem:[#allocation13 + $0x38] sm:$0xff] }
 0x91e   :  { %6429 = vtanh.f32 %v6314_v54  ;;  %v3971_v54 = vld [vmem:[#allocation13 + $0x130] sm:$0xff]  ;;  %v4024_v32 = vld [vmem:[#allocation13 + $0x2d8] sm:$0xff] }
 0x91f   :  { %6431 = vtanh.f32 %v3747_v6  ;;  %v3958_v6 = vld [vmem:[#allocation13 + $0xc8] sm:$0xff] }
 0x926   :  { %v6426_v10 = vpop.eup %6425 }
 0x927   :  { %v6428_v11 = vpop.eup %6427  ;;  %v3740_v15 = vmul.f32 0.5, %v6426_v10  ;;  %v3989_v10 = vld [vmem:[#allocation13 + $0x1c0] sm:$0xff] }
 0x928   :  { %v3744_v25 = vmul.f32 0.5, %v6428_v11  ;;  %v6430_v28 = vpop.eup %6429  ;;  %v3990_v11 = vld [vmem:[#allocation13 + $0x1c8] sm:$0xff] }
 0x929   :  { %v3741_v3 = vadd.f32 0.5, %v3740_v15  ;;  %v6432_v48 = vpop.eup %6431  ;;  %v6162_v15 = vpack.c.bf16 %v3940_v53, %v3939_v52  ;;  %v4014_v52 = vld [vmem:[#allocation13 + $0x288] sm:$0xff] }
 0x92a   :  { %v3745_v29 = vadd.f32 0.5, %v3744_v25  ;;  %v3749_v17 = vmul.f32 0.5, %v6432_v48  ;;  %v6194_v25 = vpack.c.bf16 %v3972_v61, %v3971_v54  ;;  %v3974_v48 = vld [vmem:[#allocation13 + $0x148] sm:$0xff]  ;;  %v3997_v54 = vld [vmem:[#allocation13 + $0x200] sm:$0xff] }
 0x92b   :  { %v3752_v33 = vmul.f32 %v6430_v28, %v3741_v3  ;;  %v3941_v3 = vld [vmem:[#allocation13 + $0x40] sm:$0xff]  ;;  %v3942_v28 = vld [vmem:[#allocation13 + $0x48] sm:$0xff] }
 0x92c   :  { %v3751_v43 = vmul.f32 %v3745_v29, %v7290_v40  ;;  %v3750_v49 = vadd.f32 0.5, %v3749_v17  ;;  %v3953_v40 = vld [vmem:[#allocation13 + $0xa0] sm:$0xff]  ;;  %v6164_v29 = vpack.c.bf16 %v3958_v6, %v3957_v51  ;;  %v3959_v17 = vld [vmem:[#allocation13 + $0xd0] sm:$0xff]  ;;  %v6166_v62 = vpack.c.bf16 %v3942_v28, %v3941_v3  ;;  %v3998_v61 = vld [vmem:[#allocation13 + $0x208] sm:$0xff] }
 0x92d   :  { %v6156_v8 = vpack.c.bf16 %v3954_v47, %v3953_v40  ;;  %v6168_v18 = vpack.c.bf16 %v3960_v24, %v3959_v17  ;;  %v4015_v51 = vld [vmem:[#allocation13 + $0x290] sm:$0xff]  ;;  %v4016_v6 = vld [vmem:[#allocation13 + $0x298] sm:$0xff]  ;;  %v4017_v3 = vld [vmem:[#allocation13 + $0x2a0] sm:$0xff] }
 0x92e   :  { %v7340_v45 = vadd.f32 %v3752_v33, %v3751_v43  ;;  %v6196_v33 = vpack.c.bf16 %v3990_v11, %v3989_v10  ;;  %v3973_v43 = vld [vmem:[#allocation13 + $0x140] sm:$0xff]  ;;  %v6214_v10 = vpack.c.bf16 %v3998_v61, %v3997_v54  ;;  %v6216_v11 = vpack.c.bf16 %v4016_v6, %v4015_v51  ;;  %v4018_v28 = vld [vmem:[#allocation13 + $0x2a8] sm:$0xff]  ;;  %v4035_v54 = vld [vmem:[#allocation13 + $0x330] sm:$0xff] }
 0x92f   :  { %v6198_v44 = vpack.c.bf16 %v3974_v48, %v3973_v43  ;;  %v6220_v48 = vpack.c.bf16 %v4018_v28, %v4017_v3  ;;  %v4001_v17 = vld [vmem:[#allocation13 + $0x220] sm:$0xff]  ;;  %v4002_v24 = vld [vmem:[#allocation13 + $0x228] sm:$0xff]  ;;  %v4036_v61 = vld [vmem:[#allocation13 + $0x338] sm:$0xff] }
 0x930   :  { %6433 = vtanh.f32 %v7340_v45  ;;  %v6254_v51 = vpack.c.bf16 %v4036_v61, %v4035_v54  ;;  %v4037_v6 = vld [vmem:[#allocation13 + $0x340] sm:$0xff] }
 0x931   :  { %v4041_v28 = vld [vmem:[#allocation13 + $0x360] sm:$0xff] }
 0x93a   :  { %v6434_v22 = vpop.eup %6433 }
 0x93b   :  { %v7343_v16 = vmul.f32 %v6434_v22, %v3750_v49  ;;  %v3943_v49 = vld [vmem:[#allocation13 + $0x50] sm:$0xff] }
 0x93c   :  { %v3975_v22 = vld [vmem:[#allocation13 + $0x150] sm:$0xff]  ;;  %v6170_v5 = vpack.c.bf16 %v3944_v12, %v3943_v49  ;;  %v4004_v12 = vld [vmem:[#allocation13 + $0x238] sm:$0xff] }
 0x93d   :  { %3826 = vmatmul.mubr.f32.vlgmr.msra.gmra.mrb[14].mxu0 %v7343_v16  ;;  %3897 = vmatmul.mubr.f32.vlgmr.msra.gmra.mrb[18].mxu1 %v7343_v16  ;;  %v4003_v49 = vld [vmem:[#allocation13 + $0x230] sm:$0xff] }
 0x93e   :  { %6151 = vmatpush3.bf16.msra.mxu0 %v6150_v23  ;;  %6183 = vmatpush3.bf16.msra.mxu1 %v6182_v30  ;;  %v3976_v23 = vld [vmem:[#allocation13 + $0x158] sm:$0xff]  ;;  %v3961_v30 = vld [vmem:[#allocation13 + $0xe0] sm:$0xff] }
 0x93f   :  { %4116 = vmatprep.mubr.f32.mxu0 %v7141_v46  ;;  %4186 = vmatprep.mubr.f32.mxu1 %v7243_v39  ;;  %v6160_v46 = vpack.c.bf16 %v3956_v26, %v3955_v20  ;;  %v6192_v39 = vpack.c.bf16 %v3988_v35, %v3987_v34  ;;  %v6202_v40 = vpack.c.bf16 %v3976_v23, %v3975_v22  ;;  %v3948_v34 = vld [vmem:[#allocation13 + $0x78] sm:$0xff]  ;;  %v3979_v35 = vld [vmem:[#allocation13 + $0x170] sm:$0xff] }
 0x940   :  { %6153 = vmatprep.subr.bf16.mxu0 %v6152_v38  ;;  %6185 = vmatprep.subr.bf16.mxu1 %v6184_v4  ;;  %v3945_v38 = vld [vmem:[#allocation13 + $0x60] sm:$0xff]  ;;  %v3946_v4 = vld [vmem:[#allocation13 + $0x68] sm:$0xff]  ;;  %v6172_v47 = vpack.c.bf16 %v3962_v41, %v3961_v30  ;;  %v6178_v53 = vpack.c.bf16 %v3948_v34, %v3947_v21  ;;  %v6226_v22 = vpack.c.bf16 %v4004_v12, %v4003_v49  ;;  %v4023_v41 = vld [vmem:[#allocation13 + $0x2d0] sm:$0xff] }
 0x941   :  { %v4006_v30 = vld [vmem:[#allocation13 + $0x248] sm:$0xff]  ;;  %v4012_v21 = vld [vmem:[#allocation13 + $0x278] sm:$0xff] }
 0x942   :  { %6155 = vmatpush3.bf16.msra.mxu0 %v6154_v57  ;;  %6187 = vmatpush3.bf16.msra.mxu1 %v6186_v58  ;;  %v3978_v57 = vld [vmem:[#allocation13 + $0x168] sm:$0xff]  ;;  %v3963_v58 = vld [vmem:[#allocation13 + $0xf0] sm:$0xff] }
 0x943   :  { %6157 = vmatprep.subr.bf16.mxu0 %v6156_v8  ;;  %6189 = vmatprep.subr.bf16.mxu1 %v6188_v31  ;;  %v3996_v8 = vld [vmem:[#allocation13 + $0x1f8] sm:$0xff]  ;;  %v6174_v31 = vpack.c.bf16 %v3946_v4, %v3945_v38  ;;  %v6206_v19 = vpack.c.bf16 %v3978_v57, %v3977_v56  ;;  %v6176_v20 = vpack.c.bf16 %v3964_v1, %v3963_v58  ;;  %v4025_v4 = vld [vmem:[#allocation13 + $0x2e0] sm:$0xff]  ;;  %v4010_v58 = vld [vmem:[#allocation13 + $0x268] sm:$0xff] }
 0x944   :  { %v6208_v26 = vpack.c.bf16 %v3996_v8, %v3995_v7  ;;  %v4008_v38 = vld [vmem:[#allocation13 + $0x258] sm:$0xff]  ;;  %v4009_v57 = vld [vmem:[#allocation13 + $0x260] sm:$0xff]  ;;  %v4027_v1 = vld [vmem:[#allocation13 + $0x2f0] sm:$0xff] }
 0x945   :  { %v4028_v7 = vld [vmem:[#allocation13 + $0x2f8] sm:$0xff]  ;;  %v6238_v8 = vpack.c.bf16 %v4010_v58, %v4009_v57  ;;  %v4030_v34 = vld [vmem:[#allocation13 + $0x308] sm:$0xff] }
 0x946   :  { %6159 = vmatpush3.bf16.msra.mxu0 %v6158_v37  ;;  %6191 = vmatpush3.bf16.msra.mxu1 %v6190_v42  ;;  %v3980_v37 = vld [vmem:[#allocation13 + $0x178] sm:$0xff]  ;;  %v4013_v42 = vld [vmem:[#allocation13 + $0x280] sm:$0xff] }
 0x947   :  { %6161 = vmatprep.subr.bf16.mxu0 %v6160_v46  ;;  %6193 = vmatprep.subr.bf16.mxu1 %v6192_v39  ;;  %v6210_v46 = vpack.c.bf16 %v3980_v37, %v3979_v35  ;;  %v6212_v39 = vpack.c.bf16 %v4014_v52, %v4013_v42  ;;  %v6698_v37 = vmov 0.0|0.0   ;;  %v4031_v42 = vld [vmem:[#allocation13 + $0x310] sm:$0xff]  ;;  %v4032_v52 = vld [vmem:[#allocation13 + $0x318] sm:$0xff]  ;;  %v4337_v12 = vld [vmem:[#allocation16 + $0x20] sm:$0xff] }
 0x94a   :  { %6163 = vmatpush3.bf16.msra.mxu0 %v6162_v15  ;;  %6195 = vmatpush3.bf16.msra.mxu1 %v6194_v25  ;;  %v3999_v15 = vld [vmem:[#allocation13 + $0x210] sm:$0xff]  ;;  %v4000_v25 = vld [vmem:[#allocation13 + $0x218] sm:$0xff] }
 0x94b   :  { %6165 = vmatprep.subr.bf16.mxu0 %v6164_v29  ;;  %6197 = vmatprep.subr.bf16.mxu1 %v6196_v33  ;;  %v7409_v29 = vld [vmem:[#allocation26_spill] sm:$0xff]  ;;  %v7410_v33 = vld [vmem:[#allocation27_spill] sm:$0xff]  ;;  %v6218_v43 = vpack.c.bf16 %v4000_v25, %v3999_v15 }
 0x94c   :  { %v4039_v15 = vld [vmem:[#allocation13 + $0x350] sm:$0xff]  ;;  %v4040_v25 = vld [vmem:[#allocation13 + $0x358] sm:$0xff] }
 0x94d   :  { %v6260_v3 = vpack.c.bf16 %v4040_v25, %v4039_v15 }
 0x94e   :  { %6167 = vmatpush3.bf16.msra.mxu0 %v6166_v62  ;;  %6199 = vmatpush3.bf16.msra.mxu1 %v6198_v44  ;;  %v6222_v62 = vpack.c.bf16 %v4002_v24, %v4001_v17  ;;  %v6224_v44 = vpack.c.bf16 %v4020_v36, %v4019_v50  ;;  %v4333_v24 = vld [vmem:[#allocation16] sm:$0xff]  ;;  %v4334_v50 = vld [vmem:[#allocation16 + $0x8] sm:$0xff]  ;;  %v4335_v36 = vld [vmem:[#allocation16 + $0x10] sm:$0xff] }
 0x94f   :  { %6169 = vmatprep.subr.bf16.mxu0 %v6168_v18  ;;  %6201 = vmatprep.subr.bf16.mxu1 %v6200_v13  ;;  %v4021_v18 = vld [vmem:[#allocation13 + $0x2c0] sm:$0xff]  ;;  %v4022_v13 = vld [vmem:[#allocation13 + $0x2c8] sm:$0xff] }
 0x950   :  { %v6228_v23 = vpack.c.bf16 %v4022_v13, %v4021_v18  ;;  %v4338_v18 = vld [vmem:[#allocation16 + $0x28] sm:$0xff] }
 0x951   :  { %v6275_v13 = vpack.c.bf16 %v4338_v18, %v4337_v12  ;;  %v4458_v18 = vld [vmem:[#allocation18] ss:$0 sm:$0xff] }
 0x952   :  { %6171 = vmatpush3.bf16.msra.mxu0 %v6170_v5  ;;  %6203 = vmatpush3.bf16.msra.mxu1 %v6202_v40  ;;  %v6232_v5 = vpack.c.bf16 %v4024_v32, %v4023_v41  ;;  %v4007_v40 = vld [vmem:[#allocation13 + $0x250] sm:$0xff] }
 0x953   :  { %6173 = vmatprep.subr.bf16.mxu0 %v6172_v47  ;;  %6205 = vmatprep.subr.bf16.mxu1 %v6204_v60  ;;  %v4026_v47 = vld [vmem:[#allocation13 + $0x2e8] sm:$0xff]  ;;  %v6234_v60 = vpack.c.bf16 %v4008_v38, %v4007_v40  ;;  %v4343_v32 = vld [vmem:[#allocation16 + $0x50] sm:$0xff] }
 0x954   :  { %v6236_v56 = vpack.c.bf16 %v4026_v47, %v4025_v4  ;;  %v4345_v40 = vld [vmem:[#allocation16 + $0x60] sm:$0xff]  ;;  %v4346_v38 = vld [vmem:[#allocation16 + $0x68] sm:$0xff]  ;;  %v1451_v47 = vrot.slane %v7329_v9, %v7063_v55 }
 0x955   :  { %v6287_v4 = vpack.c.bf16 %v4346_v38, %v4345_v40 }
 0x956   :  { %6175 = vmatpush3.bf16.msra.mxu0 %v6174_v31  ;;  %6207 = vmatpush3.bf16.msra.mxu1 %v6206_v19  ;;  %v6240_v31 = vpack.c.bf16 %v4028_v7, %v4027_v1  ;;  %v4011_v19 = vld [vmem:[#allocation13 + $0x270] sm:$0xff]  ;;  %v1459_v1 = vrot.slane %v7329_v9, %v7071_v63 }
 0x957   :  { %6177 = vmatprep.subr.bf16.mxu0 %v6176_v20  ;;  %6209 = vmatprep.subr.bf16.mxu1 %v6208_v26  ;;  %v6242_v20 = vpack.c.bf16 %v4012_v21, %v4011_v19  ;;  %v4029_v26 = vld [vmem:[#allocation13 + $0x300] sm:$0xff] }
 0x958   :  { %v6245_v35 = vpack.c.bf16 %v4030_v34, %v4029_v26  ;;  %v1463_v26 = vrot.slane %v7329_v9, %v7078_v14 }
 0x95a   :  { %6179 = vmatpush3.bf16.msra.mxu0 %v6178_v53  ;;  %6211 = vmatpush3.bf16.msra.mxu1 %v6210_v46  ;;  %v6248_v53 = vpack.c.bf16 %v4032_v52, %v4031_v42  ;;  %v4033_v46 = vld [vmem:[#allocation13 + $0x320] sm:$0xff] }
 0x95b   :  { %6213 = vmatprep.subr.bf16.mxu0 %v6212_v39  ;;  %6244 = vmatprep.subr.bf16.mxu1 %v6698_v37  ;;  %v4034_v39 = vld [vmem:[#allocation13 + $0x328] sm:$0xff] }
 0x95d   :  { %4117 = vmatmul.mubr.f32.vlgmr.msra.gmra.mrb[16].mxu0 %v7409_v29  ;;  %4187 = vmatmul.mubr.f32.vlgmr.msra.gmra.mrb[20].mxu1 %v7410_v33  ;;  %v4042_v29 = vld [vmem:[#allocation13 + $0x368] sm:$0xff] }
 0x95e   :  { %6215 = vmatpush3.bf16.msra.mxu0 %v6214_v10  ;;  %4256 = vmatprep.mubr.f32.mxu0 %v7343_v16  ;;  %v4005_v16 = vld [vmem:[#allocation13 + $0x240] sm:$0xff]  ;;  %v4038_v10 = vld [vmem:[#allocation13 + $0x348] sm:$0xff]  ;;  %v6263_v33 = vpack.c.bf16 %v4042_v29, %v4041_v28 }
 0x95f   :  { %6217 = vmatprep.subr.bf16.mxu0 %v6216_v11  ;;  %v6230_v2 = vpack.c.bf16 %v4006_v30, %v4005_v16  ;;  %6246 = vmatpush3.bf16.msra.mxu1 %v6245_v35  ;;  %v6257_v11 = vpack.c.bf16 %v4038_v10, %v4037_v6  ;;  %v4342_v30 = vld [vmem:[#allocation16 + $0x48] sm:$0xff] }
 0x960   :  { %6247 = vmatprep.subr.bf16.mxu1 %v6698_v37  ;;  %4630 = vmatprep.mubr.msk.f32.mxu1 %vm6699_vm1, %v7408_v0 }
 0x962   :  { %6219 = vmatpush3.bf16.msra.mxu0 %v6218_v43  ;;  %v4043_v43 = vld [vmem:[#allocation13 + $0x370] sm:$0xff] }
 0x963   :  { %6221 = vmatprep.subr.bf16.mxu0 %v6220_v48  ;;  %6249 = vmatpush3.bf16.msra.mxu1 %v6248_v53  ;;  %v4044_v48 = vld [vmem:[#allocation13 + $0x378] sm:$0xff] }
 0x964   :  { %6250 = vmatprep.subr.bf16.mxu1 %v6698_v37  ;;  %v6266_v17 = vpack.c.bf16 %v4044_v48, %v4043_v43 }
 0x966   :  { %6223 = vmatpush3.bf16.msra.mxu0 %v6222_v62  ;;  %v6269_v62 = vpack.c.bf16 %v4334_v50, %v4333_v24  ;;  %v4347_v24 = vld [vmem:[#allocation16 + $0x70] sm:$0xff]  ;;  %v4348_v50 = vld [vmem:[#allocation16 + $0x78] sm:$0xff] }
 0x967   :  { %6225 = vmatprep.subr.bf16.mxu0 %v6224_v44  ;;  %v4336_v44 = vld [vmem:[#allocation16 + $0x18] sm:$0xff] }
 0x968   :  { %v6272_v49 = vpack.c.bf16 %v4336_v44, %v4335_v36  ;;  %v6290_v36 = vpack.c.bf16 %v4348_v50, %v4347_v24 }
 0x96a   :  { %6227 = vmatpush3.bf16.msra.mxu0 %v6226_v22  ;;  %v4339_v22 = vld [vmem:[#allocation16 + $0x30] sm:$0xff] }
 0x96b   :  { %6229 = vmatprep.subr.bf16.mxu0 %v6228_v23  ;;  %v4340_v23 = vld [vmem:[#allocation16 + $0x38] sm:$0xff] }
 0x96c   :  { %v6278_v16 = vpack.c.bf16 %v4340_v23, %v4339_v22 }
 0x96e   :  { %6231 = vmatpush3.bf16.msra.mxu0 %v6230_v2  ;;  %v4344_v2 = vld [vmem:[#allocation16 + $0x58] sm:$0xff] }
 0x96f   :  { %6233 = vmatprep.subr.bf16.mxu0 %v6232_v5  ;;  %v6284_v5 = vpack.c.bf16 %v4344_v2, %v4343_v32 }
 0x972   :  { %6235 = vmatpush3.bf16.msra.mxu0 %v6234_v60  ;;  %v1455_v60 = vrot.slane %v7329_v9, %v7066_v59 }
 0x973   :  { %6237 = vmatprep.subr.bf16.mxu0 %v6236_v56 }
 0x976   :  { %6239 = vmatpush3.bf16.msra.mxu0 %v6238_v8 }
 0x977   :  { %6241 = vmatprep.subr.bf16.mxu0 %v6240_v31 }
 0x97a   :  { %6243 = vmatpush3.bf16.msra.mxu0 %v6242_v20 }
 0x97b   :  { %6268 = vmatprep.subr.bf16.mxu0 %v6698_v37 }
 0x97d   :  { %4257 = vmatmul.mubr.f32.vlgmr.msra.gmra.mrb[18].mxu0 %v7293_v27  ;;  %v6251_v27 = vpack.c.bf16 %v4034_v39, %v4033_v46 }
 0x97e   :  { %4665 = vmatprep.mubr.msk.f32.mxu0 %vm6699_vm1, %v7408_v0  ;;  %6270 = vmatpush3.bf16.msra.mxu0 %v6269_v62  ;;  %v4341_v0 = vld [vmem:[#allocation16 + $0x40] sm:$0xff] }
 0x97f   :  { %6252 = vmatpush3.bf16.msra.mxu1 %v6251_v27  ;;  %6271 = vmatprep.subr.bf16.mxu0 %v6698_v37  ;;  %v6281_v41 = vpack.c.bf16 %v4342_v30, %v4341_v0 }
 0x980   :  { %6253 = vmatprep.subr.bf16.mxu1 %v6698_v37 }
 0x982   :  { %6273 = vmatpush3.bf16.msra.mxu0 %v6272_v49 }
 0x983   :  { %6255 = vmatpush3.bf16.msra.mxu1 %v6254_v51  ;;  %6274 = vmatprep.subr.bf16.mxu0 %v6698_v37  ;;  %v4457_v51 = vld [vmem:[#allocation15] ss:$0 sm:$0xff] }
 0x984   :  { %6256 = vmatprep.subr.bf16.mxu1 %v6698_v37 }
 0x986   :  { %6276 = vmatpush3.bf16.msra.mxu0 %v6275_v13 }
 0x987   :  { %6258 = vmatpush3.bf16.msra.mxu1 %v6257_v11  ;;  %6277 = vmatprep.subr.bf16.mxu0 %v6698_v37 }
 0x988   :  { %6259 = vmatprep.subr.bf16.mxu1 %v6698_v37 }
 0x98a   :  { %6279 = vmatpush3.bf16.msra.mxu0 %v6278_v16 }
 0x98b   :  { %6261 = vmatpush3.bf16.msra.mxu1 %v6260_v3  ;;  %6280 = vmatprep.subr.bf16.mxu0 %v6698_v37 }
 0x98c   :  { %6262 = vmatprep.subr.bf16.mxu1 %v6698_v37 }
 0x98e   :  { %6282 = vmatpush3.bf16.msra.mxu0 %v6281_v41 }
 0x98f   :  { %6264 = vmatpush3.bf16.msra.mxu1 %v6263_v33  ;;  %6283 = vmatprep.subr.bf16.mxu0 %v6698_v37 }
 0x990   :  { %6265 = vmatprep.subr.bf16.mxu1 %v6698_v37 }
 0x992   :  { %6285 = vmatpush3.bf16.msra.mxu0 %v6284_v5 }
 0x993   :  { %6267 = vmatpush3.bf16.msra.mxu1 %v6266_v17  ;;  %6286 = vmatprep.subr.bf16.mxu0 %v6698_v37 }
 0x996   :  { %6288 = vmatpush3.bf16.msra.mxu0 %v6287_v4 }
 0x997   :  { %6289 = vmatprep.subr.bf16.mxu0 %v6698_v37 }
 0x99a   :  { %6291 = vmatpush3.bf16.msra.mxu0 %v6290_v36 }
 0xa10   :  { %v3827_v56 = vpop.f32.mrb[14].mxu0  ;;  %v3898_v57 = vpop.f32.mrb[18].mxu1 }
 0xa11   :  { %v6316_v58 = vadd.f32 %v3827_v56, %v1451_v47  ;;  %v3829_v7 = vpop.f32.mrb[15].mxu0  ;;  %v3900_v8 = vpop.f32.mrb[19].mxu1  ;;  %v6318_v20 = vadd.f32 %v3898_v57, %v1459_v1 }
 0xa12   :  { %v6317_v31 = vadd.f32 %v3829_v7, %v1455_v60  ;;  %v6319_v55 = vadd.f32 %v3900_v8, %v1463_v26 }
 0xa13   :  { %v3907_v19 = vmul.f32 0.5, %v6316_v58 }
 0xa14   :  { %v3911_v21 = vmul.f32 0.5, %v6317_v31  ;;  %v3916_v59 = vmul.f32 0.5, %v6319_v55 }
 0xa15   :  { %6435 = vtanh.f32 %v3907_v19 }
 0xa16   :  { %6437 = vtanh.f32 %v3911_v21 }
 0xa17   :  { %6439 = vtanh.f32 %v6318_v20 }
 0xa18   :  { %6441 = vtanh.f32 %v3916_v59 }
 0xa1f   :  { %v6436_v34 = vpop.eup %6435 }
 0xa20   :  { %v6438_v35 = vpop.eup %6437  ;;  %v3909_v37 = vmul.f32 0.5, %v6436_v34 }
 0xa21   :  { %v3913_v42 = vmul.f32 0.5, %v6438_v35  ;;  %v6440_v52 = vpop.eup %6439 }
 0xa22   :  { %v3910_v63 = vadd.f32 0.5, %v3909_v37  ;;  %v6442_v54 = vpop.eup %6441 }
 0xa23   :  { %v3914_v53 = vadd.f32 0.5, %v3913_v42  ;;  %v3918_v61 = vmul.f32 0.5, %v6442_v54 }
 0xa24   :  { %v3921_v46 = vmul.f32 %v6440_v52, %v3910_v63 }
 0xa25   :  { %v3920_v39 = vmul.f32 %v3914_v53, %v7340_v45  ;;  %v3919_v11 = vadd.f32 0.5, %v3918_v61 }
 0xa27   :  { %v3922_v27 = vadd.f32 %v3921_v46, %v3920_v39 }
 0xa29   :  { %6443 = vtanh.f32 %v3922_v27 }
 0xa30   :  { %v4491_v14 = vpop.f32.mrb[16].mxu0  ;;  %v4526_v9 = vpop.f32.mrb[20].mxu1 }
 0xa31   :  { %v4492_v6 = vpop.f32.mrb[17].mxu0  ;;  %v4527_v10 = vpop.f32.mrb[21].mxu1 }
 0xa32   :  { %v4493_v15 = vadd.f32 %v4492_v6, %v4491_v14  ;;  %v4528_v25 = vadd.f32 %v4527_v10, %v4526_v9 }
 0xa33   :  { %v6444_v3 = vpop.eup %6443 }
 0xa34   :  { %v3924_v28 = vmul.f32 %v6444_v3, %v3919_v11  ;;  %v4119_v29 = vadd.f32 %v4493_v15, %v4457_v51 }
 0xa36   :  { %v4189_v33 = vadd.f32 %v4528_v25, %v4119_v29  ;;  %4631 = vmatmul.mubr.f32.vlgmr.msra.gmra.mrb[22].mxu1 %v3924_v28 }
 0xa50   :  { %v4561_v43 = vpop.f32.mrb[18].mxu0 }
 0xa51   :  { %v4562_v48 = vpop.f32.mrb[19].mxu0 }
 0xa52   :  { %v4563_v45 = vadd.f32 %v4562_v48, %v4561_v43 }
 0xa54   :  { %v4259_v17 = vadd.f32 %v4563_v45, %v4189_v33 }
 0xb09   :  { %v4328_v62 = vpop.f32.mrb[22].mxu1 }
 0xb0a   :  { %v4329_v44 = vadd.f32 %v4328_v62, %v4259_v17  ;;  %v4632_v49 = vpop.f32.mrb[23].mxu1 }
 0xb0c   :  { %v4332_v12 = vmax.f32 %v4329_v44, 0.0 }
 0xb0e   :  { %4666 = vmatmul.mubr.f32.vlgmr.msra.gmra.mrb[20].mxu0 %v4332_v12 }
 0xbe1   :  { %v4422_v13 = vpop.f32.mrb[20].mxu0 }
 0xbe2   :  { %v4423_v22 = vadd.f32 %v4458_v18, %v4422_v13  ;;  %v4667_v23 = vpop.f32.mrb[21].mxu0 }
 0xbe4   :  { %4426 = vmax.xlane.f32.xlu0 %v4423_v22 }
 0xc71   :  { %v4427_v16 = vpop.xlane.xlu0 %4426 }
 0xc72   :  { %v4428_v0 = vsub.f32 %v4423_v22, %v4427_v16 }
 0xc74   :  { %v4429_v30 = vmul.f32 1.442695, %v4428_v0 }
 0xc76   :  { %6445 = vpow2.f32 %v4429_v30 }
 0xc80   :  { %v6446_v41 = vpop.eup %6445 }
 0xc81   :  { %4431 = vadd.xlane.f32.xlu0 %v6446_v41 }
 0xd0e   :  { %v4432_v32 = vpop.xlane.xlu0 %4431 }
 0xd0f   :  { %6447 = vrcp.f32 %v4432_v32 }
 0xd19   :  { %v6448_v2 = vpop.eup %6447 }
 0xd1a   :  { %v4434_v5 = vmul.f32 %v6448_v2, %v6446_v41 }
 0xd1c   :  { %4435 = vst [vmem:[#allocation19] sm:$0xff] %v4434_v5 }
 0xd1d   :  { %6659 = shalt.err (!%p6656_p6)
}
 0xd1e   :  { %s6660_s13 = scalar_lea.hbm %s7401_s9, 128 }
 0xd1f   :  { %p6661_p7 = scmp.ne.s32.totalorder %s7401_s9, %s6660_s13  ;;  %p6664_p8 = scmp.lt.u32.totalorder %s6660_s13, %s7401_s9 }
 0xd21   :  { %p6666_p9 = pnand %p6664_p8, %p6661_p7 }
 0xd23   :  { %6669 = shalt.err (!%p6666_p9)
}
 0xd24   :  { %4445 = dma.vmem_to_hbm [thread:$0]  %s4443_s3, 128, %s7401_s9, [#allocation6]  }
 0xd25   :  { %6680 = dma.done.wait [#allocation6], 128  }
 0xd26   :  { %6681 = vsyncadd [#allocation6], 4294967168 }
 0xd27   :  { %4449 = vsyncpa [#allocation5], 1 }
 0xd28   :  { %4450 = vsyncpa [#allocation8], 1 }
 0xd29   :  { %4451 = vsyncpa [#allocation11], 1 }
 0xd2a   :  { %4452 = vsyncpa [#allocation14], 1 }
 0xd2b   :  { %4453 = vsyncpa [#allocation17], 1 }
 0xd2c   :  { %4454 = vsyncpa [#allocation6], 1 }

</bundles_post_ra>
